<compile_context>
chip_gen: v7x
topology: tpu7x:2x2x1
jax: 0.10.0
libtpu: 0.0.40
codegen_flags: <defaults>
</compile_context>

<pallas_src>
import functools
import math

import jax
import jax.numpy as jnp
from jax import lax
from jax.experimental import pallas as pl
from jax.experimental.pallas import tpu as pltpu

NEG_SLOPE = 0.01   # F.leaky_relu default negative_slope
BN_EPS = 1e-5      # nn.BatchNorm2d default eps
LANE = 128


def _round_up(x, m):
    return ((x + m - 1) // m) * m


# ----------------------- Pallas kernels (hot path) -----------------------

def conv_lrelu_bn_kernel(p_ref, w_ref, b_ref, g_ref, beta_ref, o_ref, *, m_true):
    # p_ref: (Mp, Kp) bf16 im2col patches, w_ref: (Kp, 128) bf16,
    # b/g/beta: (1, 128) f32, o_ref: (Mp, 128) f32. Rows >= m_true are padding.
    y = jnp.dot(p_ref[...], w_ref[...], preferred_element_type=jnp.float32)
    y = y + b_ref[...]
    y = jnp.where(y > 0, y, NEG_SLOPE * y)                    # leaky_relu (f32)

    # BatchNorm2d (training-mode batch stats) over batch*spatial rows,
    # excluding the zero-padded rows. One pass: sum + sum-of-squares.
    mp = y.shape[0]
    row = lax.broadcasted_iota(jnp.int32, (mp, 1), 0)
    mask = (row < m_true).astype(jnp.float32)
    inv_m = 1.0 / float(m_true)
    ym = y * mask
    s1 = jnp.sum(ym, axis=0, keepdims=True)
    s2 = jnp.sum(ym * y, axis=0, keepdims=True)               # masked y^2
    mean = s1 * inv_m
    var = jnp.maximum(s2 * inv_m - mean * mean, 0.0)          # biased var
    scale = g_ref[...] * lax.rsqrt(var + BN_EPS)
    shift = beta_ref[...] - mean * scale
    o_ref[...] = y * scale + shift


def linear_kernel(x_ref, w_ref, b_ref, o_ref):
    o_ref[...] = (
        jnp.dot(x_ref[...], w_ref[...], preferred_element_type=jnp.float32)
        + b_ref[...]
    )


_COMPILER_PARAMS = pltpu.CompilerParams(vmem_limit_bytes=32 * 1024 * 1024)


def _vmem_specs(n):
    return [pl.BlockSpec(memory_space=pltpu.MemorySpace.VMEM) for _ in range(n)]


def conv_lrelu_bn(patches, w2d, bias, gamma, beta, m_true):
    mp = patches.shape[0]
    cp = w2d.shape[1]
    kern = functools.partial(conv_lrelu_bn_kernel, m_true=m_true)
    return pl.pallas_call(
        kern,
        out_shape=jax.ShapeDtypeStruct((mp, cp), jnp.float32),
        in_specs=_vmem_specs(5),
        out_specs=pl.BlockSpec(memory_space=pltpu.MemorySpace.VMEM),
        compiler_params=_COMPILER_PARAMS,
    )(patches, w2d, bias, gamma, beta)


def linear(x, w, b):
    mp = x.shape[0]
    cp = w.shape[1]
    return pl.pallas_call(
        linear_kernel,
        out_shape=jax.ShapeDtypeStruct((mp, cp), jnp.float32),
        in_specs=_vmem_specs(3),
        out_specs=pl.BlockSpec(memory_space=pltpu.MemorySpace.VMEM),
        compiler_params=_COMPILER_PARAMS,
    )(x, w, b)


# ----------------------------- JAX glue -----------------------------

def im2col(x_nhwc, k, pad, k_pad):
    """x_nhwc (N,H,W,C) bf16 -> zero-padded patches (Mp, Kp) bf16, plus OH,OW,M."""
    x = jnp.pad(x_nhwc, ((0, 0), (pad, pad), (pad, pad), (0, 0)))
    N, H, W, C = x.shape
    OH, OW = H - k + 1, W - k + 1
    cols = []
    for i in range(k):
        for j in range(k):
            cols.append(x[:, i:i + OH, j:j + OW, :])
    p = jnp.stack(cols, axis=3).reshape(N * OH * OW, k * k * C)
    M, K = p.shape
    Mp = _round_up(M, 16)
    p = jnp.pad(p, ((0, Mp - M), (0, k_pad - K)))
    return p, OH, OW, M


def build_params(key, depth, width, expansion=2, padding=1, noutput=2):
    """Deterministic synthetic params; shapes follow HCNN.__init__ exactly.

    Conv weights (Cout,Cin,KH,KW) -> (KH*KW*Cin, Cout), zero-padded to
    (Kpad, 128) bf16 so the kernel output is lane-dense. FC weight rows are
    permuted from NCHW-flatten order to NHWC-flatten order.
    """
    chi = depth * expansion
    ikernel = lambda w: max(int(w / 2), 2)
    iwidth = lambda w, k: w - k + 2 * padding + 1
    chans = [depth, chi, chi * 2, chi * 4, chi * 8]
    params = {}
    w = width
    for li in range(4):
        k = ikernel(w)
        cin, cout = chans[li], chans[li + 1]
        key, k1, k2 = jax.random.split(key, 3)
        bound = 1.0 / math.sqrt(cin * k * k)
        wconv = jax.random.uniform(k1, (cout, cin, k, k), jnp.float32, -bound, bound)
        bconv = jax.random.uniform(k2, (cout,), jnp.float32, -bound, bound)
        K = k * k * cin
        Kp = _round_up(K, 128)
        Cp = _round_up(cout, LANE)
        w2d = jnp.transpose(wconv, (2, 3, 1, 0)).reshape(K, cout)
        w2d = jnp.pad(w2d, ((0, Kp - K), (0, Cp - cout))).astype(jnp.bfloat16)
        params[f'conv{li + 1}'] = dict(
            w2d=w2d,
            b=jnp.pad(bconv.reshape(1, cout), ((0, 0), (0, Cp - cout))),
            gamma=jnp.pad(jnp.ones((1, cout), jnp.float32), ((0, 0), (0, Cp - cout))),
            beta=jnp.zeros((1, Cp), jnp.float32),
            k=k, cout=cout, kdim_pad=Kp,
        )
        w = iwidth(w, k)
    flat = chans[4] * w * w
    key, k1, k2 = jax.random.split(key, 3)
    bound = 1.0 / math.sqrt(flat)
    wfc = jax.random.uniform(k1, (noutput, flat), jnp.float32, -bound, bound)
    bfc = jax.random.uniform(k2, (noutput,), jnp.float32, -bound, bound)
    # Reorder rows: PyTorch NCHW flatten index (c,h,w) -> our NHWC index (h,w,c).
    wfc_hwc = (wfc.reshape(noutput, chans[4], w, w)
                  .transpose(0, 2, 3, 1).reshape(noutput, flat).T)   # (flat, nout)
    Kp_fc = _round_up(flat, 128)
    Np = _round_up(noutput, LANE)
    params['fc0'] = dict(
        w=jnp.pad(wfc_hwc, ((0, Kp_fc - flat), (0, Np - noutput))).astype(jnp.bfloat16),
        b=jnp.pad(bfc.reshape(1, noutput), ((0, 0), (0, Np - noutput))),
        kdim=flat, kdim_pad=Kp_fc, noutput=noutput,
    )
    params['final_width'] = w
    params['noutput'] = noutput
    return params


def hcnn_forward(x_nchw, params, padding=1):
    # NCHW -> NHWC, bf16 operands for the MXU (accumulation stays f32 in-kernel).
    x = jnp.transpose(x_nchw, (0, 2, 3, 1)).astype(jnp.bfloat16)
    N = x.shape[0]
    for li in range(4):
        p = params[f'conv{li + 1}']
        patches, OH, OW, M = im2col(x, p['k'], padding, p['kdim_pad'])
        y = conv_lrelu_bn(patches, p['w2d'], p['b'], p['gamma'], p['beta'], M)
        y = y[:M, :p['cout']]                       # drop row / lane padding
        x = y.reshape(N, OH, OW, p['cout']).astype(jnp.bfloat16)
    # PyTorch flatten(start_dim=1) on NCHW is matched by plain NHWC flatten here
    # because the fc weight rows were permuted to (h, w, c) order.
    xf = x.reshape(N, -1)
    # TODO(synk): nn.Dropout(p=0.1) is stochastic in train mode; treated as
    # eval-mode identity here.
    fc = params['fc0']
    Mp = _round_up(N, 16)
    xf = jnp.pad(xf, ((0, Mp - N), (0, fc['kdim_pad'] - fc['kdim'])))
    out = linear(xf, fc['w'], fc['b'])[:N, :fc['noutput']]
    if params['noutput'] == 1:
        out = jnp.squeeze(out)
    return out


if __name__ == "__main__":
    key = jax.random.PRNGKey(0)
    kx, kp = jax.random.split(key)

    N, depth, width = 2, 4, 16            # small shapes consistent with the module
    x = jax.random.normal(kx, (N, depth, width, width), jnp.float32)
    params = build_params(kp, depth, width)

    # Close over params so static ints (k, cout, pads) stay Python ints under jit.
    fwd = jax.jit(lambda xx: hcnn_forward(xx, params))
    out = jax.block_until_ready(fwd(x))
    assert out.shape == (N, 2), out.shape
    assert bool(jnp.all(jnp.isfinite(out)))
    print("KERNEL_OK")
</pallas_src>

<mosaic_0001>
module attributes {stable_mosaic.version = 11 : i64} {
  func.func @conv_lrelu_bn_kernel(%arg0: memref<256x256xbf16, #tpu.memory_space<vmem>>, %arg1: memref<256x128xbf16, #tpu.memory_space<vmem>>, %arg2: memref<1x128xf32, #tpu.memory_space<vmem>>, %arg3: memref<1x128xf32, #tpu.memory_space<vmem>>, %arg4: memref<1x128xf32, #tpu.memory_space<vmem>>, %arg5: memref<256x128xf32, #tpu.memory_space<vmem>>) attributes {dimension_semantics = [], scalar_prefetch = 0 : i64, scratch_operands = 0 : i64, tpu.core_type = #tpu.core_type<tc>} {
    %c0 = arith.constant 0 : index
    %c0_0 = arith.constant 0 : index
    %0 = vector.load %arg0[%c0, %c0_0] : memref<256x256xbf16, #tpu.memory_space<vmem>>, vector<256x256xbf16>
    %c0_1 = arith.constant 0 : index
    %c0_2 = arith.constant 0 : index
    %1 = vector.load %arg1[%c0_1, %c0_2] : memref<256x128xbf16, #tpu.memory_space<vmem>>, vector<256x128xbf16>
    %cst = arith.constant dense<0.000000e+00> : vector<256x128xf32>
    %2 = tpu.matmul %0, %1, %cst {dimension_numbers = #tpu.dot_dimension_numbers<[1], [0], [0], [1], [0, 0, 1, 1], [], []>} : vector<256x256xbf16>, vector<256x128xbf16>, vector<256x128xf32> -> vector<256x128xf32>
    %c0_3 = arith.constant 0 : index
    %c0_4 = arith.constant 0 : index
    %3 = vector.load %arg2[%c0_3, %c0_4] : memref<1x128xf32, #tpu.memory_space<vmem>>, vector<1x128xf32>
    %4 = vector.broadcast %3 : vector<1x128xf32> to vector<256x128xf32>
    %5 = arith.addf %2, %4 : vector<256x128xf32>
    %cst_5 = arith.constant 0.000000e+00 : f32
    %6 = vector.broadcast %cst_5 : f32 to vector<256x128xf32>
    %7 = arith.cmpf ogt, %5, %6 : vector<256x128xf32>
    %cst_6 = arith.constant 0.00999999977 : f32
    %8 = vector.broadcast %cst_6 : f32 to vector<256x128xf32>
    %9 = arith.mulf %8, %5 : vector<256x128xf32>
    %10 = arith.select %7, %5, %9 : vector<256x128xi1>, vector<256x128xf32>
    %11 = tpu.iota {dimensions = array<i32: 0>} : vector<256x1xi32>
    %c242_i32 = arith.constant 242 : i32
    %12 = vector.broadcast %c242_i32 : i32 to vector<256x1xi32>
    %13 = arith.cmpi slt, %11, %12 : vector<256x1xi32>
    %14 = arith.extui %13 : vector<256x1xi1> to vector<256x1xi32>
    %15 = arith.sitofp %14 : vector<256x1xi32> to vector<256x1xf32>
    %16 = vector.broadcast %15 : vector<256x1xf32> to vector<256x128xf32>
    %17 = arith.mulf %10, %16 : vector<256x128xf32>
    %cst_7 = arith.constant dense<0.000000e+00> : vector<128xf32>
    %18 = vector.multi_reduction <add>, %17, %cst_7 [0] : vector<256x128xf32> to vector<128xf32>
    %19 = vector.shape_cast %18 : vector<128xf32> to vector<1x128xf32>
    %20 = arith.mulf %17, %10 : vector<256x128xf32>
    %cst_8 = arith.constant dense<0.000000e+00> : vector<128xf32>
    %21 = vector.multi_reduction <add>, %20, %cst_8 [0] : vector<256x128xf32> to vector<128xf32>
    %22 = vector.shape_cast %21 : vector<128xf32> to vector<1x128xf32>
    %cst_9 = arith.constant 0.00413223123 : f32
    %23 = vector.broadcast %cst_9 : f32 to vector<1x128xf32>
    %24 = arith.mulf %19, %23 : vector<1x128xf32>
    %cst_10 = arith.constant 0.00413223123 : f32
    %25 = vector.broadcast %cst_10 : f32 to vector<1x128xf32>
    %26 = arith.mulf %22, %25 : vector<1x128xf32>
    %27 = arith.mulf %24, %24 : vector<1x128xf32>
    %28 = arith.subf %26, %27 : vector<1x128xf32>
    %cst_11 = arith.constant 0.000000e+00 : f32
    %29 = vector.broadcast %cst_11 : f32 to vector<1x128xf32>
    %30 = arith.maximumf %28, %29 : vector<1x128xf32>
    %c0_12 = arith.constant 0 : index
    %c0_13 = arith.constant 0 : index
    %31 = vector.load %arg3[%c0_12, %c0_13] : memref<1x128xf32, #tpu.memory_space<vmem>>, vector<1x128xf32>
    %cst_14 = arith.constant 9.99999974E-6 : f32
    %32 = vector.broadcast %cst_14 : f32 to vector<1x128xf32>
    %33 = arith.addf %30, %32 : vector<1x128xf32>
    %34 = math.rsqrt %33 : vector<1x128xf32>
    %35 = arith.mulf %31, %34 : vector<1x128xf32>
    %c0_15 = arith.constant 0 : index
    %c0_16 = arith.constant 0 : index
    %36 = vector.load %arg4[%c0_15, %c0_16] : memref<1x128xf32, #tpu.memory_space<vmem>>, vector<1x128xf32>
    %37 = arith.mulf %24, %35 : vector<1x128xf32>
    %38 = arith.subf %36, %37 : vector<1x128xf32>
    %39 = vector.broadcast %35 : vector<1x128xf32> to vector<256x128xf32>
    %40 = arith.mulf %10, %39 : vector<256x128xf32>
    %41 = vector.broadcast %38 : vector<1x128xf32> to vector<256x128xf32>
    %42 = arith.addf %40, %41 : vector<256x128xf32>
    %c0_17 = arith.constant 0 : index
    %c0_18 = arith.constant 0 : index
    %43 = vector.load %arg5[%c0_17, %c0_18] : memref<256x128xf32, #tpu.memory_space<vmem>>, vector<256x128xf32>
    tpu.vector_store %arg5[%c0_17, %c0_18], %42 {strides = array<i32>} : memref<256x128xf32, #tpu.memory_space<vmem>>, vector<256x128xf32>,
    return
  }
}

module attributes {stable_mosaic.version = 11 : i64} {
  func.func @conv_lrelu_bn_kernel(%arg0: memref<176x256xbf16, #tpu.memory_space<vmem>>, %arg1: memref<256x128xbf16, #tpu.memory_space<vmem>>, %arg2: memref<1x128xf32, #tpu.memory_space<vmem>>, %arg3: memref<1x128xf32, #tpu.memory_space<vmem>>, %arg4: memref<1x128xf32, #tpu.memory_space<vmem>>, %arg5: memref<176x128xf32, #tpu.memory_space<vmem>>) attributes {dimension_semantics = [], scalar_prefetch = 0 : i64, scratch_operands = 0 : i64, tpu.core_type = #tpu.core_type<tc>} {
    %c0 = arith.constant 0 : index
    %c0_0 = arith.constant 0 : index
    %0 = vector.load %arg0[%c0, %c0_0] : memref<176x256xbf16, #tpu.memory_space<vmem>>, vector<176x256xbf16>
    %c0_1 = arith.constant 0 : index
    %c0_2 = arith.constant 0 : index
    %1 = vector.load %arg1[%c0_1, %c0_2] : memref<256x128xbf16, #tpu.memory_space<vmem>>, vector<256x128xbf16>
    %cst = arith.constant dense<0.000000e+00> : vector<176x128xf32>
    %2 = tpu.matmul %0, %1, %cst {dimension_numbers = #tpu.dot_dimension_numbers<[1], [0], [0], [1], [0, 0, 1, 1], [], []>} : vector<176x256xbf16>, vector<256x128xbf16>, vector<176x128xf32> -> vector<176x128xf32>
    %c0_3 = arith.constant 0 : index
    %c0_4 = arith.constant 0 : index
    %3 = vector.load %arg2[%c0_3, %c0_4] : memref<1x128xf32, #tpu.memory_space<vmem>>, vector<1x128xf32>
    %4 = vector.broadcast %3 : vector<1x128xf32> to vector<176x128xf32>
    %5 = arith.addf %2, %4 : vector<176x128xf32>
    %cst_5 = arith.constant 0.000000e+00 : f32
    %6 = vector.broadcast %cst_5 : f32 to vector<176x128xf32>
    %7 = arith.cmpf ogt, %5, %6 : vector<176x128xf32>
    %cst_6 = arith.constant 0.00999999977 : f32
    %8 = vector.broadcast %cst_6 : f32 to vector<176x128xf32>
    %9 = arith.mulf %8, %5 : vector<176x128xf32>
    %10 = arith.select %7, %5, %9 : vector<176x128xi1>, vector<176x128xf32>
    %11 = tpu.iota {dimensions = array<i32: 0>} : vector<176x1xi32>
    %c162_i32 = arith.constant 162 : i32
    %12 = vector.broadcast %c162_i32 : i32 to vector<176x1xi32>
    %13 = arith.cmpi slt, %11, %12 : vector<176x1xi32>
    %14 = arith.extui %13 : vector<176x1xi1> to vector<176x1xi32>
    %15 = arith.sitofp %14 : vector<176x1xi32> to vector<176x1xf32>
    %16 = vector.broadcast %15 : vector<176x1xf32> to vector<176x128xf32>
    %17 = arith.mulf %10, %16 : vector<176x128xf32>
    %cst_7 = arith.constant dense<0.000000e+00> : vector<128xf32>
    %18 = vector.multi_reduction <add>, %17, %cst_7 [0] : vector<176x128xf32> to vector<128xf32>
    %19 = vector.shape_cast %18 : vector<128xf32> to vector<1x128xf32>
    %20 = arith.mulf %17, %10 : vector<176x128xf32>
    %cst_8 = arith.constant dense<0.000000e+00> : vector<128xf32>
    %21 = vector.multi_reduction <add>, %20, %cst_8 [0] : vector<176x128xf32> to vector<128xf32>
    %22 = vector.shape_cast %21 : vector<128xf32> to vector<1x128xf32>
    %cst_9 = arith.constant 0.00617283955 : f32
    %23 = vector.broadcast %cst_9 : f32 to vector<1x128xf32>
    %24 = arith.mulf %19, %23 : vector<1x128xf32>
    %cst_10 = arith.constant 0.00617283955 : f32
    %25 = vector.broadcast %cst_10 : f32 to vector<1x128xf32>
    %26 = arith.mulf %22, %25 : vector<1x128xf32>
    %27 = arith.mulf %24, %24 : vector<1x128xf32>
    %28 = arith.subf %26, %27 : vector<1x128xf32>
    %cst_11 = arith.constant 0.000000e+00 : f32
    %29 = vector.broadcast %cst_11 : f32 to vector<1x128xf32>
    %30 = arith.maximumf %28, %29 : vector<1x128xf32>
    %c0_12 = arith.constant 0 : index
    %c0_13 = arith.constant 0 : index
    %31 = vector.load %arg3[%c0_12, %c0_13] : memref<1x128xf32, #tpu.memory_space<vmem>>, vector<1x128xf32>
    %cst_14 = arith.constant 9.99999974E-6 : f32
    %32 = vector.broadcast %cst_14 : f32 to vector<1x128xf32>
    %33 = arith.addf %30, %32 : vector<1x128xf32>
    %34 = math.rsqrt %33 : vector<1x128xf32>
    %35 = arith.mulf %31, %34 : vector<1x128xf32>
    %c0_15 = arith.constant 0 : index
    %c0_16 = arith.constant 0 : index
    %36 = vector.load %arg4[%c0_15, %c0_16] : memref<1x128xf32, #tpu.memory_space<vmem>>, vector<1x128xf32>
    %37 = arith.mulf %24, %35 : vector<1x128xf32>
    %38 = arith.subf %36, %37 : vector<1x128xf32>
    %39 = vector.broadcast %35 : vector<1x128xf32> to vector<176x128xf32>
    %40 = arith.mulf %10, %39 : vector<176x128xf32>
    %41 = vector.broadcast %38 : vector<1x128xf32> to vector<176x128xf32>
    %42 = arith.addf %40, %41 : vector<176x128xf32>
    %c0_17 = arith.constant 0 : index
    %c0_18 = arith.constant 0 : index
    %43 = vector.load %arg5[%c0_17, %c0_18] : memref<176x128xf32, #tpu.memory_space<vmem>>, vector<176x128xf32>
    tpu.vector_store %arg5[%c0_17, %c0_18], %42 {strides = array<i32>} : memref<176x128xf32, #tpu.memory_space<vmem>>, vector<176x128xf32>,
    return
  }
}

module attributes {stable_mosaic.version = 11 : i64} {
  func.func @conv_lrelu_bn_kernel(%arg0: memref<128x256xbf16, #tpu.memory_space<vmem>>, %arg1: memref<256x128xbf16, #tpu.memory_space<vmem>>, %arg2: memref<1x128xf32, #tpu.memory_space<vmem>>, %arg3: memref<1x128xf32, #tpu.memory_space<vmem>>, %arg4: memref<1x128xf32, #tpu.memory_space<vmem>>, %arg5: memref<128x128xf32, #tpu.memory_space<vmem>>) attributes {dimension_semantics = [], scalar_prefetch = 0 : i64, scratch_operands = 0 : i64, tpu.core_type = #tpu.core_type<tc>} {
    %c0 = arith.constant 0 : index
    %c0_0 = arith.constant 0 : index
    %0 = vector.load %arg0[%c0, %c0_0] : memref<128x256xbf16, #tpu.memory_space<vmem>>, vector<128x256xbf16>
    %c0_1 = arith.constant 0 : index
    %c0_2 = arith.constant 0 : index
    %1 = vector.load %arg1[%c0_1, %c0_2] : memref<256x128xbf16, #tpu.memory_space<vmem>>, vector<256x128xbf16>
    %cst = arith.constant dense<0.000000e+00> : vector<128x128xf32>
    %2 = tpu.matmul %0, %1, %cst {dimension_numbers = #tpu.dot_dimension_numbers<[1], [0], [0], [1], [0, 0, 1, 1], [], []>} : vector<128x256xbf16>, vector<256x128xbf16>, vector<128x128xf32> -> vector<128x128xf32>
    %c0_3 = arith.constant 0 : index
    %c0_4 = arith.constant 0 : index
    %3 = vector.load %arg2[%c0_3, %c0_4] : memref<1x128xf32, #tpu.memory_space<vmem>>, vector<1x128xf32>
    %4 = vector.broadcast %3 : vector<1x128xf32> to vector<128x128xf32>
    %5 = arith.addf %2, %4 : vector<128x128xf32>
    %cst_5 = arith.constant 0.000000e+00 : f32
    %6 = vector.broadcast %cst_5 : f32 to vector<128x128xf32>
    %7 = arith.cmpf ogt, %5, %6 : vector<128x128xf32>
    %cst_6 = arith.constant 0.00999999977 : f32
    %8 = vector.broadcast %cst_6 : f32 to vector<128x128xf32>
    %9 = arith.mulf %8, %5 : vector<128x128xf32>
    %10 = arith.select %7, %5, %9 : vector<128x128xi1>, vector<128x128xf32>
    %11 = tpu.iota {dimensions = array<i32: 0>} : vector<128x1xi32>
    %c128_i32 = arith.constant 128 : i32
    %12 = vector.broadcast %c128_i32 : i32 to vector<128x1xi32>
    %13 = arith.cmpi slt, %11, %12 : vector<128x1xi32>
    %14 = arith.extui %13 : vector<128x1xi1> to vector<128x1xi32>
    %15 = arith.sitofp %14 : vector<128x1xi32> to vector<128x1xf32>
    %16 = vector.broadcast %15 : vector<128x1xf32> to vector<128x128xf32>
    %17 = arith.mulf %10, %16 : vector<128x128xf32>
    %cst_7 = arith.constant dense<0.000000e+00> : vector<128xf32>
    %18 = vector.multi_reduction <add>, %17, %cst_7 [0] : vector<128x128xf32> to vector<128xf32>
    %19 = vector.shape_cast %18 : vector<128xf32> to vector<1x128xf32>
    %20 = arith.mulf %17, %10 : vector<128x128xf32>
    %cst_8 = arith.constant dense<0.000000e+00> : vector<128xf32>
    %21 = vector.multi_reduction <add>, %20, %cst_8 [0] : vector<128x128xf32> to vector<128xf32>
    %22 = vector.shape_cast %21 : vector<128xf32> to vector<1x128xf32>
    %cst_9 = arith.constant 7.812500e-03 : f32
    %23 = vector.broadcast %cst_9 : f32 to vector<1x128xf32>
    %24 = arith.mulf %19, %23 : vector<1x128xf32>
    %cst_10 = arith.constant 7.812500e-03 : f32
    %25 = vector.broadcast %cst_10 : f32 to vector<1x128xf32>
    %26 = arith.mulf %22, %25 : vector<1x128xf32>
    %27 = arith.mulf %24, %24 : vector<1x128xf32>
    %28 = arith.subf %26, %27 : vector<1x128xf32>
    %cst_11 = arith.constant 0.000000e+00 : f32
    %29 = vector.broadcast %cst_11 : f32 to vector<1x128xf32>
    %30 = arith.maximumf %28, %29 : vector<1x128xf32>
    %c0_12 = arith.constant 0 : index
    %c0_13 = arith.constant 0 : index
    %31 = vector.load %arg3[%c0_12, %c0_13] : memref<1x128xf32, #tpu.memory_space<vmem>>, vector<1x128xf32>
    %cst_14 = arith.constant 9.99999974E-6 : f32
    %32 = vector.broadcast %cst_14 : f32 to vector<1x128xf32>
    %33 = arith.addf %30, %32 : vector<1x128xf32>
    %34 = math.rsqrt %33 : vector<1x128xf32>
    %35 = arith.mulf %31, %34 : vector<1x128xf32>
    %c0_15 = arith.constant 0 : index
    %c0_16 = arith.constant 0 : index
    %36 = vector.load %arg4[%c0_15, %c0_16] : memref<1x128xf32, #tpu.memory_space<vmem>>, vector<1x128xf32>
    %37 = arith.mulf %24, %35 : vector<1x128xf32>
    %38 = arith.subf %36, %37 : vector<1x128xf32>
    %39 = vector.broadcast %35 : vector<1x128xf32> to vector<128x128xf32>
    %40 = arith.mulf %10, %39 : vector<128x128xf32>
    %41 = vector.broadcast %38 : vector<1x128xf32> to vector<128x128xf32>
    %42 = arith.addf %40, %41 : vector<128x128xf32>
    %c0_17 = arith.constant 0 : index
    %c0_18 = arith.constant 0 : index
    %43 = vector.load %arg5[%c0_17, %c0_18] : memref<128x128xf32, #tpu.memory_space<vmem>>, vector<128x128xf32>
    tpu.vector_store %arg5[%c0_17, %c0_18], %42 {strides = array<i32>} : memref<128x128xf32, #tpu.memory_space<vmem>>, vector<128x128xf32>,
    return
  }
}

module attributes {stable_mosaic.version = 11 : i64} {
  func.func @conv_lrelu_bn_kernel(%arg0: memref<112x512xbf16, #tpu.memory_space<vmem>>, %arg1: memref<512x128xbf16, #tpu.memory_space<vmem>>, %arg2: memref<1x128xf32, #tpu.memory_space<vmem>>, %arg3: memref<1x128xf32, #tpu.memory_space<vmem>>, %arg4: memref<1x128xf32, #tpu.memory_space<vmem>>, %arg5: memref<112x128xf32, #tpu.memory_space<vmem>>) attributes {dimension_semantics = [], scalar_prefetch = 0 : i64, scratch_operands = 0 : i64, tpu.core_type = #tpu.core_type<tc>} {
    %c0 = arith.constant 0 : index
    %c0_0 = arith.constant 0 : index
    %0 = vector.load %arg0[%c0, %c0_0] : memref<112x512xbf16, #tpu.memory_space<vmem>>, vector<112x512xbf16>
    %c0_1 = arith.constant 0 : index
    %c0_2 = arith.constant 0 : index
    %1 = vector.load %arg1[%c0_1, %c0_2] : memref<512x128xbf16, #tpu.memory_space<vmem>>, vector<512x128xbf16>
    %cst = arith.constant dense<0.000000e+00> : vector<112x128xf32>
    %2 = tpu.matmul %0, %1, %cst {dimension_numbers = #tpu.dot_dimension_numbers<[1], [0], [0], [1], [0, 0, 1, 1], [], []>} : vector<112x512xbf16>, vector<512x128xbf16>, vector<112x128xf32> -> vector<112x128xf32>
    %c0_3 = arith.constant 0 : index
    %c0_4 = arith.constant 0 : index
    %3 = vector.load %arg2[%c0_3, %c0_4] : memref<1x128xf32, #tpu.memory_space<vmem>>, vector<1x128xf32>
    %4 = vector.broadcast %3 : vector<1x128xf32> to vector<112x128xf32>
    %5 = arith.addf %2, %4 : vector<112x128xf32>
    %cst_5 = arith.constant 0.000000e+00 : f32
    %6 = vector.broadcast %cst_5 : f32 to vector<112x128xf32>
    %7 = arith.cmpf ogt, %5, %6 : vector<112x128xf32>
    %cst_6 = arith.constant 0.00999999977 : f32
    %8 = vector.broadcast %cst_6 : f32 to vector<112x128xf32>
    %9 = arith.mulf %8, %5 : vector<112x128xf32>
    %10 = arith.select %7, %5, %9 : vector<112x128xi1>, vector<112x128xf32>
    %11 = tpu.iota {dimensions = array<i32: 0>} : vector<112x1xi32>
    %c98_i32 = arith.constant 98 : i32
    %12 = vector.broadcast %c98_i32 : i32 to vector<112x1xi32>
    %13 = arith.cmpi slt, %11, %12 : vector<112x1xi32>
    %14 = arith.extui %13 : vector<112x1xi1> to vector<112x1xi32>
    %15 = arith.sitofp %14 : vector<112x1xi32> to vector<112x1xf32>
    %16 = vector.broadcast %15 : vector<112x1xf32> to vector<112x128xf32>
    %17 = arith.mulf %10, %16 : vector<112x128xf32>
    %cst_7 = arith.constant dense<0.000000e+00> : vector<128xf32>
    %18 = vector.multi_reduction <add>, %17, %cst_7 [0] : vector<112x128xf32> to vector<128xf32>
    %19 = vector.shape_cast %18 : vector<128xf32> to vector<1x128xf32>
    %20 = arith.mulf %17, %10 : vector<112x128xf32>
    %cst_8 = arith.constant dense<0.000000e+00> : vector<128xf32>
    %21 = vector.multi_reduction <add>, %20, %cst_8 [0] : vector<112x128xf32> to vector<128xf32>
    %22 = vector.shape_cast %21 : vector<128xf32> to vector<1x128xf32>
    %cst_9 = arith.constant 0.0102040814 : f32
    %23 = vector.broadcast %cst_9 : f32 to vector<1x128xf32>
    %24 = arith.mulf %19, %23 : vector<1x128xf32>
    %cst_10 = arith.constant 0.0102040814 : f32
    %25 = vector.broadcast %cst_10 : f32 to vector<1x128xf32>
    %26 = arith.mulf %22, %25 : vector<1x128xf32>
    %27 = arith.mulf %24, %24 : vector<1x128xf32>
    %28 = arith.subf %26, %27 : vector<1x128xf32>
    %cst_11 = arith.constant 0.000000e+00 : f32
    %29 = vector.broadcast %cst_11 : f32 to vector<1x128xf32>
    %30 = arith.maximumf %28, %29 : vector<1x128xf32>
    %c0_12 = arith.constant 0 : index
    %c0_13 = arith.constant 0 : index
    %31 = vector.load %arg3[%c0_12, %c0_13] : memref<1x128xf32, #tpu.memory_space<vmem>>, vector<1x128xf32>
    %cst_14 = arith.constant 9.99999974E-6 : f32
    %32 = vector.broadcast %cst_14 : f32 to vector<1x128xf32>
    %33 = arith.addf %30, %32 : vector<1x128xf32>
    %34 = math.rsqrt %33 : vector<1x128xf32>
    %35 = arith.mulf %31, %34 : vector<1x128xf32>
    %c0_15 = arith.constant 0 : index
    %c0_16 = arith.constant 0 : index
    %36 = vector.load %arg4[%c0_15, %c0_16] : memref<1x128xf32, #tpu.memory_space<vmem>>, vector<1x128xf32>
    %37 = arith.mulf %24, %35 : vector<1x128xf32>
    %38 = arith.subf %36, %37 : vector<1x128xf32>
    %39 = vector.broadcast %35 : vector<1x128xf32> to vector<112x128xf32>
    %40 = arith.mulf %10, %39 : vector<112x128xf32>
    %41 = vector.broadcast %38 : vector<1x128xf32> to vector<112x128xf32>
    %42 = arith.addf %40, %41 : vector<112x128xf32>
    %c0_17 = arith.constant 0 : index
    %c0_18 = arith.constant 0 : index
    %43 = vector.load %arg5[%c0_17, %c0_18] : memref<112x128xf32, #tpu.memory_space<vmem>>, vector<112x128xf32>
    tpu.vector_store %arg5[%c0_17, %c0_18], %42 {strides = array<i32>} : memref<112x128xf32, #tpu.memory_space<vmem>>, vector<112x128xf32>,
    return
  }
}

module attributes {stable_mosaic.version = 11 : i64} {
  func.func @linear_kernel(%arg0: memref<16x3200xbf16, #tpu.memory_space<vmem>>, %arg1: memref<3200x128xbf16, #tpu.memory_space<vmem>>, %arg2: memref<1x128xf32, #tpu.memory_space<vmem>>, %arg3: memref<16x128xf32, #tpu.memory_space<vmem>>) attributes {dimension_semantics = [], scalar_prefetch = 0 : i64, scratch_operands = 0 : i64, tpu.core_type = #tpu.core_type<tc>} {
    %c0 = arith.constant 0 : index
    %c0_0 = arith.constant 0 : index
    %0 = vector.load %arg0[%c0, %c0_0] : memref<16x3200xbf16, #tpu.memory_space<vmem>>, vector<16x3200xbf16>
    %c0_1 = arith.constant 0 : index
    %c0_2 = arith.constant 0 : index
    %1 = vector.load %arg1[%c0_1, %c0_2] : memref<3200x128xbf16, #tpu.memory_space<vmem>>, vector<3200x128xbf16>
    %cst = arith.constant dense<0.000000e+00> : vector<16x128xf32>
    %2 = tpu.matmul %0, %1, %cst {dimension_numbers = #tpu.dot_dimension_numbers<[1], [0], [0], [1], [0, 0, 1, 1], [], []>} : vector<16x3200xbf16>, vector<3200x128xbf16>, vector<16x128xf32> -> vector<16x128xf32>
    %c0_3 = arith.constant 0 : index
    %c0_4 = arith.constant 0 : index
    %3 = vector.load %arg2[%c0_3, %c0_4] : memref<1x128xf32, #tpu.memory_space<vmem>>, vector<1x128xf32>
    %4 = vector.broadcast %3 : vector<1x128xf32> to vector<16x128xf32>
    %5 = arith.addf %2, %4 : vector<16x128xf32>
    %c0_5 = arith.constant 0 : index
    %c0_6 = arith.constant 0 : index
    %6 = vector.load %arg3[%c0_5, %c0_6] : memref<16x128xf32, #tpu.memory_space<vmem>>, vector<16x128xf32>
    tpu.vector_store %arg3[%c0_5, %c0_6], %5 {strides = array<i32>} : memref<16x128xf32, #tpu.memory_space<vmem>>, vector<16x128xf32>,
    return
  }
}

</mosaic_0001>

<bundles_post_ra>
// kernel: _lambda_.5
= control target key start
LH: loop header
LB: loop body
LE: loop exit
PB: predicated region body
PF: predicated region fallthrough
CT: control target
= control target key end

     0   :  { %s1799_s1 = inlined_call_operand.vmem [shape: bf16[256,128], index: 1, kind: input, shape index: {}]   ;;  %s1800_s0 = inlined_call_operand.vmem [shape: bf16[256,256], index: 0, kind: input, shape index: {}]   ;;  %s1801_s2 = inlined_call_operand.vmem [shape: f32[1,128], index: 2, kind: input, shape index: {}]   ;;  %s1802_s3 = inlined_call_operand.vmem [shape: f32[1,128], index: 3, kind: input, shape index: {}]   ;;  %s1803_s4 = inlined_call_operand.vmem [shape: f32[1,128], index: 4, kind: input, shape index: {}]   ;;  %s1804_s5 = inlined_call_operand.vmem [shape: f32[256,128], index: 5, kind: output, shape index: {}]  }
   0x1   :  { %v1175_v0 = vld [vmem:[%s1799_s1 + $0x40] sm:$0xff]   ;;  %v1177_v2 = vld [vmem:[%s1799_s1 + $0x48] sm:$0xff]   ;;  %v1179_v4 = vld [vmem:[%s1799_s1 + $0x50] sm:$0xff]  }
   0x2   :  { %v1176_v1 = vld [vmem:[%s1799_s1] sm:$0xff]   ;;  %1046 = vmatprep.subr.bf16.mxu0 %v1175_v0  ;;  %1158 = vmatprep.subr.bf16.mxu1 %v1175_v0  ;;  %v1178_v3 = vld [vmem:[%s1799_s1 + $0x8] sm:$0xff]   ;;  %v1180_v5 = vld [vmem:[%s1799_s1 + $0x10] sm:$0xff]  }
   0x3   :  { %1047 = vmatpush3.bf16.msra.mxu0 %v1176_v1  ;;  %1166 = vmatpush3.bf16.msra.mxu1 %v1176_v1  ;;  %v1181_v6 = vld [vmem:[%s1799_s1 + $0x58] sm:$0xff]   ;;  %v1183_v8 = vld [vmem:[%s1799_s1 + $0x60] sm:$0xff]   ;;  %v1185_v10 = vld [vmem:[%s1799_s1 + $0x68] sm:$0xff]  }
   0x4   :  { %1048 = vmatprep.subr.bf16.mxu0 %v1177_v2  ;;  %1159 = vmatprep.subr.bf16.mxu1 %v1177_v2  ;;  %v1182_v7 = vld [vmem:[%s1799_s1 + $0x18] sm:$0xff]   ;;  %v1184_v9 = vld [vmem:[%s1799_s1 + $0x20] sm:$0xff]   ;;  %v1186_v12 = vld [vmem:[%s1799_s1 + $0x28] sm:$0xff]  }
   0x5   :  { %v1193_v11 = vld [vmem:[%s1800_s0 + $0x4] ss:$8 sps:$4 sm:$0xff]   ;;  %v1187_v13 = vld [vmem:[%s1799_s1 + $0x70] sm:$0xff]   ;;  %v1189_v16 = vld [vmem:[%s1799_s1 + $0x78] sm:$0xff]  }
   0x6   :  { %380 = vmatprep.mubr.bf16.mxu0 %v1193_v11  ;;  %v1202_v14 = vld [vmem:[%s1800_s0 + $0x84] ss:$8 sps:$4 sm:$0xff]   ;;  %v1188_v15 = vld [vmem:[%s1799_s1 + $0x30] sm:$0xff]   ;;  %v1190_v17 = vld [vmem:[%s1799_s1 + $0x38] sm:$0xff]  }
   0x7   :  { %1049 = vmatpush3.bf16.msra.mxu0 %v1178_v3  ;;  %1167 = vmatpush3.bf16.msra.mxu1 %v1178_v3  ;;  %v1191_v18 = vld [vmem:[%s1800_s0] ss:$8 sps:$4 sm:$0xff]   ;;  %v1194_v19 = vld [vmem:[%s1800_s0 + $0x14] ss:$8 sps:$4 sm:$0xff]   ;;  %v1196_v22 = vld [vmem:[%s1800_s0 + $0x10] ss:$8 sps:$4 sm:$0xff]  }
   0x8   :  { %1050 = vmatprep.subr.bf16.mxu0 %v1179_v4  ;;  %1160 = vmatprep.subr.bf16.mxu1 %v1179_v4  ;;  %v1200_v20 = vld [vmem:[%s1800_s0 + $0x80] ss:$8 sps:$4 sm:$0xff]   ;;  %v1206_v21 = vld [vmem:[%s1800_s0 + $0x94] ss:$8 sps:$4 sm:$0xff]   ;;  %v1197_v23 = vld [vmem:[%s1800_s0 + $0x24] ss:$8 sps:$4 sm:$0xff]  }
   0x9   :  { %444 = vmatprep.mubr.bf16.mxu1 %v1202_v14  ;;  %v1210_v24 = vld [vmem:[%s1800_s0 + $0x90] ss:$8 sps:$4 sm:$0xff]   ;;  %v1212_v25 = vld [vmem:[%s1800_s0 + $0xa4] ss:$8 sps:$4 sm:$0xff]   ;;  %v1199_v26 = vld [vmem:[%s1800_s0 + $0x20] ss:$8 sps:$4 sm:$0xff]  }
   0xa   :  { %v1203_v27 = vld [vmem:[%s1800_s0 + $0x34] ss:$8 sps:$4 sm:$0xff]   ;;  %v1216_v28 = vld [vmem:[%s1800_s0 + $0xa0] ss:$8 sps:$4 sm:$0xff]   ;;  %v1205_v30 = vld [vmem:[%s1800_s0 + $0x30] ss:$8 sps:$4 sm:$0xff]  }
   0xb   :  { %1051 = vmatpush3.bf16.msra.mxu0 %v1180_v5  ;;  %1168 = vmatpush3.bf16.msra.mxu1 %v1180_v5  ;;  %v1218_v29 = vld [vmem:[%s1800_s0 + $0xb4] ss:$8 sps:$4 sm:$0xff]   ;;  %v1208_v31 = vld [vmem:[%s1800_s0 + $0x44] ss:$8 sps:$4 sm:$0xff]   ;;  %v1222_v32 = vld [vmem:[%s1800_s0 + $0xb0] ss:$8 sps:$4 sm:$0xff]  }
   0xc   :  { %1052 = vmatprep.subr.bf16.mxu0 %v1181_v6  ;;  %1161 = vmatprep.subr.bf16.mxu1 %v1181_v6  ;;  %v1224_v33 = vld [vmem:[%s1800_s0 + $0xc4] ss:$8 sps:$4 sm:$0xff]   ;;  %v1211_v34 = vld [vmem:[%s1800_s0 + $0x40] ss:$8 sps:$4 sm:$0xff]   ;;  %v1214_v35 = vld [vmem:[%s1800_s0 + $0x54] ss:$8 sps:$4 sm:$0xff]  }
   0xd   :  { %v1228_v36 = vld [vmem:[%s1800_s0 + $0xc0] ss:$8 sps:$4 sm:$0xff]   ;;  %v1230_v37 = vld [vmem:[%s1800_s0 + $0xd4] ss:$8 sps:$4 sm:$0xff]   ;;  %v1217_v38 = vld [vmem:[%s1800_s0 + $0x50] ss:$8 sps:$4 sm:$0xff]  }
   0xe   :  { %v1220_v39 = vld [vmem:[%s1800_s0 + $0x64] ss:$8 sps:$4 sm:$0xff]   ;;  %v1232_v40 = vld [vmem:[%s1800_s0 + $0xd0] ss:$8 sps:$4 sm:$0xff]   ;;  %v1223_v42 = vld [vmem:[%s1800_s0 + $0x60] ss:$8 sps:$4 sm:$0xff]  }
   0xf   :  { %1053 = vmatpush3.bf16.msra.mxu0 %v1182_v7  ;;  %1169 = vmatpush3.bf16.msra.mxu1 %v1182_v7  ;;  %v1233_v41 = vld [vmem:[%s1800_s0 + $0xe4] ss:$8 sps:$4 sm:$0xff]   ;;  %v1226_v43 = vld [vmem:[%s1800_s0 + $0x74] ss:$8 sps:$4 sm:$0xff]   ;;  %v1235_v44 = vld [vmem:[%s1800_s0 + $0xe0] ss:$8 sps:$4 sm:$0xff]  }
  0x10   :  { %1054 = vmatprep.subr.bf16.mxu0 %v1183_v8  ;;  %1162 = vmatprep.subr.bf16.mxu1 %v1183_v8  ;;  %v1236_v45 = vld [vmem:[%s1800_s0 + $0xf4] ss:$8 sps:$4 sm:$0xff]   ;;  %v1229_v46 = vld [vmem:[%s1800_s0 + $0x70] ss:$8 sps:$4 sm:$0xff]   ;;  %v1425_v5 = vld [vmem:[%s1801_s2] ss:$0 sm:$0xff] }
  0x11   :  { %v1238_v47 = vld [vmem:[%s1800_s0 + $0xf0] ss:$8 sps:$4 sm:$0xff]  }
  0x13   :  { %1055 = vmatpush3.bf16.msra.mxu0 %v1184_v9  ;;  %1170 = vmatpush3.bf16.msra.mxu1 %v1184_v9 }
  0x14   :  { %1056 = vmatprep.subr.bf16.mxu0 %v1185_v10  ;;  %1163 = vmatprep.subr.bf16.mxu1 %v1185_v10 }
  0x17   :  { %1057 = vmatpush3.bf16.msra.mxu0 %v1186_v12  ;;  %1171 = vmatpush3.bf16.msra.mxu1 %v1186_v12 }
  0x18   :  { %1058 = vmatprep.subr.bf16.mxu0 %v1187_v13  ;;  %1164 = vmatprep.subr.bf16.mxu1 %v1187_v13 }
  0x1b   :  { %1059 = vmatpush3.bf16.msra.mxu0 %v1188_v15  ;;  %1172 = vmatpush3.bf16.msra.mxu1 %v1188_v15 }
  0x1c   :  { %1060 = vmatprep.subr.bf16.mxu0 %v1189_v16  ;;  %1165 = vmatprep.subr.bf16.mxu1 %v1189_v16 }
  0x1f   :  { %1061 = vmatpush3.bf16.msra.mxu0 %v1190_v17  ;;  %1173 = vmatpush3.bf16.msra.mxu1 %v1190_v17 }
  0x22   :  { %381 = vmatmul.mubr.bf16.vlgmr.msra.gmra.mrb[0].mxu0 %v1191_v18  ;;  %445 = vmatmul.mubr.bf16.vlgmr.msra.gmra.mrb[0].mxu1 %v1200_v20 }
  0x23   :  { %388 = vmatprep.mubr.bf16.mxu0 %v1194_v19  ;;  %452 = vmatprep.mubr.bf16.mxu1 %v1206_v21 }
  0x2a   :  { %389 = vmatmul.mubr.bf16.gmra.mrb[4].mxu0 %v1196_v22  ;;  %453 = vmatmul.mubr.bf16.gmra.mrb[4].mxu1 %v1210_v24 }
  0x2b   :  { %396 = vmatprep.mubr.bf16.mxu0 %v1197_v23  ;;  %460 = vmatprep.mubr.bf16.mxu1 %v1212_v25 }
  0x32   :  { %397 = vmatmul.mubr.bf16.gmra.mrb[8].mxu0 %v1199_v26  ;;  %461 = vmatmul.mubr.bf16.gmra.mrb[8].mxu1 %v1216_v28 }
  0x33   :  { %404 = vmatprep.mubr.bf16.mxu0 %v1203_v27  ;;  %468 = vmatprep.mubr.bf16.mxu1 %v1218_v29 }
  0x3a   :  { %405 = vmatmul.mubr.bf16.gmra.mrb[12].mxu0 %v1205_v30  ;;  %469 = vmatmul.mubr.bf16.gmra.mrb[12].mxu1 %v1222_v32 }
  0x3b   :  { %412 = vmatprep.mubr.bf16.mxu0 %v1208_v31  ;;  %476 = vmatprep.mubr.bf16.mxu1 %v1224_v33 }
  0x42   :  { %413 = vmatmul.mubr.bf16.gmra.mrb[16].mxu0 %v1211_v34  ;;  %477 = vmatmul.mubr.bf16.gmra.mrb[16].mxu1 %v1228_v36 }
  0x43   :  { %420 = vmatprep.mubr.bf16.mxu0 %v1214_v35  ;;  %484 = vmatprep.mubr.bf16.mxu1 %v1230_v37 }
  0x4a   :  { %421 = vmatmul.mubr.bf16.gmra.mrb[20].mxu0 %v1217_v38  ;;  %485 = vmatmul.mubr.bf16.gmra.mrb[20].mxu1 %v1232_v40 }
  0x4b   :  { %428 = vmatprep.mubr.bf16.mxu0 %v1220_v39  ;;  %492 = vmatprep.mubr.bf16.mxu1 %v1233_v41 }
  0x52   :  { %429 = vmatmul.mubr.bf16.gmra.mrb[24].mxu0 %v1223_v42  ;;  %493 = vmatmul.mubr.bf16.gmra.mrb[24].mxu1 %v1235_v44 }
  0x53   :  { %436 = vmatprep.mubr.bf16.mxu0 %v1226_v43  ;;  %500 = vmatprep.mubr.bf16.mxu1 %v1236_v45 }
  0x5a   :  { %437 = vmatmul.mubr.bf16.gmra.mrb[28].mxu0 %v1229_v46  ;;  %501 = vmatmul.mubr.bf16.gmra.mrb[28].mxu1 %v1238_v47 }
  0xf5   :  { %v1062_v48 = vpop.f32.mrb[0].mxu0  ;;  %v1110_v50 = vpop.f32.mrb[0].mxu1 }
  0xf6   :  { %v1063_v49 = vpop.f32.mrb[1].mxu0  ;;  %v1111_v53 = vpop.f32.mrb[1].mxu1 }
  0xf7   :  { %v1064_v51 = vadd.f32 %v1063_v49, %v1062_v48  ;;  %v1065_v52 = vpop.f32.mrb[2].mxu0  ;;  %v1416_v55 = vadd.f32 %v1111_v53, %v1110_v50  ;;  %v1113_v56 = vpop.f32.mrb[2].mxu1 }
  0xf8   :  { %v1066_v54 = vpop.f32.mrb[3].mxu0  ;;  %v1114_v58 = vpop.f32.mrb[3].mxu1 }
  0xf9   :  { %v1067_v57 = vadd.f32 %v1066_v54, %v1065_v52  ;;  %v1418_v59 = vadd.f32 %v1114_v58, %v1113_v56  ;;  %v383_v10 = vadd.f32 %v1064_v51, %v1425_v5 }
  0xfb   :  { %v386_v9 = vadd.f32 %v1067_v57, %v1425_v5  ;;  %v541_v19 = vmul.f32 0.01, %v383_v10  ;;  %vm509_vm1 = vcmp.gt.f32.partialorder %v383_v10, 0.0 }
  0xfd   :  { %v1068_v60 = vpop.f32.mrb[4].mxu0  ;;  %v1116_v62 = vpop.f32.mrb[4].mxu1  ;;  %v542_v15 = vmul.f32 0.01, %v386_v9  ;;  %vm510_vm0 = vcmp.gt.f32.partialorder %v386_v9, 0.0  ;;  %v1440_v30 = vsel %vm509_vm1, %v383_v10, %v541_v19 }
  0xfe   :  { %v1069_v61 = vpop.f32.mrb[5].mxu0  ;;  %v1117_v1 = vpop.f32.mrb[5].mxu1  ;;  %v803_v37 = vmul.f32 %v1440_v30, %v1440_v30 }
  0xff   :  { %v1070_v63 = vadd.f32 %v1069_v61, %v1068_v60  ;;  %v1071_v0 = vpop.f32.mrb[6].mxu0  ;;  %v1420_v3 = vadd.f32 %v1117_v1, %v1116_v62  ;;  %v1119_v4 = vpop.f32.mrb[6].mxu1  ;;  %v1437_v28 = vsel %vm510_vm0, %v386_v9, %v542_v15 }
 0x100   :  { %v1072_v2 = vpop.f32.mrb[7].mxu0  ;;  %v1120_v7 = vpop.f32.mrb[7].mxu1  ;;  %v804_v34 = vmul.f32 %v1437_v28, %v1437_v28  ;;  %v766_v43 = vadd.f32 %v1437_v28, %v1440_v30 }
 0x101   :  { %v1073_v6 = vadd.f32 %v1072_v2, %v1071_v0  ;;  %v1427_v8 = vadd.f32 %v1120_v7, %v1119_v4  ;;  %v391_v11 = vadd.f32 %v1070_v63, %v1425_v5 }
 0x102   :  { %v835_v52 = vadd.f32 %v804_v34, %v803_v37 }
 0x103   :  { %v543_v23 = vmul.f32 0.01, %v391_v11  ;;  %v394_v24 = vadd.f32 %v1073_v6, %v1425_v5  ;;  %vm511_vm2 = vcmp.gt.f32.partialorder %v391_v11, 0.0 }
 0x105   :  { %v1074_v12 = vpop.f32.mrb[8].mxu0  ;;  %v1122_v14 = vpop.f32.mrb[8].mxu1  ;;  %v1442_v31 = vsel %vm511_vm2, %v391_v11, %v543_v23  ;;  %v544_v32 = vmul.f32 0.01, %v394_v24  ;;  %vm512_vm3 = vcmp.gt.f32.partialorder %v394_v24, 0.0 }
 0x106   :  { %v1075_v13 = vpop.f32.mrb[9].mxu0  ;;  %v1123_v18 = vpop.f32.mrb[9].mxu1  ;;  %v805_v44 = vmul.f32 %v1442_v31, %v1442_v31  ;;  %v767_v53 = vadd.f32 %v766_v43, %v1442_v31 }
 0x107   :  { %v1076_v16 = vadd.f32 %v1075_v13, %v1074_v12  ;;  %v1077_v17 = vpop.f32.mrb[10].mxu0  ;;  %v1432_v21 = vadd.f32 %v1123_v18, %v1122_v14  ;;  %v1125_v22 = vpop.f32.mrb[10].mxu1  ;;  %v1455_v48 = vsel %vm512_vm3, %v394_v24, %v544_v32 }
 0x108   :  { %v1078_v20 = vpop.f32.mrb[11].mxu0  ;;  %v1126_v26 = vpop.f32.mrb[11].mxu1  ;;  %v836_v58 = vadd.f32 %v835_v52, %v805_v44  ;;  %v806_v60 = vmul.f32 %v1455_v48, %v1455_v48  ;;  %v768_v0 = vadd.f32 %v767_v53, %v1455_v48 }
 0x109   :  { %v1079_v25 = vadd.f32 %v1078_v20, %v1077_v17  ;;  %v1435_v27 = vadd.f32 %v1126_v26, %v1125_v22  ;;  %v399_v29 = vadd.f32 %v1076_v16, %v1425_v5 }
 0x10a   :  { %v837_v11 = vadd.f32 %v836_v58, %v806_v60 }
 0x10b   :  { %v545_v38 = vmul.f32 0.01, %v399_v29  ;;  %v402_v39 = vadd.f32 %v1079_v25, %v1425_v5  ;;  %vm513_vm4 = vcmp.gt.f32.partialorder %v399_v29, 0.0 }
 0x10d   :  { %v1080_v33 = vpop.f32.mrb[12].mxu0  ;;  %v1128_v36 = vpop.f32.mrb[12].mxu1  ;;  %v1461_v56 = vsel %vm513_vm4, %v399_v29, %v545_v38  ;;  %v546_v57 = vmul.f32 0.01, %v402_v39  ;;  %vm514_vm5 = vcmp.gt.f32.partialorder %v402_v39, 0.0 }
 0x10e   :  { %v1081_v35 = vpop.f32.mrb[13].mxu0  ;;  %v1129_v42 = vpop.f32.mrb[13].mxu1  ;;  %v807_v1 = vmul.f32 %v1461_v56, %v1461_v56  ;;  %v769_v12 = vadd.f32 %v768_v0, %v1461_v56 }
 0x10f   :  { %v1082_v40 = vadd.f32 %v1081_v35, %v1080_v33  ;;  %v1083_v41 = vpop.f32.mrb[14].mxu0  ;;  %v1453_v46 = vadd.f32 %v1129_v42, %v1128_v36  ;;  %v1131_v47 = vpop.f32.mrb[14].mxu1  ;;  %v1469_v6 = vsel %vm514_vm5, %v402_v39, %v546_v57 }
 0x110   :  { %v1084_v45 = vpop.f32.mrb[15].mxu0  ;;  %v1132_v51 = vpop.f32.mrb[15].mxu1  ;;  %v838_v22 = vadd.f32 %v837_v11, %v807_v1  ;;  %v808_v23 = vmul.f32 %v1469_v6, %v1469_v6  ;;  %v770_v29 = vadd.f32 %v769_v12, %v1469_v6 }
 0x111   :  { %v407_v49 = vadd.f32 %v1082_v40, %v1425_v5  ;;  %v1085_v50 = vadd.f32 %v1084_v45, %v1083_v41  ;;  %v1459_v54 = vadd.f32 %v1132_v51, %v1131_v47 }
 0x112   :  { %v839_v35 = vadd.f32 %v838_v22, %v808_v23 }
 0x113   :  { %v547_v61 = vmul.f32 0.01, %v407_v49  ;;  %v410_v62 = vadd.f32 %v1085_v50, %v1425_v5  ;;  %vm515_vm6 = vcmp.gt.f32.partialorder %v407_v49, 0.0 }
 0x115   :  { %v1086_v63 = vpop.f32.mrb[16].mxu0  ;;  %v1134_v4 = vpop.f32.mrb[16].mxu1  ;;  %v1474_v16 = vsel %vm515_vm6, %v407_v49, %v547_v61  ;;  %v548_v17 = vmul.f32 0.01, %v410_v62  ;;  %vm516_vm7 = vcmp.gt.f32.partialorder %v410_v62, 0.0 }
 0x116   :  { %v1087_v2 = vpop.f32.mrb[17].mxu0  ;;  %v1135_v10 = vpop.f32.mrb[17].mxu1  ;;  %v809_v32 = vmul.f32 %v1474_v16, %v1474_v16  ;;  %v771_v36 = vadd.f32 %v770_v29, %v1474_v16 }
 0x117   :  { %v1088_v7 = vadd.f32 %v1087_v2, %v1086_v63  ;;  %v1089_v9 = vpop.f32.mrb[18].mxu0  ;;  %v1472_v14 = vadd.f32 %v1135_v10, %v1134_v4  ;;  %v1137_v15 = vpop.f32.mrb[18].mxu1  ;;  %v1485_v33 = vsel %vm516_vm7, %v410_v62, %v548_v17 }
 0x118   :  { %v1090_v13 = vpop.f32.mrb[19].mxu0  ;;  %v1138_v20 = vpop.f32.mrb[19].mxu1  ;;  %v840_v44 = vadd.f32 %v839_v35, %v809_v32  ;;  %v810_v45 = vmul.f32 %v1485_v33, %v1485_v33  ;;  %v772_v57 = vadd.f32 %v771_v36, %v1485_v33 }
 0x119   :  { %v415_v18 = vadd.f32 %v1088_v7, %v1425_v5  ;;  %v1091_v19 = vadd.f32 %v1090_v13, %v1089_v9  ;;  %v1479_v24 = vadd.f32 %v1138_v20, %v1137_v15 }
 0x11a   :  { %v841_v0 = vadd.f32 %v840_v44, %v810_v45 }
 0x11b   :  { %v549_v25 = vmul.f32 0.01, %v415_v18  ;;  %v418_v26 = vadd.f32 %v1091_v19, %v1425_v5  ;;  %vm517_vm8 = vcmp.gt.f32.partialorder %v415_v18, 0.0 }
 0x11d   :  { %v1092_v34 = vpop.f32.mrb[20].mxu0  ;;  %v1140_v38 = vpop.f32.mrb[20].mxu1  ;;  %v1488_v39 = vsel %vm517_vm8, %v415_v18, %v549_v25  ;;  %v550_v40 = vmul.f32 0.01, %v418_v26  ;;  %vm518_vm9 = vcmp.gt.f32.partialorder %v418_v26, 0.0 }
 0x11e   :  { %v1093_v37 = vpop.f32.mrb[21].mxu0  ;;  %v1141_v43 = vpop.f32.mrb[21].mxu1  ;;  %v811_v58 = vmul.f32 %v1488_v39, %v1488_v39  ;;  %v773_v1 = vadd.f32 %v772_v57, %v1488_v39 }
 0x11f   :  { %v1094_v41 = vadd.f32 %v1093_v37, %v1092_v34  ;;  %v1095_v42 = vpop.f32.mrb[22].mxu0  ;;  %v1492_v49 = vadd.f32 %v1141_v43, %v1140_v38  ;;  %v1143_v50 = vpop.f32.mrb[22].mxu1  ;;  %v1500_v61 = vsel %vm518_vm9, %v418_v26, %v550_v40  ;;  %v447_v40 = vadd.f32 %v1416_v55, %v1425_v5 }
 0x120   :  { %v1096_v47 = vpop.f32.mrb[23].mxu0  ;;  %v1144_v53 = vpop.f32.mrb[23].mxu1  ;;  %v842_v9 = vadd.f32 %v841_v0, %v811_v58  ;;  %v812_v10 = vmul.f32 %v1500_v61, %v1500_v61  ;;  %v774_v18 = vadd.f32 %v773_v1, %v1500_v61  ;;  %v450_v43 = vadd.f32 %v1418_v59, %v1425_v5 }
 0x121   :  { %v423_v51 = vadd.f32 %v1094_v41, %v1425_v5  ;;  %v1097_v52 = vadd.f32 %v1096_v47, %v1095_v42  ;;  %v1498_v60 = vadd.f32 %v1144_v53, %v1143_v50  ;;  %v455_v50 = vadd.f32 %v1420_v3, %v1425_v5 }
 0x122   :  { %v843_v34 = vadd.f32 %v842_v9, %v812_v10  ;;  %vm525_vm14 = vcmp.gt.f32.partialorder %v447_v40, 0.0  ;;  %v558_v9 = vmul.f32 0.01, %v450_v43  ;;  %vm526_vm0 = vcmp.gt.f32.partialorder %v450_v43, 0.0 }
 0x123   :  { %vm519_vm10 = vcmp.gt.f32.partialorder %v423_v51, 0.0  ;;  %v551_v62 = vmul.f32 0.01, %v423_v51  ;;  %v426_v63 = vadd.f32 %v1097_v52, %v1425_v5  ;;  %vm527_vm1 = vcmp.gt.f32.partialorder %v455_v50, 0.0 }
 0x125   :  { %v1504_v2 = vsel %vm519_vm10, %v423_v51, %v551_v62  ;;  %v552_v4 = vmul.f32 0.01, %v426_v63  ;;  %v1098_v7 = vpop.f32.mrb[24].mxu0  ;;  %vm520_vm11 = vcmp.gt.f32.partialorder %v426_v63, 0.0  ;;  %v1146_v12 = vpop.f32.mrb[24].mxu1 }
 0x126   :  { %v1099_v11 = vpop.f32.mrb[25].mxu0  ;;  %v1147_v17 = vpop.f32.mrb[25].mxu1  ;;  %v813_v19 = vmul.f32 %v1504_v2, %v1504_v2  ;;  %v775_v35 = vadd.f32 %v774_v18, %v1504_v2 }
 0x127   :  { %v1100_v13 = vadd.f32 %v1099_v11, %v1098_v7  ;;  %v1101_v15 = vpop.f32.mrb[26].mxu0  ;;  %v1511_v22 = vadd.f32 %v1147_v17, %v1146_v12  ;;  %v1149_v23 = vpop.f32.mrb[26].mxu1  ;;  %v1513_v25 = vsel %vm520_vm11, %v426_v63, %v552_v4  ;;  %v557_v7 = vmul.f32 0.01, %v447_v40 }
 0x128   :  { %v1102_v20 = vpop.f32.mrb[27].mxu0  ;;  %v1150_v32 = vpop.f32.mrb[27].mxu1  ;;  %v844_v41 = vadd.f32 %v843_v34, %v813_v19  ;;  %v814_v42 = vmul.f32 %v1513_v25, %v1513_v25  ;;  %v776_v51 = vadd.f32 %v775_v35, %v1513_v25  ;;  %v458_v19 = vadd.f32 %v1427_v8, %v1425_v5 }
 0x129   :  { %v431_v26 = vadd.f32 %v1100_v13, %v1425_v5  ;;  %v1103_v29 = vadd.f32 %v1102_v20, %v1101_v15  ;;  %v1517_v36 = vadd.f32 %v1150_v32, %v1149_v23  ;;  %v559_v13 = vmul.f32 0.01, %v455_v50 }
 0x12a   :  { %v845_v63 = vadd.f32 %v844_v41, %v814_v42  ;;  %v1552_v35 = vsel %vm525_vm14, %v447_v40, %v557_v7  ;;  %v1557_v41 = vsel %vm526_vm0, %v450_v43, %v558_v9  ;;  %vm528_vm3 = vcmp.gt.f32.partialorder %v458_v19, 0.0 }
 0x12b   :  { %vm521_vm12 = vcmp.gt.f32.partialorder %v431_v26, 0.0  ;;  %v553_v37 = vmul.f32 0.01, %v431_v26  ;;  %v434_v38 = vadd.f32 %v1103_v29, %v1425_v5  ;;  %v1559_v42 = vsel %vm527_vm1, %v455_v50, %v559_v13 }
 0x12c   :  { %v471_v43 = vadd.f32 %v1453_v46, %v1425_v5  ;;  %v819_v50 = vmul.f32 %v1552_v35, %v1552_v35  ;;  %v474_v9 = vadd.f32 %v1459_v54, %v1425_v5  ;;  %v482_v54 = vadd.f32 %v1479_v24, %v1425_v5 }
 0x12d   :  { %v1526_v44 = vsel %vm521_vm12, %v431_v26, %v553_v37  ;;  %vm522_vm13 = vcmp.gt.f32.partialorder %v434_v38, 0.0  ;;  %v554_v45 = vmul.f32 0.01, %v434_v38  ;;  %v1104_v47 = vpop.f32.mrb[28].mxu0  ;;  %v1152_v53 = vpop.f32.mrb[28].mxu1  ;;  %v463_v26 = vadd.f32 %v1432_v21, %v1425_v5 }
 0x12e   :  { %v815_v55 = vmul.f32 %v1526_v44, %v1526_v44  ;;  %v1105_v52 = vpop.f32.mrb[29].mxu0  ;;  %v1153_v59 = vpop.f32.mrb[29].mxu1  ;;  %v777_v0 = vadd.f32 %v776_v51, %v1526_v44  ;;  %v560_v21 = vmul.f32 0.01, %v458_v19  ;;  %v563_v7 = vmul.f32 0.01, %v471_v43 }
 0x12f   :  { %v1533_v57 = vsel %vm522_vm13, %v434_v38, %v554_v45  ;;  %v1106_v58 = vadd.f32 %v1105_v52, %v1104_v47  ;;  %v1107_v62 = vpop.f32.mrb[30].mxu0  ;;  %v1536_v4 = vadd.f32 %v1153_v59, %v1152_v53  ;;  %v1155_v3 = vpop.f32.mrb[30].mxu1  ;;  %v561_v47 = vmul.f32 0.01, %v463_v26 }
 0x130   :  { %v1108_v1 = vpop.f32.mrb[31].mxu0  ;;  %v1156_v12 = vpop.f32.mrb[31].mxu1  ;;  %v846_v15 = vadd.f32 %v845_v63, %v815_v55  ;;  %v816_v17 = vmul.f32 %v1533_v57, %v1533_v57  ;;  %v778_v29 = vadd.f32 %v777_v0, %v1533_v57  ;;  %vm529_vm4 = vcmp.gt.f32.partialorder %v463_v26, 0.0 }
 0x131   :  { %v439_v10 = vadd.f32 %v1106_v58, %v1425_v5  ;;  %v1109_v11 = vadd.f32 %v1108_v1, %v1107_v62  ;;  %v1541_v18 = vadd.f32 %v1156_v12, %v1155_v3  ;;  %v466_v52 = vadd.f32 %v1435_v27, %v1425_v5 }
 0x132   :  { %v847_v37 = vadd.f32 %v846_v15, %v816_v17  ;;  %v820_v62 = vmul.f32 %v1557_v41, %v1557_v41  ;;  %v821_v59 = vmul.f32 %v1559_v42, %v1559_v42  ;;  %v605_v63 = vlaneseq }
 0x133   :  { %vm523_vm15 = vcmp.gt.f32.partialorder %v439_v10, 0.0  ;;  %v555_v20 = vmul.f32 0.01, %v439_v10  ;;  %v442_v23 = vadd.f32 %v1109_v11, %v1425_v5  ;;  %v1577_v0 = vsel %vm528_vm3, %v458_v19, %v560_v21 }
 0x134   :  { %v1579_v1 = vsel %vm529_vm4, %v463_v26, %v561_v47  ;;  %vm530_vm5 = vcmp.gt.f32.partialorder %v466_v52, 0.0  ;;  %v562_v3 = vmul.f32 0.01, %v466_v52  ;;  %vm531_vm6 = vcmp.gt.f32.partialorder %v471_v43, 0.0 }
 0x135   :  { %v1549_v32 = vsel %vm523_vm15, %v439_v10, %v555_v20  ;;  %vm524_vm2 = vcmp.gt.f32.partialorder %v442_v23, 0.0  ;;  %v556_v34 = vmul.f32 0.01, %v442_v23  ;;  %v479_v10 = vadd.f32 %v1472_v14, %v1425_v5 }
 0x136   :  { %v779_v8 = vadd.f32 %v778_v29, %v1549_v32  ;;  %v817_v38 = vmul.f32 %v1549_v32, %v1549_v32  ;;  %v822_v13 = vmul.f32 %v1577_v0, %v1577_v0  ;;  %v1589_v15 = vshrl.u32 %v605_v63, 7 }
 0x137   :  { %v1561_v45 = vsel %vm524_vm2, %v442_v23, %v556_v34  ;;  %v823_v17 = vmul.f32 %v1579_v1, %v1579_v1  ;;  %v1596_v23 = vsel %vm530_vm5, %v466_v52, %v562_v3  ;;  %v1598_v14 = vsel %vm531_vm6, %v471_v43, %v563_v7 }
 0x138   :  { %v848_v51 = vadd.f32 %v847_v37, %v817_v38  ;;  %v780_v55 = vadd.f32 %v779_v8, %v1561_v45  ;;  %v818_v40 = vmul.f32 %v1561_v45, %v1561_v45  ;;  %vm532_vm7 = vcmp.gt.f32.partialorder %v474_v9, 0.0 }
 0x139   :  { %v564_v26 = vmul.f32 0.01, %v474_v9  ;;  %v565_v29 = vmul.f32 0.01, %v479_v10  ;;  %v487_v8 = vadd.f32 %v1492_v49, %v1425_v5  ;;  %vm533_vm8 = vcmp.gt.f32.partialorder %v479_v10, 0.0 }
 0x13a   :  { %v781_v53 = vadd.f32 %v780_v55, %v1552_v35  ;;  %v849_v58 = vadd.f32 %v848_v51, %v818_v40  ;;  %v636_v38 = vadd.s32 240, %v1589_v15  ;;  %v824_v21 = vmul.f32 %v1596_v23, %v1596_v23 }
 0x13b   :  { %v566_v24 = vmul.f32 0.01, %v482_v54  ;;  %v825_v55 = vmul.f32 %v1598_v14, %v1598_v14  ;;  %v1609_v40 = vsel %vm532_vm7, %v474_v9, %v564_v26  ;;  %vm534_vm9 = vcmp.gt.f32.partialorder %v482_v54, 0.0 }
 0x13c   :  { %v782_v27 = vadd.f32 %v781_v53, %v1557_v41  ;;  %v850_v46 = vadd.f32 %v849_v58, %v819_v50  ;;  %v490_v52 = vadd.f32 %v1498_v60, %v1425_v5  ;;  %v1613_v49 = vsel %vm533_vm8, %v479_v10, %v565_v29 }
 0x13d   :  { %v567_v53 = vmul.f32 0.01, %v487_v8  ;;  %vm535_vm10 = vcmp.gt.f32.partialorder %v487_v8, 0.0  ;;  %v495_v58 = vadd.f32 %v1511_v22, %v1425_v5  ;;  %vm668_vm11 = vcmp.lt.s32.totalorder %v636_v38, 242 }
 0x13e   :  { %v783_v11 = vadd.f32 %v782_v27, %v1559_v42  ;;  %v851_v12 = vadd.f32 %v850_v46, %v820_v62  ;;  %v503_v62 = vadd.f32 %v1536_v4, %v1425_v5  ;;  %v1622_v63 = vsel %vm534_vm9, %v482_v54, %v566_v24 }
 0x13f   :  { %v827_v46 = vmul.f32 %v1613_v49, %v1613_v49  ;;  %v568_v3 = vmul.f32 0.01, %v490_v52  ;;  %v498_v7 = vadd.f32 %v1517_v36, %v1425_v5  ;;  %v506_v22 = vadd.f32 %v1541_v18, %v1425_v5 }
 0x140   :  { %v784_v19 = vadd.f32 %v783_v11, %v1577_v0  ;;  %v852_v20 = vadd.f32 %v851_v12, %v821_v59  ;;  %v826_v59 = vmul.f32 %v1609_v40, %v1609_v40  ;;  %v1632_v10 = vsel %vm535_vm10, %v487_v8, %v567_v53 }
 0x141   :  { %vm536_vm12 = vcmp.gt.f32.partialorder %v490_v52, 0.0  ;;  %v828_v11 = vmul.f32 %v1622_v63, %v1622_v63  ;;  %v569_v12 = vmul.f32 0.01, %v495_v58  ;;  %vm537_vm13 = vcmp.gt.f32.partialorder %v495_v58, 0.0 }
 0x142   :  { %v853_v34 = vadd.f32 %v852_v20, %v822_v13  ;;  %v785_v37 = vadd.f32 %v784_v19, %v1579_v1  ;;  %v571_v13 = vmul.f32 0.01, %v503_v62  ;;  %vm539_vm14 = vcmp.gt.f32.partialorder %v503_v62, 0.0 }
 0x143   :  { %v829_v36 = vmul.f32 %v1632_v10, %v1632_v10  ;;  %v1639_v5 = vsel %vm536_vm12, %v490_v52, %v568_v3  ;;  %v570_v18 = vmul.f32 0.01, %v498_v7  ;;  %v572_v20 = vmul.f32 0.01, %v506_v22 }
 0x144   :  { %v786_v47 = vadd.f32 %v785_v37, %v1596_v23  ;;  %v854_v51 = vadd.f32 %v853_v34, %v823_v17  ;;  %vm538_vm15 = vcmp.gt.f32.partialorder %v498_v7, 0.0  ;;  %vm540_vm0 = vcmp.gt.f32.partialorder %v506_v22, 0.0 }
 0x145   :  { %v1642_v29 = vsel %vm537_vm13, %v495_v58, %v569_v12  ;;  %v1644_v34 = vsel %vm539_vm14, %v503_v62, %v571_v13  ;;  %v1241_v37 = vmov 0.0  }
 0x146   :  { %v787_v43 = vadd.f32 %v786_v47, %v1598_v14  ;;  %v855_v50 = vadd.f32 %v854_v51, %v824_v21  ;;  %v1045_v8 = vsel %vm668_vm11, 1.0, %v1241_v37  ;;  %v830_v47 = vmul.f32 %v1639_v5, %v1639_v5 }
 0x147   :  { %v1650_v51 = vsel %vm538_vm15, %v498_v7, %v570_v18  ;;  %v764_v53 = vmul.f32 %v1045_v8, %v1644_v34 }
 0x148   :  { %v788_v60 = vadd.f32 %v787_v43, %v1609_v40  ;;  %v856_v27 = vadd.f32 %v855_v50, %v825_v55  ;;  %v1652_v55 = vsel %vm540_vm0, %v506_v22, %v572_v20  ;;  %v831_v50 = vmul.f32 %v1642_v29, %v1642_v29 }
 0x149   :  { %v832_v62 = vmul.f32 %v1650_v51, %v1650_v51 }
 0x14a   :  { %v789_v4 = vadd.f32 %v788_v60, %v1613_v49  ;;  %v857_v9 = vadd.f32 %v856_v27, %v826_v59  ;;  %v765_v59 = vmul.f32 0.0, %v1652_v55 }
 0x14c   :  { %v790_v17 = vadd.f32 %v789_v4, %v1622_v63  ;;  %v858_v19 = vadd.f32 %v857_v9, %v827_v46  ;;  %v833_v46 = vmul.f32 %v764_v53, %v1644_v34  ;;  %v834_v22 = vmul.f32 %v765_v59, %v1652_v55 }
 0x14e   :  { %v859_v54 = vadd.f32 %v858_v19, %v828_v11  ;;  %v791_v26 = vadd.f32 %v790_v17, %v1632_v10 }
 0x150   :  { %v860_v21 = vadd.f32 %v859_v54, %v829_v36  ;;  %v792_v24 = vadd.f32 %v791_v26, %v1639_v5 }
 0x152   :  { %v861_v52 = vadd.f32 %v860_v21, %v830_v47  ;;  %v793_v43 = vadd.f32 %v792_v24, %v1642_v29 }
 0x154   :  { %v862_v38 = vadd.f32 %v861_v52, %v831_v50  ;;  %v794_v58 = vadd.f32 %v793_v43, %v1650_v51  ;;  %v877_v50 = vld [vmem:[%s1802_s3] sm:$0x1] }
 0x156   :  { %v863_v60 = vadd.f32 %v862_v38, %v832_v62  ;;  %v795_v27 = vadd.f32 %v794_v58, %v764_v53  ;;  %v887_v53 = vsub.s32 0, %v1589_v15  ;;  %v881_v62 = vld [vmem:[%s1803_s4] sm:$0x1] }
 0x158   :  { %v864_v3 = vadd.f32 %v863_v60, %v833_v46  ;;  %v796_v7 = vadd.f32 %v795_v27, %v765_v59 }
 0x15a   :  { %v797_v4 = vrot.slane %v796_v7, 4  ;;  %v865_v9 = vadd.f32 %v864_v3, %v834_v22 }
 0x15c   :  { %v798_v11 = vadd.f32 %v797_v4, %v796_v7  ;;  %v866_v12 = vrot.slane %v865_v9, 4 }
 0x15e   :  { %v799_v13 = vrot.slane %v798_v11, 2  ;;  %v867_v17 = vadd.f32 %v866_v12, %v865_v9 }
 0x160   :  { %v800_v19 = vadd.f32 %v799_v13, %v798_v11  ;;  %v868_v36 = vrot.slane %v867_v17, 2 }
 0x162   :  { %v801_v18 = vrot.slane %v800_v19, 1  ;;  %v869_v20 = vadd.f32 %v868_v36, %v867_v17 }
 0x164   :  { %v802_v54 = vadd.f32 %v801_v18, %v800_v19  ;;  %v870_v26 = vrot.slane %v869_v20, 1 }
 0x166   :  { %v871_v37 = vadd.f32 %v870_v26, %v869_v20  ;;  %v872_v8 = vmul.f32 0.004132231, %v802_v54 }
 0x168   :  { %v873_v21 = vmul.f32 0.004132231, %v871_v37  ;;  %v874_v24 = vmul.f32 %v872_v8, %v872_v8 }
 0x16a   :  { %v875_v47 = vsub.f32 %v873_v21, %v874_v24 }
 0x16c   :  { %v876_v52 = vmax.f32 %v875_v47, 0.0 }
 0x16e   :  { %v878_v43 = vadd.f32 1e-05, %v876_v52 }
 0x170   :  { %1239 = vrsqrt.f32 %v878_v43 }
 0x17a   :  { %v1240_v38 = vpop.eup %1239 }
 0x17b   :  { %v880_v58 = vmul.f32 %v1240_v38, %v877_v50 }
 0x17d   :  { %v882_v59 = vmul.f32 %v880_v58, %v872_v8  ;;  %v888_v60 = vrot.slane %v880_v58, %v887_v53 }
 0x17f   :  { %v883_v27 = vsub.f32 %v881_v62, %v882_v59  ;;  %v890_v46 = vmul.f32 %v888_v60, %v1440_v30  ;;  %v891_v3 = vmul.f32 %v888_v60, %v1437_v28  ;;  %v892_v7 = vmul.f32 %v888_v60, %v1442_v31 }
 0x180   :  { %v893_v22 = vmul.f32 %v888_v60, %v1455_v48  ;;  %v894_v4 = vmul.f32 %v888_v60, %v1461_v56  ;;  %v895_v15 = vmul.f32 %v888_v60, %v1469_v6  ;;  %v896_v9 = vmul.f32 %v888_v60, %v1474_v16 }
 0x181   :  { %v897_v11 = vmul.f32 %v888_v60, %v1485_v33  ;;  %v898_v12 = vmul.f32 %v888_v60, %v1488_v39  ;;  %v899_v13 = vmul.f32 %v888_v60, %v1500_v61  ;;  %v900_v30 = vmul.f32 %v888_v60, %v1504_v2 }
 0x182   :  { %v901_v28 = vmul.f32 %v888_v60, %v1513_v25  ;;  %v902_v31 = vmul.f32 %v888_v60, %v1526_v44  ;;  %v903_v48 = vmul.f32 %v888_v60, %v1533_v57  ;;  %v904_v56 = vmul.f32 %v888_v60, %v1549_v32 }
 0x183   :  { %v905_v6 = vmul.f32 %v888_v60, %v1561_v45  ;;  %v912_v16 = vmul.f32 %v888_v60, %v1598_v14  ;;  %v913_v33 = vmul.f32 %v888_v60, %v1609_v40  ;;  %v914_v39 = vmul.f32 %v888_v60, %v1613_v49 }
 0x184   :  { %v915_v61 = vmul.f32 %v888_v60, %v1622_v63  ;;  %v916_v2 = vmul.f32 %v888_v60, %v1632_v10  ;;  %v917_v25 = vmul.f32 %v888_v60, %v1639_v5  ;;  %v918_v44 = vmul.f32 %v888_v60, %v1642_v29 }
 0x185   :  { %v919_v57 = vmul.f32 %v888_v60, %v1650_v51  ;;  %v920_v32 = vmul.f32 %v888_v60, %v1644_v34  ;;  %v906_v45 = vmul.f32 %v888_v60, %v1552_v35  ;;  %v907_v14 = vmul.f32 %v888_v60, %v1557_v41 }
 0x186   :  { %v921_v40 = vmul.f32 %v888_v60, %v1652_v55  ;;  %v926_v17 = vrot.slane %v883_v27, %v887_v53  ;;  %v908_v49 = vmul.f32 %v888_v60, %v1559_v42  ;;  %v909_v63 = vmul.f32 %v888_v60, %v1577_v0 }
 0x187   :  { %v910_v10 = vmul.f32 %v888_v60, %v1579_v1  ;;  %v911_v5 = vmul.f32 %v888_v60, %v1596_v23 }
 0x188   :  { %v928_v29 = vadd.f32 %v926_v17, %v890_v46  ;;  %v929_v19 = vadd.f32 %v926_v17, %v891_v3  ;;  %v930_v51 = vadd.f32 %v926_v17, %v892_v7  ;;  %v931_v36 = vadd.f32 %v926_v17, %v893_v22 }
 0x189   :  { %v932_v34 = vadd.f32 %v926_v17, %v894_v4  ;;  %v933_v18 = vadd.f32 %v926_v17, %v895_v15  ;;  %v934_v35 = vadd.f32 %v926_v17, %v896_v9  ;;  %v935_v20 = vadd.f32 %v926_v17, %v897_v11 }
 0x18a   :  { %v936_v41 = vadd.f32 %v926_v17, %v898_v12  ;;  %v937_v54 = vadd.f32 %v926_v17, %v899_v13  ;;  %v938_v55 = vadd.f32 %v926_v17, %v900_v30  ;;  %v939_v26 = vadd.f32 %v926_v17, %v901_v28  ;;  %960 = vst [vmem:[%s1804_s5] sm:$0xff] %v928_v29 }
 0x18b   :  { %961 = vst [vmem:[%s1804_s5 + $0x8] sm:$0xff] %v929_v19  ;;  %962 = vst [vmem:[%s1804_s5 + $0x10] sm:$0xff] %v930_v51  ;;  %v940_v42 = vadd.f32 %v926_v17, %v902_v31  ;;  %v941_v0 = vadd.f32 %v926_v17, %v903_v48  ;;  %v942_v1 = vadd.f32 %v926_v17, %v904_v56 }
 0x18c   :  { %963 = vst [vmem:[%s1804_s5 + $0x18] sm:$0xff] %v931_v36  ;;  %v943_v23 = vadd.f32 %v926_v17, %v905_v6  ;;  %964 = vst [vmem:[%s1804_s5 + $0x20] sm:$0xff] %v932_v34  ;;  %v944_v37 = vadd.f32 %v926_v17, %v906_v45  ;;  %v945_v8 = vadd.f32 %v926_v17, %v907_v14 }
 0x18d   :  { %965 = vst [vmem:[%s1804_s5 + $0x28] sm:$0xff] %v933_v18  ;;  %966 = vst [vmem:[%s1804_s5 + $0x30] sm:$0xff] %v934_v35  ;;  %v946_v21 = vadd.f32 %v926_v17, %v908_v49  ;;  %v947_v24 = vadd.f32 %v926_v17, %v909_v63  ;;  %v948_v47 = vadd.f32 %v926_v17, %v910_v10 }
 0x18e   :  { %967 = vst [vmem:[%s1804_s5 + $0x38] sm:$0xff] %v935_v20  ;;  %968 = vst [vmem:[%s1804_s5 + $0x40] sm:$0xff] %v936_v41  ;;  %v949_v52 = vadd.f32 %v926_v17, %v911_v5  ;;  %v950_v43 = vadd.f32 %v926_v17, %v912_v16  ;;  %v951_v50 = vadd.f32 %v926_v17, %v913_v33 }
 0x18f   :  { %969 = vst [vmem:[%s1804_s5 + $0x48] sm:$0xff] %v937_v54  ;;  %970 = vst [vmem:[%s1804_s5 + $0x50] sm:$0xff] %v938_v55  ;;  %v952_v53 = vadd.f32 %v926_v17, %v914_v39  ;;  %v953_v38 = vadd.f32 %v926_v17, %v915_v61  ;;  %v954_v58 = vadd.f32 %v926_v17, %v916_v2 }
 0x190   :  { %971 = vst [vmem:[%s1804_s5 + $0x58] sm:$0xff] %v939_v26  ;;  %972 = vst [vmem:[%s1804_s5 + $0x60] sm:$0xff] %v940_v42  ;;  %v955_v62 = vadd.f32 %v926_v17, %v917_v25  ;;  %v956_v59 = vadd.f32 %v926_v17, %v918_v44  ;;  %v957_v60 = vadd.f32 %v926_v17, %v919_v57 }
 0x191   :  { %973 = vst [vmem:[%s1804_s5 + $0x68] sm:$0xff] %v941_v0  ;;  %974 = vst [vmem:[%s1804_s5 + $0x70] sm:$0xff] %v942_v1  ;;  %v958_v27 = vadd.f32 %v926_v17, %v920_v32  ;;  %v959_v46 = vadd.f32 %v926_v17, %v921_v40 }
 0x192   :  { %975 = vst [vmem:[%s1804_s5 + $0x78] sm:$0xff] %v943_v23  ;;  %976 = vst [vmem:[%s1804_s5 + $0x80] sm:$0xff] %v944_v37 }
 0x193   :  { %977 = vst [vmem:[%s1804_s5 + $0x88] sm:$0xff] %v945_v8  ;;  %978 = vst [vmem:[%s1804_s5 + $0x90] sm:$0xff] %v946_v21 }
 0x194   :  { %979 = vst [vmem:[%s1804_s5 + $0x98] sm:$0xff] %v947_v24  ;;  %980 = vst [vmem:[%s1804_s5 + $0xa0] sm:$0xff] %v948_v47 }
 0x195   :  { %981 = vst [vmem:[%s1804_s5 + $0xa8] sm:$0xff] %v949_v52  ;;  %982 = vst [vmem:[%s1804_s5 + $0xb0] sm:$0xff] %v950_v43 }
 0x196   :  { %983 = vst [vmem:[%s1804_s5 + $0xb8] sm:$0xff] %v951_v50  ;;  %984 = vst [vmem:[%s1804_s5 + $0xc0] sm:$0xff] %v952_v53 }
 0x197   :  { %985 = vst [vmem:[%s1804_s5 + $0xc8] sm:$0xff] %v953_v38  ;;  %986 = vst [vmem:[%s1804_s5 + $0xd0] sm:$0xff] %v954_v58 }
 0x198   :  { %987 = vst [vmem:[%s1804_s5 + $0xd8] sm:$0xff] %v955_v62  ;;  %988 = vst [vmem:[%s1804_s5 + $0xe0] sm:$0xff] %v956_v59 }
 0x199   :  { %989 = vst [vmem:[%s1804_s5 + $0xe8] sm:$0xff] %v957_v60  ;;  %990 = vst [vmem:[%s1804_s5 + $0xf0] sm:$0xff] %v958_v27 }
 0x19a   :  { %991 = vst [vmem:[%s1804_s5 + $0xf8] sm:$0xff] %v959_v46 }

// kernel: _lambda_.6
= control target key start
LH: loop header
LB: loop body
LE: loop exit
PB: predicated region body
PF: predicated region fallthrough
CT: control target
= control target key end

     0   :  { %s1345_s1 = inlined_call_operand.vmem [shape: bf16[256,128], index: 1, kind: input, shape index: {}]   ;;  %s1346_s0 = inlined_call_operand.vmem [shape: bf16[176,256], index: 0, kind: input, shape index: {}]   ;;  %s1347_s2 = inlined_call_operand.vmem [shape: f32[1,128], index: 2, kind: input, shape index: {}]   ;;  %s1348_s3 = inlined_call_operand.vmem [shape: f32[1,128], index: 3, kind: input, shape index: {}]   ;;  %s1349_s4 = inlined_call_operand.vmem [shape: f32[1,128], index: 4, kind: input, shape index: {}]   ;;  %s1350_s5 = inlined_call_operand.vmem [shape: f32[176,128], index: 5, kind: output, shape index: {}]  }
   0x1   :  { %v895_v0 = vld [vmem:[%s1345_s1 + $0x40] sm:$0xff]   ;;  %v897_v2 = vld [vmem:[%s1345_s1 + $0x48] sm:$0xff]   ;;  %v899_v4 = vld [vmem:[%s1345_s1 + $0x50] sm:$0xff]  }
   0x2   :  { %v896_v1 = vld [vmem:[%s1345_s1] sm:$0xff]   ;;  %796 = vmatprep.subr.bf16.mxu0 %v895_v0  ;;  %878 = vmatprep.subr.bf16.mxu1 %v895_v0  ;;  %v898_v3 = vld [vmem:[%s1345_s1 + $0x8] sm:$0xff]   ;;  %v900_v5 = vld [vmem:[%s1345_s1 + $0x10] sm:$0xff]  }
   0x3   :  { %797 = vmatpush3.bf16.msra.mxu0 %v896_v1  ;;  %886 = vmatpush3.bf16.msra.mxu1 %v896_v1  ;;  %v901_v6 = vld [vmem:[%s1345_s1 + $0x58] sm:$0xff]   ;;  %v903_v8 = vld [vmem:[%s1345_s1 + $0x60] sm:$0xff]   ;;  %v905_v10 = vld [vmem:[%s1345_s1 + $0x68] sm:$0xff]  }
   0x4   :  { %798 = vmatprep.subr.bf16.mxu0 %v897_v2  ;;  %879 = vmatprep.subr.bf16.mxu1 %v897_v2  ;;  %v902_v7 = vld [vmem:[%s1345_s1 + $0x18] sm:$0xff]   ;;  %v904_v9 = vld [vmem:[%s1345_s1 + $0x20] sm:$0xff]   ;;  %v906_v12 = vld [vmem:[%s1345_s1 + $0x28] sm:$0xff]  }
   0x5   :  { %v913_v11 = vld [vmem:[%s1346_s0 + $0x4] ss:$8 sps:$4 sm:$0xff]   ;;  %v907_v13 = vld [vmem:[%s1345_s1 + $0x70] sm:$0xff]   ;;  %v909_v16 = vld [vmem:[%s1345_s1 + $0x78] sm:$0xff]  }
   0x6   :  { %320 = vmatprep.mubr.bf16.mxu0 %v913_v11  ;;  %v922_v14 = vld [vmem:[%s1346_s0 + $0x64] ss:$8 sps:$4 sm:$0xff]   ;;  %v908_v15 = vld [vmem:[%s1345_s1 + $0x30] sm:$0xff]   ;;  %v910_v17 = vld [vmem:[%s1345_s1 + $0x38] sm:$0xff]  }
   0x7   :  { %799 = vmatpush3.bf16.msra.mxu0 %v898_v3  ;;  %887 = vmatpush3.bf16.msra.mxu1 %v898_v3  ;;  %v911_v18 = vld [vmem:[%s1346_s0] ss:$8 sps:$4 sm:$0xff]   ;;  %v914_v19 = vld [vmem:[%s1346_s0 + $0x14] ss:$8 sps:$4 sm:$0xff]   ;;  %v916_v22 = vld [vmem:[%s1346_s0 + $0x10] ss:$8 sps:$4 sm:$0xff]  }
   0x8   :  { %800 = vmatprep.subr.bf16.mxu0 %v899_v4  ;;  %880 = vmatprep.subr.bf16.mxu1 %v899_v4  ;;  %v920_v20 = vld [vmem:[%s1346_s0 + $0x60] ss:$8 sps:$4 sm:$0xff]   ;;  %v926_v21 = vld [vmem:[%s1346_s0 + $0x74] ss:$8 sps:$4 sm:$0xff]   ;;  %v917_v23 = vld [vmem:[%s1346_s0 + $0x24] ss:$8 sps:$4 sm:$0xff]  }
   0x9   :  { %368 = vmatprep.mubr.bf16.mxu1 %v922_v14  ;;  %v928_v24 = vld [vmem:[%s1346_s0 + $0x70] ss:$8 sps:$4 sm:$0xff]   ;;  %v932_v25 = vld [vmem:[%s1346_s0 + $0x84] ss:$8 sps:$4 sm:$0xff]   ;;  %v919_v26 = vld [vmem:[%s1346_s0 + $0x20] ss:$8 sps:$4 sm:$0xff]  }
   0xa   :  { %v923_v27 = vld [vmem:[%s1346_s0 + $0x34] ss:$8 sps:$4 sm:$0xff]   ;;  %v934_v28 = vld [vmem:[%s1346_s0 + $0x80] ss:$8 sps:$4 sm:$0xff]   ;;  %v925_v30 = vld [vmem:[%s1346_s0 + $0x30] ss:$8 sps:$4 sm:$0xff]  }
   0xb   :  { %801 = vmatpush3.bf16.msra.mxu0 %v900_v5  ;;  %888 = vmatpush3.bf16.msra.mxu1 %v900_v5  ;;  %v938_v29 = vld [vmem:[%s1346_s0 + $0x94] ss:$8 sps:$4 sm:$0xff]   ;;  %v929_v31 = vld [vmem:[%s1346_s0 + $0x44] ss:$8 sps:$4 sm:$0xff]   ;;  %v940_v32 = vld [vmem:[%s1346_s0 + $0x90] ss:$8 sps:$4 sm:$0xff]  }
   0xc   :  { %802 = vmatprep.subr.bf16.mxu0 %v901_v6  ;;  %881 = vmatprep.subr.bf16.mxu1 %v901_v6  ;;  %v941_v33 = vld [vmem:[%s1346_s0 + $0xa4] ss:$8 sps:$4 sm:$0xff]   ;;  %v931_v34 = vld [vmem:[%s1346_s0 + $0x40] ss:$8 sps:$4 sm:$0xff]   ;;  %v935_v35 = vld [vmem:[%s1346_s0 + $0x54] ss:$8 sps:$4 sm:$0xff]  }
   0xd   :  { %v943_v36 = vld [vmem:[%s1346_s0 + $0xa0] ss:$8 sps:$4 sm:$0xff]   ;;  %v937_v37 = vld [vmem:[%s1346_s0 + $0x50] ss:$8 sps:$4 sm:$0xff]  }
   0xe   :  { %v1098_v50 = vld [vmem:[%s1347_s2] ss:$0 sm:$0xff] }
   0xf   :  { %803 = vmatpush3.bf16.msra.mxu0 %v902_v7  ;;  %889 = vmatpush3.bf16.msra.mxu1 %v902_v7 }
  0x10   :  { %804 = vmatprep.subr.bf16.mxu0 %v903_v8  ;;  %882 = vmatprep.subr.bf16.mxu1 %v903_v8 }
  0x13   :  { %805 = vmatpush3.bf16.msra.mxu0 %v904_v9  ;;  %890 = vmatpush3.bf16.msra.mxu1 %v904_v9 }
  0x14   :  { %806 = vmatprep.subr.bf16.mxu0 %v905_v10  ;;  %883 = vmatprep.subr.bf16.mxu1 %v905_v10 }
  0x17   :  { %807 = vmatpush3.bf16.msra.mxu0 %v906_v12  ;;  %891 = vmatpush3.bf16.msra.mxu1 %v906_v12 }
  0x18   :  { %808 = vmatprep.subr.bf16.mxu0 %v907_v13  ;;  %884 = vmatprep.subr.bf16.mxu1 %v907_v13 }
  0x1b   :  { %809 = vmatpush3.bf16.msra.mxu0 %v908_v15  ;;  %892 = vmatpush3.bf16.msra.mxu1 %v908_v15 }
  0x1c   :  { %810 = vmatprep.subr.bf16.mxu0 %v909_v16  ;;  %885 = vmatprep.subr.bf16.mxu1 %v909_v16 }
  0x1f   :  { %811 = vmatpush3.bf16.msra.mxu0 %v910_v17  ;;  %893 = vmatpush3.bf16.msra.mxu1 %v910_v17 }
  0x22   :  { %321 = vmatmul.mubr.bf16.vlgmr.msra.gmra.mrb[0].mxu0 %v911_v18  ;;  %369 = vmatmul.mubr.bf16.vlgmr.msra.gmra.mrb[0].mxu1 %v920_v20 }
  0x23   :  { %328 = vmatprep.mubr.bf16.mxu0 %v914_v19  ;;  %376 = vmatprep.mubr.bf16.mxu1 %v926_v21 }
  0x2a   :  { %329 = vmatmul.mubr.bf16.gmra.mrb[4].mxu0 %v916_v22  ;;  %377 = vmatmul.mubr.bf16.gmra.mrb[4].mxu1 %v928_v24 }
  0x2b   :  { %336 = vmatprep.mubr.bf16.mxu0 %v917_v23  ;;  %384 = vmatprep.mubr.bf16.mxu1 %v932_v25 }
  0x32   :  { %337 = vmatmul.mubr.bf16.gmra.mrb[8].mxu0 %v919_v26  ;;  %385 = vmatmul.mubr.bf16.gmra.mrb[8].mxu1 %v934_v28 }
  0x33   :  { %344 = vmatprep.mubr.bf16.mxu0 %v923_v27  ;;  %392 = vmatprep.mubr.bf16.mxu1 %v938_v29 }
  0x3a   :  { %345 = vmatmul.mubr.bf16.gmra.mrb[12].mxu0 %v925_v30  ;;  %393 = vmatmul.mubr.bf16.gmra.mrb[12].mxu1 %v940_v32 }
  0x3b   :  { %352 = vmatprep.mubr.bf16.mxu0 %v929_v31  ;;  %400 = vmatprep.mubr.bf16.mxu1 %v941_v33 }
  0x42   :  { %353 = vmatmul.mubr.bf16.gmra.mrb[16].mxu0 %v931_v34  ;;  %401 = vmatmul.mubr.bf16.gmra.mrb[16].mxu1 %v943_v36 }
  0x43   :  { %360 = vmatprep.mubr.bf16.mxu0 %v935_v35 }
  0x4a   :  { %361 = vmatmul.mubr.bf16.gmra.mrb[20].mxu0 %v937_v37 }
  0xf5   :  { %v812_v38 = vpop.f32.mrb[0].mxu0  ;;  %v848_v40 = vpop.f32.mrb[0].mxu1 }
  0xf6   :  { %v813_v39 = vpop.f32.mrb[1].mxu0  ;;  %v849_v43 = vpop.f32.mrb[1].mxu1 }
  0xf7   :  { %v814_v41 = vadd.f32 %v813_v39, %v812_v38  ;;  %v815_v42 = vpop.f32.mrb[2].mxu0  ;;  %v1091_v45 = vadd.f32 %v849_v43, %v848_v40  ;;  %v851_v46 = vpop.f32.mrb[2].mxu1 }
  0xf8   :  { %v816_v44 = vpop.f32.mrb[3].mxu0  ;;  %v852_v48 = vpop.f32.mrb[3].mxu1 }
  0xf9   :  { %v817_v47 = vadd.f32 %v816_v44, %v815_v42  ;;  %v1093_v49 = vadd.f32 %v852_v48, %v851_v46  ;;  %v323_v58 = vadd.f32 %v814_v41, %v1098_v50 }
  0xfb   :  { %v326_v54 = vadd.f32 %v817_v47, %v1098_v50  ;;  %v431_v3 = vmul.f32 0.01, %v323_v58  ;;  %vm409_vm1 = vcmp.gt.f32.partialorder %v323_v58, 0.0 }
  0xfd   :  { %v818_v51 = vpop.f32.mrb[4].mxu0  ;;  %v854_v53 = vpop.f32.mrb[4].mxu1  ;;  %v432_v2 = vmul.f32 0.01, %v326_v54  ;;  %vm410_vm0 = vcmp.gt.f32.partialorder %v326_v54, 0.0  ;;  %v1110_v13 = vsel %vm409_vm1, %v323_v58, %v431_v3 }
  0xfe   :  { %v819_v52 = vpop.f32.mrb[5].mxu0  ;;  %v855_v57 = vpop.f32.mrb[5].mxu1  ;;  %v613_v26 = vmul.f32 %v1110_v13, %v1110_v13 }
  0xff   :  { %v820_v55 = vadd.f32 %v819_v52, %v818_v51  ;;  %v821_v56 = vpop.f32.mrb[6].mxu0  ;;  %v1102_v60 = vadd.f32 %v855_v57, %v854_v53  ;;  %v857_v61 = vpop.f32.mrb[6].mxu1  ;;  %v1108_v9 = vsel %vm410_vm0, %v326_v54, %v432_v2 }
 0x100   :  { %v822_v59 = vpop.f32.mrb[7].mxu0  ;;  %v858_v0 = vpop.f32.mrb[7].mxu1  ;;  %v614_v22 = vmul.f32 %v1108_v9, %v1108_v9  ;;  %v586_v27 = vadd.f32 %v1108_v9, %v1110_v13 }
 0x101   :  { %v331_v62 = vadd.f32 %v820_v55, %v1098_v50  ;;  %v823_v63 = vadd.f32 %v822_v59, %v821_v56  ;;  %v1105_v1 = vadd.f32 %v858_v0, %v857_v61 }
 0x102   :  { %v635_v31 = vadd.f32 %v614_v22, %v613_v26 }
 0x103   :  { %v433_v4 = vmul.f32 0.01, %v331_v62  ;;  %v334_v5 = vadd.f32 %v823_v63, %v1098_v50  ;;  %vm411_vm2 = vcmp.gt.f32.partialorder %v331_v62, 0.0 }
 0x105   :  { %v824_v6 = vpop.f32.mrb[8].mxu0  ;;  %v860_v8 = vpop.f32.mrb[8].mxu1  ;;  %v1114_v17 = vsel %vm411_vm2, %v331_v62, %v433_v4  ;;  %v434_v18 = vmul.f32 0.01, %v334_v5  ;;  %vm412_vm3 = vcmp.gt.f32.partialorder %v334_v5, 0.0 }
 0x106   :  { %v825_v7 = vpop.f32.mrb[9].mxu0  ;;  %v861_v12 = vpop.f32.mrb[9].mxu1  ;;  %v615_v28 = vmul.f32 %v1114_v17, %v1114_v17  ;;  %v587_v32 = vadd.f32 %v586_v27, %v1114_v17 }
 0x107   :  { %v826_v10 = vadd.f32 %v825_v7, %v824_v6  ;;  %v827_v11 = vpop.f32.mrb[10].mxu0  ;;  %v1112_v15 = vadd.f32 %v861_v12, %v860_v8  ;;  %v863_v16 = vpop.f32.mrb[10].mxu1  ;;  %v1128_v29 = vsel %vm412_vm3, %v334_v5, %v434_v18 }
 0x108   :  { %v828_v14 = vpop.f32.mrb[11].mxu0  ;;  %v864_v21 = vpop.f32.mrb[11].mxu1  ;;  %v636_v40 = vadd.f32 %v635_v31, %v615_v28  ;;  %v616_v41 = vmul.f32 %v1128_v29, %v1128_v29  ;;  %v588_v51 = vadd.f32 %v587_v32, %v1128_v29 }
 0x109   :  { %v339_v19 = vadd.f32 %v826_v10, %v1098_v50  ;;  %v829_v20 = vadd.f32 %v828_v14, %v827_v11  ;;  %v1119_v23 = vadd.f32 %v864_v21, %v863_v16 }
 0x10a   :  { %v637_v57 = vadd.f32 %v636_v40, %v616_v41  ;;  %v374_v41 = vadd.f32 %v1093_v49, %v1098_v50 }
 0x10b   :  { %v435_v24 = vmul.f32 0.01, %v339_v19  ;;  %v342_v25 = vadd.f32 %v829_v20, %v1098_v50  ;;  %vm413_vm4 = vcmp.gt.f32.partialorder %v339_v19, 0.0 }
 0x10c   :  { %vm422_vm12 = vcmp.gt.f32.partialorder %v374_v41, 0.0 }
 0x10d   :  { %v830_v30 = vpop.f32.mrb[12].mxu0  ;;  %v866_v34 = vpop.f32.mrb[12].mxu1  ;;  %v1131_v35 = vsel %vm413_vm4, %v339_v19, %v435_v24  ;;  %v436_v36 = vmul.f32 0.01, %v342_v25  ;;  %vm414_vm5 = vcmp.gt.f32.partialorder %v342_v25, 0.0  ;;  %v371_v24 = vadd.f32 %v1091_v45, %v1098_v50 }
 0x10e   :  { %v831_v33 = vpop.f32.mrb[13].mxu0  ;;  %v867_v39 = vpop.f32.mrb[13].mxu1  ;;  %v617_v52 = vmul.f32 %v1131_v35, %v1131_v35  ;;  %v589_v58 = vadd.f32 %v588_v51, %v1131_v35  ;;  %v475_v45 = vlaneseq }
 0x10f   :  { %v832_v37 = vadd.f32 %v831_v33, %v830_v30  ;;  %v833_v38 = vpop.f32.mrb[14].mxu0  ;;  %v1135_v43 = vadd.f32 %v867_v39, %v866_v34  ;;  %v869_v44 = vpop.f32.mrb[14].mxu1  ;;  %v1143_v54 = vsel %vm414_vm5, %v342_v25, %v436_v36  ;;  %vm421_vm10 = vcmp.gt.f32.partialorder %v371_v24, 0.0 }
 0x110   :  { %v834_v42 = vpop.f32.mrb[15].mxu0  ;;  %v870_v48 = vpop.f32.mrb[15].mxu1  ;;  %v638_v63 = vadd.f32 %v637_v57, %v617_v52  ;;  %v618_v0 = vmul.f32 %v1143_v54, %v1143_v54  ;;  %v590_v7 = vadd.f32 %v589_v58, %v1143_v54 }
 0x111   :  { %v347_v46 = vadd.f32 %v832_v37, %v1098_v50  ;;  %v835_v47 = vadd.f32 %v834_v42, %v833_v38  ;;  %v1141_v53 = vadd.f32 %v870_v48, %v869_v44  ;;  %v443_v37 = vmul.f32 0.01, %v371_v24 }
 0x112   :  { %v639_v20 = vadd.f32 %v638_v63, %v618_v0 }
 0x113   :  { %vm415_vm6 = vcmp.gt.f32.partialorder %v347_v46, 0.0  ;;  %v437_v55 = vmul.f32 0.01, %v347_v46  ;;  %v350_v56 = vadd.f32 %v835_v47, %v1098_v50  ;;  %v379_v47 = vadd.f32 %v1102_v60, %v1098_v50 }
 0x114   :  { %v1184_v57 = vsel %vm421_vm10, %v371_v24, %v443_v37  ;;  %v382_v60 = vadd.f32 %v1105_v1, %v1098_v50 }
 0x115   :  { %v1147_v59 = vsel %vm415_vm6, %v347_v46, %v437_v55  ;;  %v438_v61 = vmul.f32 0.01, %v350_v56  ;;  %v836_v62 = vpop.f32.mrb[16].mxu0  ;;  %vm416_vm7 = vcmp.gt.f32.partialorder %v350_v56, 0.0  ;;  %v872_v3 = vpop.f32.mrb[16].mxu1  ;;  %vm423_vm14 = vcmp.gt.f32.partialorder %v379_v47, 0.0 }
 0x116   :  { %v837_v2 = vpop.f32.mrb[17].mxu0  ;;  %v873_v6 = vpop.f32.mrb[17].mxu1  ;;  %v619_v8 = vmul.f32 %v1147_v59, %v1147_v59  ;;  %v591_v21 = vadd.f32 %v590_v7, %v1147_v59  ;;  %v445_v63 = vmul.f32 0.01, %v379_v47  ;;  %vm424_vm15 = vcmp.gt.f32.partialorder %v382_v60, 0.0 }
 0x117   :  { %v838_v4 = vadd.f32 %v837_v2, %v836_v62  ;;  %v839_v5 = vpop.f32.mrb[18].mxu0  ;;  %v1154_v11 = vadd.f32 %v873_v6, %v872_v3  ;;  %v875_v12 = vpop.f32.mrb[18].mxu1  ;;  %v1156_v14 = vsel %vm416_vm7, %v350_v56, %v438_v61  ;;  %v1182_v56 = vshrl.u32 %v475_v45, 7 }
 0x118   :  { %v840_v10 = vpop.f32.mrb[19].mxu0  ;;  %v876_v19 = vpop.f32.mrb[19].mxu1  ;;  %v640_v27 = vadd.f32 %v639_v20, %v619_v8  ;;  %v620_v28 = vmul.f32 %v1156_v14, %v1156_v14  ;;  %v592_v33 = vadd.f32 %v591_v21, %v1156_v14  ;;  %v444_v61 = vmul.f32 0.01, %v374_v41 }
 0x119   :  { %v355_v16 = vadd.f32 %v838_v4, %v1098_v50  ;;  %v841_v18 = vadd.f32 %v840_v10, %v839_v5  ;;  %v1160_v22 = vadd.f32 %v876_v19, %v875_v12  ;;  %v387_v4 = vadd.f32 %v1112_v15, %v1098_v50 }
 0x11a   :  { %v641_v42 = vadd.f32 %v640_v27, %v620_v28  ;;  %v496_v1 = vadd.s32 160, %v1182_v56  ;;  %v446_v8 = vmul.f32 0.01, %v382_v60  ;;  %v625_v15 = vmul.f32 %v1184_v57, %v1184_v57 }
 0x11b   :  { %vm417_vm8 = vcmp.gt.f32.partialorder %v355_v16, 0.0  ;;  %v439_v25 = vmul.f32 0.01, %v355_v16  ;;  %v358_v26 = vadd.f32 %v841_v18, %v1098_v50  ;;  %v1206_v18 = vsel %vm422_vm12, %v374_v41, %v444_v61 }
 0x11c   :  { %v390_v19 = vadd.f32 %v1119_v23, %v1098_v50  ;;  %v1210_v20 = vsel %vm423_vm14, %v379_v47, %v445_v63  ;;  %v447_v21 = vmul.f32 0.01, %v387_v4  ;;  %vm425_vm0 = vcmp.gt.f32.partialorder %v387_v4, 0.0 }
 0x11d   :  { %v1167_v30 = vsel %vm417_vm8, %v355_v16, %v439_v25  ;;  %vm418_vm9 = vcmp.gt.f32.partialorder %v358_v26, 0.0  ;;  %v440_v31 = vmul.f32 0.01, %v358_v26  ;;  %v842_v32 = vpop.f32.mrb[20].mxu0  ;;  %v403_v27 = vadd.f32 %v1154_v11, %v1098_v50 }
 0x11e   :  { %v621_v34 = vmul.f32 %v1167_v30, %v1167_v30  ;;  %v843_v36 = vpop.f32.mrb[21].mxu0  ;;  %v593_v44 = vadd.f32 %v592_v33, %v1167_v30  ;;  %vm518_vm1 = vcmp.lt.s32.totalorder %v496_v1, 162  ;;  %v626_v28 = vmul.f32 %v1206_v18, %v1206_v18 }
 0x11f   :  { %v1172_v38 = vsel %vm418_vm9, %v358_v26, %v440_v31  ;;  %v844_v39 = vadd.f32 %v843_v36, %v842_v32  ;;  %v845_v40 = vpop.f32.mrb[22].mxu0  ;;  %v395_v26 = vadd.f32 %v1135_v43, %v1098_v50  ;;  %v1219_v31 = vsel %vm424_vm15, %v382_v60, %v446_v8 }
 0x120   :  { %v846_v46 = vpop.f32.mrb[23].mxu0  ;;  %v642_v52 = vadd.f32 %v641_v42, %v621_v34  ;;  %v622_v55 = vmul.f32 %v1172_v38, %v1172_v38  ;;  %v594_v62 = vadd.f32 %v593_v44, %v1172_v38  ;;  %v627_v33 = vmul.f32 %v1210_v20, %v1210_v20 }
 0x121   :  { %v363_v48 = vadd.f32 %v844_v39, %v1098_v50  ;;  %v847_v51 = vadd.f32 %v846_v46, %v845_v40  ;;  %v448_v34 = vmul.f32 0.01, %v390_v19  ;;  %v398_v36 = vadd.f32 %v1141_v53, %v1098_v50 }
 0x122   :  { %v643_v3 = vadd.f32 %v642_v52, %v622_v55  ;;  %v406_v43 = vadd.f32 %v1160_v22, %v1098_v50  ;;  %v1228_v11 = vsel %vm425_vm0, %v387_v4, %v447_v21  ;;  %vm426_vm2 = vcmp.gt.f32.partialorder %v390_v19, 0.0 }
 0x123   :  { %vm419_vm11 = vcmp.gt.f32.partialorder %v363_v48, 0.0  ;;  %v441_v49 = vmul.f32 0.01, %v363_v48  ;;  %v366_v58 = vadd.f32 %v847_v51, %v1098_v50  ;;  %v628_v39 = vmul.f32 %v1219_v31, %v1219_v31 }
 0x124   :  { %v449_v40 = vmul.f32 0.01, %v395_v26  ;;  %v451_v41 = vmul.f32 0.01, %v403_v27  ;;  %vm427_vm3 = vcmp.gt.f32.partialorder %v395_v26, 0.0  ;;  %vm429_vm4 = vcmp.gt.f32.partialorder %v403_v27, 0.0 }
 0x125   :  { %v1190_v0 = vsel %vm419_vm11, %v363_v48, %v441_v49  ;;  %vm420_vm13 = vcmp.gt.f32.partialorder %v366_v58, 0.0  ;;  %v442_v2 = vmul.f32 0.01, %v366_v58  ;;  %v629_v53 = vmul.f32 %v1228_v11, %v1228_v11 }
 0x126   :  { %v595_v5 = vadd.f32 %v594_v62, %v1190_v0  ;;  %v623_v6 = vmul.f32 %v1190_v0, %v1190_v0  ;;  %v1236_v50 = vsel %vm426_vm2, %v390_v19, %v448_v34  ;;  %v450_v22 = vmul.f32 0.01, %v398_v36 }
 0x127   :  { %v1197_v7 = vsel %vm420_vm13, %v366_v58, %v442_v2  ;;  %v452_v46 = vmul.f32 0.01, %v406_v43  ;;  %vm428_vm5 = vcmp.gt.f32.partialorder %v398_v36, 0.0  ;;  %vm430_vm6 = vcmp.gt.f32.partialorder %v406_v43, 0.0 }
 0x128   :  { %v644_v10 = vadd.f32 %v643_v3, %v623_v6  ;;  %v596_v12 = vadd.f32 %v595_v5, %v1197_v7  ;;  %v624_v16 = vmul.f32 %v1197_v7, %v1197_v7  ;;  %v1239_v51 = vsel %vm427_vm3, %v395_v26, %v449_v40 }
 0x129   :  { %v1241_v52 = vsel %vm429_vm4, %v403_v27, %v451_v41  ;;  %v946_v55 = vmov 0.0   ;;  %v630_v58 = vmul.f32 %v1236_v50, %v1236_v50  ;;  %v472_v62 = vsel %vm428_vm5, %v398_v36, %v450_v22 }
 0x12a   :  { %v597_v24 = vadd.f32 %v596_v12, %v1184_v57  ;;  %v645_v25 = vadd.f32 %v644_v10, %v624_v16  ;;  %v795_v49 = vsel %vm518_vm1, 1.0, %v946_v55  ;;  %v474_v63 = vsel %vm430_vm6, %v406_v43, %v452_v46  ;;  %v667_v46 = vld [vmem:[%s1348_s3] sm:$0x1] }
 0x12b   :  { %v631_v3 = vmul.f32 %v1239_v51, %v1239_v51  ;;  %v584_v5 = vmul.f32 %v795_v49, %v1241_v52  ;;  %v632_v1 = vmul.f32 %v472_v62, %v472_v62  ;;  %v585_v10 = vmul.f32 0.0, %v474_v63  ;;  %v671_v49 = vld [vmem:[%s1349_s4] sm:$0x1] }
 0x12c   :  { %v598_v23 = vadd.f32 %v597_v24, %v1206_v18  ;;  %v646_v32 = vadd.f32 %v645_v25, %v625_v15 }
 0x12d   :  { %v633_v15 = vmul.f32 %v584_v5, %v1241_v52  ;;  %v634_v24 = vmul.f32 %v585_v10, %v474_v63 }
 0x12e   :  { %v599_v45 = vadd.f32 %v598_v23, %v1210_v20  ;;  %v647_v37 = vadd.f32 %v646_v32, %v626_v28 }
 0x130   :  { %v648_v42 = vadd.f32 %v647_v37, %v627_v33  ;;  %v600_v44 = vadd.f32 %v599_v45, %v1219_v31 }
 0x132   :  { %v601_v47 = vadd.f32 %v600_v44, %v1228_v11  ;;  %v649_v48 = vadd.f32 %v648_v42, %v628_v39 }
 0x134   :  { %v602_v61 = vadd.f32 %v601_v47, %v1236_v50  ;;  %v650_v60 = vadd.f32 %v649_v48, %v629_v53  ;;  %v677_v47 = vsub.s32 0, %v1182_v56 }
 0x136   :  { %v603_v2 = vadd.f32 %v602_v61, %v1239_v51  ;;  %v651_v4 = vadd.f32 %v650_v60, %v630_v58 }
 0x138   :  { %v652_v6 = vadd.f32 %v651_v4, %v631_v3  ;;  %v604_v8 = vadd.f32 %v603_v2, %v472_v62 }
 0x13a   :  { %v653_v12 = vadd.f32 %v652_v6, %v632_v1  ;;  %v605_v16 = vadd.f32 %v604_v8, %v584_v5 }
 0x13c   :  { %v654_v19 = vadd.f32 %v653_v12, %v633_v15  ;;  %v606_v21 = vadd.f32 %v605_v16, %v585_v10 }
 0x13e   :  { %v607_v25 = vrot.slane %v606_v21, 4  ;;  %v655_v26 = vadd.f32 %v654_v19, %v634_v24 }
 0x140   :  { %v608_v27 = vadd.f32 %v607_v25, %v606_v21  ;;  %v656_v28 = vrot.slane %v655_v26, 4 }
 0x142   :  { %v609_v23 = vrot.slane %v608_v27, 2  ;;  %v657_v32 = vadd.f32 %v656_v28, %v655_v26 }
 0x144   :  { %v610_v33 = vadd.f32 %v609_v23, %v608_v27  ;;  %v658_v34 = vrot.slane %v657_v32, 2 }
 0x146   :  { %v611_v36 = vrot.slane %v610_v33, 1  ;;  %v659_v43 = vadd.f32 %v658_v34, %v657_v32 }
 0x148   :  { %v612_v45 = vadd.f32 %v611_v36, %v610_v33  ;;  %v660_v37 = vrot.slane %v659_v43, 1 }
 0x14a   :  { %v661_v39 = vadd.f32 %v660_v37, %v659_v43  ;;  %v662_v40 = vmul.f32 0.0061728396, %v612_v45 }
 0x14c   :  { %v663_v41 = vmul.f32 0.0061728396, %v661_v39  ;;  %v664_v42 = vmul.f32 %v662_v40, %v662_v40 }
 0x14e   :  { %v665_v44 = vsub.f32 %v663_v41, %v664_v42 }
 0x150   :  { %v666_v53 = vmax.f32 %v665_v44, 0.0 }
 0x152   :  { %v668_v22 = vadd.f32 1e-05, %v666_v53 }
 0x154   :  { %944 = vrsqrt.f32 %v668_v22 }
 0x15e   :  { %v945_v48 = vpop.eup %944 }
 0x15f   :  { %v670_v55 = vmul.f32 %v945_v48, %v667_v46 }
 0x161   :  { %v672_v58 = vmul.f32 %v670_v55, %v662_v40  ;;  %v678_v61 = vrot.slane %v670_v55, %v677_v47 }
 0x163   :  { %v673_v60 = vsub.f32 %v671_v49, %v672_v58  ;;  %v680_v2 = vmul.f32 %v678_v61, %v1110_v13  ;;  %v681_v3 = vmul.f32 %v678_v61, %v1108_v9  ;;  %v682_v4 = vmul.f32 %v678_v61, %v1114_v17 }
 0x164   :  { %v683_v5 = vmul.f32 %v678_v61, %v1128_v29  ;;  %v684_v6 = vmul.f32 %v678_v61, %v1131_v35  ;;  %v685_v56 = vmul.f32 %v678_v61, %v1143_v54  ;;  %v690_v8 = vmul.f32 %v678_v61, %v1190_v0 }
 0x165   :  { %v691_v1 = vmul.f32 %v678_v61, %v1197_v7  ;;  %v692_v10 = vmul.f32 %v678_v61, %v1184_v57  ;;  %v693_v12 = vmul.f32 %v678_v61, %v1206_v18  ;;  %v694_v13 = vmul.f32 %v678_v61, %v1210_v20 }
 0x166   :  { %v695_v9 = vmul.f32 %v678_v61, %v1219_v31  ;;  %v696_v17 = vmul.f32 %v678_v61, %v1228_v11  ;;  %v697_v29 = vmul.f32 %v678_v61, %v1236_v50  ;;  %v698_v35 = vmul.f32 %v678_v61, %v1239_v51 }
 0x167   :  { %v699_v16 = vmul.f32 %v678_v61, %v472_v62  ;;  %v700_v54 = vmul.f32 %v678_v61, %v1241_v52  ;;  %v701_v0 = vmul.f32 %v678_v61, %v474_v63  ;;  %v706_v15 = vrot.slane %v673_v60, %v677_v47 }
 0x168   :  { %v686_v7 = vmul.f32 %v678_v61, %v1147_v59  ;;  %v687_v57 = vmul.f32 %v678_v61, %v1156_v14  ;;  %v688_v18 = vmul.f32 %v678_v61, %v1167_v30  ;;  %v689_v20 = vmul.f32 %v678_v61, %v1172_v38 }
 0x169   :  { %v708_v31 = vadd.f32 %v706_v15, %v680_v2  ;;  %v709_v19 = vadd.f32 %v706_v15, %v681_v3  ;;  %v710_v11 = vadd.f32 %v706_v15, %v682_v4  ;;  %v711_v21 = vadd.f32 %v706_v15, %v683_v5 }
 0x16a   :  { %v712_v50 = vadd.f32 %v706_v15, %v684_v6  ;;  %v713_v24 = vadd.f32 %v706_v15, %v685_v56  ;;  %v714_v51 = vadd.f32 %v706_v15, %v686_v7  ;;  %v715_v62 = vadd.f32 %v706_v15, %v687_v57 }
 0x16b   :  { %v716_v25 = vadd.f32 %v706_v15, %v688_v18  ;;  %v717_v52 = vadd.f32 %v706_v15, %v689_v20  ;;  %v718_v63 = vadd.f32 %v706_v15, %v690_v8  ;;  %v719_v26 = vadd.f32 %v706_v15, %v691_v1  ;;  %730 = vst [vmem:[%s1350_s5] sm:$0xff] %v708_v31 }
 0x16c   :  { %731 = vst [vmem:[%s1350_s5 + $0x8] sm:$0xff] %v709_v19  ;;  %732 = vst [vmem:[%s1350_s5 + $0x10] sm:$0xff] %v710_v11  ;;  %v720_v59 = vadd.f32 %v706_v15, %v692_v10  ;;  %v721_v14 = vadd.f32 %v706_v15, %v693_v12  ;;  %v722_v30 = vadd.f32 %v706_v15, %v694_v13 }
 0x16d   :  { %733 = vst [vmem:[%s1350_s5 + $0x18] sm:$0xff] %v711_v21  ;;  %v723_v38 = vadd.f32 %v706_v15, %v695_v9  ;;  %734 = vst [vmem:[%s1350_s5 + $0x20] sm:$0xff] %v712_v50  ;;  %v724_v27 = vadd.f32 %v706_v15, %v696_v17  ;;  %v725_v28 = vadd.f32 %v706_v15, %v697_v29 }
 0x16e   :  { %735 = vst [vmem:[%s1350_s5 + $0x28] sm:$0xff] %v713_v24  ;;  %736 = vst [vmem:[%s1350_s5 + $0x30] sm:$0xff] %v714_v51  ;;  %v726_v23 = vadd.f32 %v706_v15, %v698_v35  ;;  %v727_v32 = vadd.f32 %v706_v15, %v699_v16  ;;  %v728_v33 = vadd.f32 %v706_v15, %v700_v54 }
 0x16f   :  { %737 = vst [vmem:[%s1350_s5 + $0x38] sm:$0xff] %v715_v62  ;;  %738 = vst [vmem:[%s1350_s5 + $0x40] sm:$0xff] %v716_v25  ;;  %v729_v34 = vadd.f32 %v706_v15, %v701_v0 }
 0x170   :  { %739 = vst [vmem:[%s1350_s5 + $0x48] sm:$0xff] %v717_v52  ;;  %740 = vst [vmem:[%s1350_s5 + $0x50] sm:$0xff] %v718_v63 }
 0x171   :  { %741 = vst [vmem:[%s1350_s5 + $0x58] sm:$0xff] %v719_v26  ;;  %742 = vst [vmem:[%s1350_s5 + $0x60] sm:$0xff] %v720_v59 }
 0x172   :  { %743 = vst [vmem:[%s1350_s5 + $0x68] sm:$0xff] %v721_v14  ;;  %744 = vst [vmem:[%s1350_s5 + $0x70] sm:$0xff] %v722_v30 }
 0x173   :  { %745 = vst [vmem:[%s1350_s5 + $0x78] sm:$0xff] %v723_v38  ;;  %746 = vst [vmem:[%s1350_s5 + $0x80] sm:$0xff] %v724_v27 }
 0x174   :  { %747 = vst [vmem:[%s1350_s5 + $0x88] sm:$0xff] %v725_v28  ;;  %748 = vst [vmem:[%s1350_s5 + $0x90] sm:$0xff] %v726_v23 }
 0x175   :  { %749 = vst [vmem:[%s1350_s5 + $0x98] sm:$0xff] %v727_v32  ;;  %750 = vst [vmem:[%s1350_s5 + $0xa0] sm:$0xff] %v728_v33 }
 0x176   :  { %751 = vst [vmem:[%s1350_s5 + $0xa8] sm:$0xff] %v729_v34 }

// kernel: _lambda_.7
= control target key start
LH: loop header
LB: loop body
LE: loop exit
PB: predicated region body
PF: predicated region fallthrough
CT: control target
= control target key end

     0   :  { %s1058_s1 = inlined_call_operand.vmem [shape: bf16[256,128], index: 1, kind: input, shape index: {}]   ;;  %s1059_s0 = inlined_call_operand.vmem [shape: bf16[128,256], index: 0, kind: input, shape index: {}]   ;;  %s1060_s2 = inlined_call_operand.vmem [shape: f32[1,128], index: 2, kind: input, shape index: {}]   ;;  %s1061_s3 = inlined_call_operand.vmem [shape: f32[1,128], index: 3, kind: input, shape index: {}]   ;;  %s1062_s4 = inlined_call_operand.vmem [shape: f32[1,128], index: 4, kind: input, shape index: {}]   ;;  %s1063_s5 = inlined_call_operand.vmem [shape: f32[128,128], index: 5, kind: output, shape index: {}]  }
   0x1   :  { %v725_v0 = vld [vmem:[%s1058_s1 + $0x40] sm:$0xff]   ;;  %v727_v2 = vld [vmem:[%s1058_s1 + $0x48] sm:$0xff]   ;;  %v729_v4 = vld [vmem:[%s1058_s1 + $0x50] sm:$0xff]  }
   0x2   :  { %v726_v1 = vld [vmem:[%s1058_s1] sm:$0xff]   ;;  %645 = vmatprep.subr.bf16.mxu0 %v725_v0  ;;  %709 = vmatprep.subr.bf16.mxu1 %v725_v0  ;;  %v728_v3 = vld [vmem:[%s1058_s1 + $0x8] sm:$0xff]   ;;  %v730_v5 = vld [vmem:[%s1058_s1 + $0x10] sm:$0xff]  }
   0x3   :  { %646 = vmatpush3.bf16.msra.mxu0 %v726_v1  ;;  %717 = vmatpush3.bf16.msra.mxu1 %v726_v1  ;;  %v731_v6 = vld [vmem:[%s1058_s1 + $0x58] sm:$0xff]   ;;  %v733_v8 = vld [vmem:[%s1058_s1 + $0x60] sm:$0xff]   ;;  %v735_v10 = vld [vmem:[%s1058_s1 + $0x68] sm:$0xff]  }
   0x4   :  { %647 = vmatprep.subr.bf16.mxu0 %v727_v2  ;;  %710 = vmatprep.subr.bf16.mxu1 %v727_v2  ;;  %v732_v7 = vld [vmem:[%s1058_s1 + $0x18] sm:$0xff]   ;;  %v734_v9 = vld [vmem:[%s1058_s1 + $0x20] sm:$0xff]   ;;  %v736_v12 = vld [vmem:[%s1058_s1 + $0x28] sm:$0xff]  }
   0x5   :  { %v743_v11 = vld [vmem:[%s1059_s0 + $0x4] ss:$8 sps:$4 sm:$0xff]   ;;  %v737_v14 = vld [vmem:[%s1058_s1 + $0x70] sm:$0xff]   ;;  %v739_v16 = vld [vmem:[%s1058_s1 + $0x78] sm:$0xff]  }
   0x6   :  { %v749_v13 = vld [vmem:[%s1059_s0 + $0x44] ss:$8 sps:$4 sm:$0xff]   ;;  %284 = vmatprep.mubr.bf16.mxu0 %v743_v11  ;;  %v738_v15 = vld [vmem:[%s1058_s1 + $0x30] sm:$0xff]   ;;  %v740_v17 = vld [vmem:[%s1058_s1 + $0x38] sm:$0xff]  }
   0x7   :  { %648 = vmatpush3.bf16.msra.mxu0 %v728_v3  ;;  %718 = vmatpush3.bf16.msra.mxu1 %v728_v3  ;;  %v741_v18 = vld [vmem:[%s1059_s0] ss:$8 sps:$4 sm:$0xff]   ;;  %v744_v20 = vld [vmem:[%s1059_s0 + $0x14] ss:$8 sps:$4 sm:$0xff]   ;;  %v746_v22 = vld [vmem:[%s1059_s0 + $0x10] ss:$8 sps:$4 sm:$0xff]  }
   0x8   :  { %649 = vmatprep.subr.bf16.mxu0 %v729_v4  ;;  %711 = vmatprep.subr.bf16.mxu1 %v729_v4  ;;  %v747_v19 = vld [vmem:[%s1059_s0 + $0x40] ss:$8 sps:$4 sm:$0xff]   ;;  %v753_v21 = vld [vmem:[%s1059_s0 + $0x54] ss:$8 sps:$4 sm:$0xff]   ;;  %v755_v23 = vld [vmem:[%s1059_s0 + $0x50] ss:$8 sps:$4 sm:$0xff]  }
   0x9   :  { %316 = vmatprep.mubr.bf16.mxu1 %v749_v13  ;;  %v750_v24 = vld [vmem:[%s1059_s0 + $0x24] ss:$8 sps:$4 sm:$0xff]   ;;  %v752_v26 = vld [vmem:[%s1059_s0 + $0x20] ss:$8 sps:$4 sm:$0xff]   ;;  %v756_v28 = vld [vmem:[%s1059_s0 + $0x34] ss:$8 sps:$4 sm:$0xff]  }
   0xa   :  { %v759_v25 = vld [vmem:[%s1059_s0 + $0x64] ss:$8 sps:$4 sm:$0xff]   ;;  %v761_v27 = vld [vmem:[%s1059_s0 + $0x60] ss:$8 sps:$4 sm:$0xff]   ;;  %v762_v29 = vld [vmem:[%s1059_s0 + $0x74] ss:$8 sps:$4 sm:$0xff]  }
   0xb   :  { %650 = vmatpush3.bf16.msra.mxu0 %v730_v5  ;;  %719 = vmatpush3.bf16.msra.mxu1 %v730_v5  ;;  %v758_v30 = vld [vmem:[%s1059_s0 + $0x30] ss:$8 sps:$4 sm:$0xff]   ;;  %v898_v40 = vld [vmem:[%s1060_s2] ss:$0 sm:$0xff] }
   0xc   :  { %651 = vmatprep.subr.bf16.mxu0 %v731_v6  ;;  %712 = vmatprep.subr.bf16.mxu1 %v731_v6  ;;  %v764_v31 = vld [vmem:[%s1059_s0 + $0x70] ss:$8 sps:$4 sm:$0xff]  }
   0xf   :  { %652 = vmatpush3.bf16.msra.mxu0 %v732_v7  ;;  %720 = vmatpush3.bf16.msra.mxu1 %v732_v7 }
  0x10   :  { %653 = vmatprep.subr.bf16.mxu0 %v733_v8  ;;  %713 = vmatprep.subr.bf16.mxu1 %v733_v8 }
  0x13   :  { %654 = vmatpush3.bf16.msra.mxu0 %v734_v9  ;;  %721 = vmatpush3.bf16.msra.mxu1 %v734_v9 }
  0x14   :  { %655 = vmatprep.subr.bf16.mxu0 %v735_v10  ;;  %714 = vmatprep.subr.bf16.mxu1 %v735_v10 }
  0x17   :  { %656 = vmatpush3.bf16.msra.mxu0 %v736_v12  ;;  %722 = vmatpush3.bf16.msra.mxu1 %v736_v12 }
  0x18   :  { %657 = vmatprep.subr.bf16.mxu0 %v737_v14  ;;  %715 = vmatprep.subr.bf16.mxu1 %v737_v14 }
  0x1b   :  { %658 = vmatpush3.bf16.msra.mxu0 %v738_v15  ;;  %723 = vmatpush3.bf16.msra.mxu1 %v738_v15 }
  0x1c   :  { %659 = vmatprep.subr.bf16.mxu0 %v739_v16  ;;  %716 = vmatprep.subr.bf16.mxu1 %v739_v16 }
  0x1f   :  { %660 = vmatpush3.bf16.msra.mxu0 %v740_v17  ;;  %724 = vmatpush3.bf16.msra.mxu1 %v740_v17 }
  0x22   :  { %285 = vmatmul.mubr.bf16.vlgmr.msra.gmra.mrb[0].mxu0 %v741_v18  ;;  %317 = vmatmul.mubr.bf16.vlgmr.msra.gmra.mrb[0].mxu1 %v747_v19 }
  0x23   :  { %292 = vmatprep.mubr.bf16.mxu0 %v744_v20  ;;  %324 = vmatprep.mubr.bf16.mxu1 %v753_v21 }
  0x2a   :  { %293 = vmatmul.mubr.bf16.gmra.mrb[4].mxu0 %v746_v22  ;;  %325 = vmatmul.mubr.bf16.gmra.mrb[4].mxu1 %v755_v23 }
  0x2b   :  { %300 = vmatprep.mubr.bf16.mxu0 %v750_v24  ;;  %332 = vmatprep.mubr.bf16.mxu1 %v759_v25 }
  0x32   :  { %301 = vmatmul.mubr.bf16.gmra.mrb[8].mxu0 %v752_v26  ;;  %333 = vmatmul.mubr.bf16.gmra.mrb[8].mxu1 %v761_v27 }
  0x33   :  { %308 = vmatprep.mubr.bf16.mxu0 %v756_v28  ;;  %340 = vmatprep.mubr.bf16.mxu1 %v762_v29 }
  0x3a   :  { %309 = vmatmul.mubr.bf16.gmra.mrb[12].mxu0 %v758_v30  ;;  %341 = vmatmul.mubr.bf16.gmra.mrb[12].mxu1 %v764_v31 }
  0xf5   :  { %v661_v32 = vpop.f32.mrb[0].mxu0  ;;  %v685_v33 = vpop.f32.mrb[0].mxu1 }
  0xf6   :  { %v662_v34 = vpop.f32.mrb[1].mxu0  ;;  %v686_v35 = vpop.f32.mrb[1].mxu1 }
  0xf7   :  { %v663_v36 = vadd.f32 %v662_v34, %v661_v32  ;;  %v664_v37 = vpop.f32.mrb[2].mxu0  ;;  %v893_v38 = vadd.f32 %v686_v35, %v685_v33  ;;  %v688_v39 = vpop.f32.mrb[2].mxu1 }
  0xf8   :  { %v665_v41 = vpop.f32.mrb[3].mxu0  ;;  %v689_v42 = vpop.f32.mrb[3].mxu1 }
  0xf9   :  { %v666_v43 = vadd.f32 %v665_v41, %v664_v37  ;;  %v900_v44 = vadd.f32 %v689_v42, %v688_v39  ;;  %v287_v45 = vadd.f32 %v663_v36, %v898_v40  ;;  %v319_v34 = vadd.f32 %v893_v38, %v898_v40 }
  0xfb   :  { %v290_v46 = vadd.f32 %v666_v43, %v898_v40  ;;  %v365_v52 = vmul.f32 0.01, %v287_v45  ;;  %vm349_vm1 = vcmp.gt.f32.partialorder %v287_v45, 0.0  ;;  %vm357_vm7 = vcmp.gt.f32.partialorder %v319_v34, 0.0 }
  0xfd   :  { %v366_v47 = vmul.f32 0.01, %v290_v46  ;;  %v667_v48 = vpop.f32.mrb[4].mxu0  ;;  %v691_v49 = vpop.f32.mrb[4].mxu1  ;;  %vm350_vm0 = vcmp.gt.f32.partialorder %v290_v46, 0.0  ;;  %v911_v63 = vsel %vm349_vm1, %v287_v45, %v365_v52 }
  0xfe   :  { %v668_v50 = vpop.f32.mrb[5].mxu0  ;;  %v692_v51 = vpop.f32.mrb[5].mxu1  ;;  %v499_v7 = vmul.f32 %v911_v63, %v911_v63 }
  0xff   :  { %v669_v53 = vadd.f32 %v668_v50, %v667_v48  ;;  %v670_v54 = vpop.f32.mrb[6].mxu0  ;;  %v904_v55 = vadd.f32 %v692_v51, %v691_v49  ;;  %v694_v56 = vpop.f32.mrb[6].mxu1  ;;  %v906_v59 = vsel %vm350_vm0, %v290_v46, %v366_v47  ;;  %v322_v47 = vadd.f32 %v900_v44, %v898_v40 }
 0x100   :  { %v671_v57 = vpop.f32.mrb[7].mxu0  ;;  %v695_v58 = vpop.f32.mrb[7].mxu1  ;;  %v500_v2 = vmul.f32 %v906_v59, %v906_v59  ;;  %v478_v8 = vadd.f32 %v906_v59, %v911_v63 }
 0x101   :  { %v295_v60 = vadd.f32 %v669_v53, %v898_v40  ;;  %v672_v61 = vadd.f32 %v671_v57, %v670_v54  ;;  %v909_v62 = vadd.f32 %v695_v58, %v694_v56  ;;  %v373_v54 = vmul.f32 0.01, %v319_v34 }
 0x102   :  { %v515_v16 = vadd.f32 %v500_v2, %v499_v7  ;;  %v327_v58 = vadd.f32 %v904_v55, %v898_v40  ;;  %vm358_vm9 = vcmp.gt.f32.partialorder %v322_v47, 0.0 }
 0x103   :  { %vm351_vm2 = vcmp.gt.f32.partialorder %v295_v60, 0.0  ;;  %v367_v0 = vmul.f32 0.01, %v295_v60  ;;  %v298_v1 = vadd.f32 %v672_v61, %v898_v40  ;;  %v374_v61 = vmul.f32 0.01, %v322_v47 }
 0x104   :  { %v957_v55 = vsel %vm357_vm7, %v319_v34, %v373_v54  ;;  %vm359_vm10 = vcmp.gt.f32.partialorder %v327_v58, 0.0 }
 0x105   :  { %v916_v3 = vsel %vm351_vm2, %v295_v60, %v367_v0  ;;  %vm352_vm3 = vcmp.gt.f32.partialorder %v298_v1, 0.0  ;;  %v368_v4 = vmul.f32 0.01, %v298_v1  ;;  %v673_v5 = vpop.f32.mrb[8].mxu0  ;;  %v697_v6 = vpop.f32.mrb[8].mxu1  ;;  %v330_v0 = vadd.f32 %v909_v62, %v898_v40 }
 0x106   :  { %v501_v9 = vmul.f32 %v916_v3, %v916_v3  ;;  %v674_v10 = vpop.f32.mrb[9].mxu0  ;;  %v698_v11 = vpop.f32.mrb[9].mxu1  ;;  %v479_v17 = vadd.f32 %v478_v8, %v916_v3 }
 0x107   :  { %v924_v12 = vsel %vm352_vm3, %v298_v1, %v368_v4  ;;  %v675_v13 = vadd.f32 %v674_v10, %v673_v5  ;;  %v676_v14 = vpop.f32.mrb[10].mxu0  ;;  %v700_v15 = vpop.f32.mrb[10].mxu1  ;;  %v699_v19 = vadd.f32 %v698_v11, %v697_v6  ;;  %v375_v6 = vmul.f32 0.01, %v327_v58 }
 0x108   :  { %v677_v18 = vpop.f32.mrb[11].mxu0  ;;  %v701_v20 = vpop.f32.mrb[11].mxu1  ;;  %v516_v24 = vadd.f32 %v515_v16, %v501_v9  ;;  %v502_v25 = vmul.f32 %v924_v12, %v924_v12  ;;  %v480_v28 = vadd.f32 %v479_v17, %v924_v12  ;;  %v965_v11 = vsel %vm358_vm9, %v322_v47, %v374_v61 }
 0x109   :  { %v303_v21 = vadd.f32 %v675_v13, %v898_v40  ;;  %v678_v22 = vadd.f32 %v677_v18, %v676_v14  ;;  %v702_v23 = vadd.f32 %v701_v20, %v700_v15  ;;  %v335_v8 = vadd.f32 %v699_v19, %v898_v40 }
 0x10a   :  { %v517_v33 = vadd.f32 %v516_v24, %v502_v25  ;;  %v376_v13 = vmul.f32 0.01, %v330_v0  ;;  %v507_v15 = vmul.f32 %v957_v55, %v957_v55  ;;  %vm360_vm11 = vcmp.gt.f32.partialorder %v330_v0, 0.0 }
 0x10b   :  { %vm353_vm4 = vcmp.gt.f32.partialorder %v303_v21, 0.0  ;;  %v369_v26 = vmul.f32 0.01, %v303_v21  ;;  %v306_v27 = vadd.f32 %v678_v22, %v898_v40  ;;  %v338_v14 = vadd.f32 %v702_v23, %v898_v40 }
 0x10c   :  { %v971_v18 = vsel %vm359_vm10, %v327_v58, %v375_v6  ;;  %v377_v19 = vmul.f32 0.01, %v335_v8  ;;  %vm361_vm12 = vcmp.gt.f32.partialorder %v335_v8, 0.0  ;;  %v977_v23 = vsel %vm360_vm11, %v330_v0, %v376_v13 }
 0x10d   :  { %v932_v29 = vsel %vm353_vm4, %v303_v21, %v369_v26  ;;  %vm354_vm5 = vcmp.gt.f32.partialorder %v306_v27, 0.0  ;;  %v370_v30 = vmul.f32 0.01, %v306_v27  ;;  %v679_v31 = vpop.f32.mrb[12].mxu0  ;;  %v703_v32 = vpop.f32.mrb[12].mxu1  ;;  %v508_v21 = vmul.f32 %v965_v11, %v965_v11 }
 0x10e   :  { %v481_v35 = vadd.f32 %v480_v28, %v932_v29  ;;  %v503_v36 = vmul.f32 %v932_v29, %v932_v29  ;;  %v680_v37 = vpop.f32.mrb[13].mxu0  ;;  %v704_v39 = vpop.f32.mrb[13].mxu1  ;;  %v378_v25 = vmul.f32 0.01, %v338_v14  ;;  %vm362_vm13 = vcmp.gt.f32.partialorder %v338_v14, 0.0 }
 0x10f   :  { %v939_v41 = vsel %vm354_vm5, %v306_v27, %v370_v30  ;;  %v681_v42 = vadd.f32 %v680_v37, %v679_v31  ;;  %v682_v43 = vpop.f32.mrb[14].mxu0  ;;  %v705_v45 = vadd.f32 %v704_v39, %v703_v32  ;;  %v706_v46 = vpop.f32.mrb[14].mxu1  ;;  %v509_v27 = vmul.f32 %v971_v18, %v971_v18 }
 0x110   :  { %v518_v48 = vadd.f32 %v517_v33, %v503_v36  ;;  %v482_v49 = vadd.f32 %v481_v35, %v939_v41  ;;  %v504_v38 = vmul.f32 %v939_v41, %v939_v41  ;;  %v683_v50 = vpop.f32.mrb[15].mxu0  ;;  %v707_v51 = vpop.f32.mrb[15].mxu1  ;;  %v983_v31 = vsel %vm361_vm12, %v335_v8, %v377_v19  ;;  %v541_v19 = vld [vmem:[%s1061_s3] sm:$0x1] }
 0x111   :  { %v311_v52 = vadd.f32 %v681_v42, %v898_v40  ;;  %v684_v53 = vadd.f32 %v683_v50, %v682_v43  ;;  %v708_v57 = vadd.f32 %v707_v51, %v706_v46  ;;  %v343_v20 = vadd.f32 %v705_v45, %v898_v40 }
 0x112   :  { %v519_v56 = vadd.f32 %v518_v48, %v504_v38  ;;  %v510_v33 = vmul.f32 %v977_v23, %v977_v23  ;;  %v394_v36 = vsel %vm362_vm13, %v338_v14, %v378_v25  ;;  %v511_v39 = vmul.f32 %v983_v31, %v983_v31 }
 0x113   :  { %vm355_vm6 = vcmp.gt.f32.partialorder %v311_v52, 0.0  ;;  %v371_v60 = vmul.f32 0.01, %v311_v52  ;;  %v314_v44 = vadd.f32 %v684_v53, %v898_v40  ;;  %v346_v26 = vadd.f32 %v708_v57, %v898_v40 }
 0x114   :  { %v379_v32 = vmul.f32 0.01, %v343_v20  ;;  %vm363_vm14 = vcmp.gt.f32.partialorder %v343_v20, 0.0  ;;  %v512_v47 = vmul.f32 %v394_v36, %v394_v36 }
 0x115   :  { %v952_v1 = vsel %vm355_vm6, %v311_v52, %v371_v60  ;;  %vm356_vm8 = vcmp.gt.f32.partialorder %v314_v44, 0.0  ;;  %v372_v2 = vmul.f32 0.01, %v314_v44  ;;  %v380_v37 = vmul.f32 0.01, %v346_v26 }
 0x116   :  { %v483_v4 = vadd.f32 %v482_v49, %v952_v1  ;;  %v505_v5 = vmul.f32 %v952_v1, %v952_v1  ;;  %vm364_vm15 = vcmp.gt.f32.partialorder %v346_v26, 0.0  ;;  %v395_v43 = vsel %vm363_vm14, %v343_v20, %v379_v32 }
 0x117   :  { %v959_v7 = vsel %vm356_vm8, %v314_v44, %v372_v2  ;;  %v396_v48 = vsel %vm364_vm15, %v346_v26, %v380_v37  ;;  %v513_v50 = vmul.f32 %v395_v43, %v395_v43 }
 0x118   :  { %v520_v9 = vadd.f32 %v519_v56, %v505_v5  ;;  %v484_v62 = vadd.f32 %v483_v4, %v959_v7  ;;  %v506_v10 = vmul.f32 %v959_v7, %v959_v7  ;;  %v514_v53 = vmul.f32 %v396_v48, %v396_v48 }
 0x11a   :  { %v485_v16 = vadd.f32 %v484_v62, %v957_v55  ;;  %v521_v17 = vadd.f32 %v520_v9, %v506_v10 }
 0x11c   :  { %v486_v22 = vadd.f32 %v485_v16, %v965_v11  ;;  %v522_v24 = vadd.f32 %v521_v17, %v507_v15  ;;  %v549_v16 = vlaneseq }
 0x11e   :  { %v523_v28 = vadd.f32 %v522_v24, %v508_v21  ;;  %v487_v30 = vadd.f32 %v486_v22, %v971_v18  ;;  %v550_v17 = vshrl.u32 %v549_v16, 7  ;;  %v545_v24 = vld [vmem:[%s1062_s4] sm:$0x1] }
 0x120   :  { %v488_v34 = vadd.f32 %v487_v30, %v977_v23  ;;  %v524_v35 = vadd.f32 %v523_v28, %v509_v27  ;;  %v551_v20 = vsub.s32 0, %v550_v17 }
 0x122   :  { %v489_v40 = vadd.f32 %v488_v34, %v983_v31  ;;  %v525_v42 = vadd.f32 %v524_v35, %v510_v33 }
 0x124   :  { %v526_v45 = vadd.f32 %v525_v42, %v511_v39  ;;  %v490_v46 = vadd.f32 %v489_v40, %v394_v36 }
 0x126   :  { %v527_v49 = vadd.f32 %v526_v45, %v512_v47  ;;  %v491_v38 = vadd.f32 %v490_v46, %v395_v43 }
 0x128   :  { %v528_v51 = vadd.f32 %v527_v49, %v513_v50  ;;  %v492_v52 = vadd.f32 %v491_v38, %v396_v48 }
 0x12a   :  { %v493_v54 = vrot.slane %v492_v52, 4  ;;  %v529_v56 = vadd.f32 %v528_v51, %v514_v53 }
 0x12c   :  { %v494_v57 = vadd.f32 %v493_v54, %v492_v52  ;;  %v530_v58 = vrot.slane %v529_v56, 4 }
 0x12e   :  { %v495_v60 = vrot.slane %v494_v57, 2  ;;  %v531_v44 = vadd.f32 %v530_v58, %v529_v56 }
 0x130   :  { %v496_v61 = vadd.f32 %v495_v60, %v494_v57  ;;  %v532_v0 = vrot.slane %v531_v44, 2 }
 0x132   :  { %v497_v2 = vrot.slane %v496_v61, 1  ;;  %v533_v4 = vadd.f32 %v532_v0, %v531_v44 }
 0x134   :  { %v498_v5 = vadd.f32 %v497_v2, %v496_v61  ;;  %v534_v6 = vrot.slane %v533_v4, 1 }
 0x136   :  { %v535_v8 = vadd.f32 %v534_v6, %v533_v4  ;;  %v536_v9 = vmul.f32 0.0078125, %v498_v5 }
 0x138   :  { %v537_v62 = vmul.f32 0.0078125, %v535_v8  ;;  %v538_v10 = vmul.f32 %v536_v9, %v536_v9 }
 0x13a   :  { %v539_v13 = vsub.f32 %v537_v62, %v538_v10 }
 0x13c   :  { %v540_v14 = vmax.f32 %v539_v13, 0.0 }
 0x13e   :  { %v542_v15 = vadd.f32 1e-05, %v540_v14 }
 0x140   :  { %765 = vrsqrt.f32 %v542_v15 }
 0x14a   :  { %v766_v21 = vpop.eup %765 }
 0x14b   :  { %v544_v22 = vmul.f32 %v766_v21, %v541_v19 }
 0x14d   :  { %v546_v25 = vmul.f32 %v544_v22, %v536_v9  ;;  %v552_v26 = vrot.slane %v544_v22, %v551_v20 }
 0x14f   :  { %v547_v27 = vsub.f32 %v545_v24, %v546_v25  ;;  %v554_v28 = vmul.f32 %v552_v26, %v911_v63  ;;  %v555_v30 = vmul.f32 %v552_v26, %v906_v59  ;;  %v558_v32 = vmul.f32 %v552_v26, %v932_v29 }
 0x150   :  { %v559_v33 = vmul.f32 %v552_v26, %v939_v41  ;;  %v560_v34 = vmul.f32 %v552_v26, %v952_v1  ;;  %v561_v35 = vmul.f32 %v552_v26, %v959_v7  ;;  %v562_v37 = vmul.f32 %v552_v26, %v957_v55 }
 0x151   :  { %v563_v40 = vmul.f32 %v552_v26, %v965_v11  ;;  %v564_v39 = vmul.f32 %v552_v26, %v971_v18  ;;  %v565_v42 = vmul.f32 %v552_v26, %v977_v23  ;;  %v566_v63 = vmul.f32 %v552_v26, %v983_v31 }
 0x152   :  { %v567_v45 = vmul.f32 %v552_v26, %v394_v36  ;;  %v568_v59 = vmul.f32 %v552_v26, %v395_v43  ;;  %v556_v29 = vmul.f32 %v552_v26, %v916_v3  ;;  %v557_v41 = vmul.f32 %v552_v26, %v924_v12 }
 0x153   :  { %v569_v46 = vmul.f32 %v552_v26, %v396_v48  ;;  %v574_v1 = vrot.slane %v547_v27, %v551_v20 }
 0x155   :  { %v576_v47 = vadd.f32 %v574_v1, %v554_v28  ;;  %v577_v7 = vadd.f32 %v574_v1, %v555_v30  ;;  %v578_v49 = vadd.f32 %v574_v1, %v556_v29  ;;  %v579_v55 = vadd.f32 %v574_v1, %v557_v41 }
 0x156   :  { %v580_v38 = vadd.f32 %v574_v1, %v558_v32  ;;  %v581_v11 = vadd.f32 %v574_v1, %v559_v33  ;;  %v582_v50 = vadd.f32 %v574_v1, %v560_v34  ;;  %v583_v18 = vadd.f32 %v574_v1, %v561_v35 }
 0x157   :  { %v584_v51 = vadd.f32 %v574_v1, %v562_v37  ;;  %v585_v23 = vadd.f32 %v574_v1, %v563_v40  ;;  %v586_v52 = vadd.f32 %v574_v1, %v564_v39  ;;  %v587_v31 = vadd.f32 %v574_v1, %v565_v42  ;;  %592 = vst [vmem:[%s1063_s5] sm:$0xff] %v576_v47 }
 0x158   :  { %593 = vst [vmem:[%s1063_s5 + $0x8] sm:$0xff] %v577_v7  ;;  %594 = vst [vmem:[%s1063_s5 + $0x10] sm:$0xff] %v578_v49  ;;  %v588_v3 = vadd.f32 %v574_v1, %v566_v63  ;;  %v589_v12 = vadd.f32 %v574_v1, %v567_v45  ;;  %v590_v36 = vadd.f32 %v574_v1, %v568_v59 }
 0x159   :  { %595 = vst [vmem:[%s1063_s5 + $0x18] sm:$0xff] %v579_v55  ;;  %v591_v43 = vadd.f32 %v574_v1, %v569_v46  ;;  %596 = vst [vmem:[%s1063_s5 + $0x20] sm:$0xff] %v580_v38 }
 0x15a   :  { %597 = vst [vmem:[%s1063_s5 + $0x28] sm:$0xff] %v581_v11  ;;  %598 = vst [vmem:[%s1063_s5 + $0x30] sm:$0xff] %v582_v50 }
 0x15b   :  { %599 = vst [vmem:[%s1063_s5 + $0x38] sm:$0xff] %v583_v18  ;;  %600 = vst [vmem:[%s1063_s5 + $0x40] sm:$0xff] %v584_v51 }
 0x15c   :  { %601 = vst [vmem:[%s1063_s5 + $0x48] sm:$0xff] %v585_v23  ;;  %602 = vst [vmem:[%s1063_s5 + $0x50] sm:$0xff] %v586_v52 }
 0x15d   :  { %603 = vst [vmem:[%s1063_s5 + $0x58] sm:$0xff] %v587_v31  ;;  %604 = vst [vmem:[%s1063_s5 + $0x60] sm:$0xff] %v588_v3 }
 0x15e   :  { %605 = vst [vmem:[%s1063_s5 + $0x68] sm:$0xff] %v589_v12  ;;  %606 = vst [vmem:[%s1063_s5 + $0x70] sm:$0xff] %v590_v36 }
 0x15f   :  { %607 = vst [vmem:[%s1063_s5 + $0x78] sm:$0xff] %v591_v43 }

// kernel: _lambda_.8
= control target key start
LH: loop header
LB: loop body
LE: loop exit
PB: predicated region body
PF: predicated region fallthrough
CT: control target
= control target key end

     0   :  { %s1475_s1 = inlined_call_operand.vmem [shape: bf16[512,128], index: 1, kind: input, shape index: {}]   ;;  %s1476_s0 = inlined_call_operand.vmem [shape: bf16[112,512], index: 0, kind: input, shape index: {}]   ;;  %s1477_s2 = inlined_call_operand.vmem [shape: f32[1,128], index: 2, kind: input, shape index: {}]   ;;  %s1478_s3 = inlined_call_operand.vmem [shape: f32[1,128], index: 3, kind: input, shape index: {}]   ;;  %s1479_s4 = inlined_call_operand.vmem [shape: f32[1,128], index: 4, kind: input, shape index: {}]   ;;  %s1480_s5 = inlined_call_operand.vmem [shape: f32[112,128], index: 5, kind: output, shape index: {}]  }
   0x1   :  { %v1044_v0 = vld [vmem:[%s1475_s1 + $0x40] sm:$0xff]   ;;  %v1048_v4 = vld [vmem:[%s1475_s1 + $0x48] sm:$0xff]   ;;  %v1052_v8 = vld [vmem:[%s1475_s1 + $0x50] sm:$0xff]  }
   0x2   :  { %v1045_v1 = vld [vmem:[%s1475_s1 + $0xc0] sm:$0xff]   ;;  %927 = vmatprep.subr.bf16.mxu0 %v1044_v0  ;;  %v1049_v5 = vld [vmem:[%s1475_s1 + $0xc8] sm:$0xff]   ;;  %v1053_v9 = vld [vmem:[%s1475_s1 + $0xd0] sm:$0xff]  }
   0x3   :  { %v1046_v2 = vld [vmem:[%s1475_s1] sm:$0xff]   ;;  %985 = vmatprep.subr.bf16.mxu1 %v1045_v1  ;;  %v1050_v6 = vld [vmem:[%s1475_s1 + $0x8] sm:$0xff]   ;;  %v1054_v10 = vld [vmem:[%s1475_s1 + $0x10] sm:$0xff]  }
   0x4   :  { %v1047_v3 = vld [vmem:[%s1475_s1 + $0x80] sm:$0xff]   ;;  %928 = vmatpush3.bf16.msra.mxu0 %v1046_v2  ;;  %v1051_v7 = vld [vmem:[%s1475_s1 + $0x88] sm:$0xff]   ;;  %v1055_v11 = vld [vmem:[%s1475_s1 + $0x90] sm:$0xff]  }
   0x5   :  { %986 = vmatpush3.bf16.msra.mxu1 %v1047_v3  ;;  %929 = vmatprep.subr.bf16.mxu0 %v1048_v4  ;;  %v1056_v12 = vld [vmem:[%s1475_s1 + $0x58] sm:$0xff]   ;;  %v1060_v16 = vld [vmem:[%s1475_s1 + $0x60] sm:$0xff]   ;;  %v1064_v20 = vld [vmem:[%s1475_s1 + $0x68] sm:$0xff]  }
   0x6   :  { %987 = vmatprep.subr.bf16.mxu1 %v1049_v5  ;;  %v1057_v13 = vld [vmem:[%s1475_s1 + $0xd8] sm:$0xff]   ;;  %v1061_v17 = vld [vmem:[%s1475_s1 + $0xe0] sm:$0xff]   ;;  %v1065_v21 = vld [vmem:[%s1475_s1 + $0xe8] sm:$0xff]  }
   0x7   :  { %v1058_v14 = vld [vmem:[%s1475_s1 + $0x18] sm:$0xff]   ;;  %v1062_v18 = vld [vmem:[%s1475_s1 + $0x20] sm:$0xff]   ;;  %v1066_v22 = vld [vmem:[%s1475_s1 + $0x28] sm:$0xff]  }
   0x8   :  { %930 = vmatpush3.bf16.msra.mxu0 %v1050_v6  ;;  %v1059_v15 = vld [vmem:[%s1475_s1 + $0x98] sm:$0xff]   ;;  %v1063_v19 = vld [vmem:[%s1475_s1 + $0xa0] sm:$0xff]   ;;  %v1067_v23 = vld [vmem:[%s1475_s1 + $0xa8] sm:$0xff]  }
   0x9   :  { %988 = vmatpush3.bf16.msra.mxu1 %v1051_v7  ;;  %931 = vmatprep.subr.bf16.mxu0 %v1052_v8  ;;  %v1068_v24 = vld [vmem:[%s1475_s1 + $0x70] sm:$0xff]   ;;  %v1072_v28 = vld [vmem:[%s1475_s1 + $0x78] sm:$0xff]   ;;  %v1334_v62 = vld [vmem:[%s1477_s2] ss:$0 sm:$0xff] }
   0xa   :  { %989 = vmatprep.subr.bf16.mxu1 %v1053_v9  ;;  %v1069_v25 = vld [vmem:[%s1475_s1 + $0xf0] sm:$0xff]   ;;  %v1073_v29 = vld [vmem:[%s1475_s1 + $0xf8] sm:$0xff]  }
   0xb   :  { %v1070_v26 = vld [vmem:[%s1475_s1 + $0x30] sm:$0xff]   ;;  %v1074_v30 = vld [vmem:[%s1475_s1 + $0x38] sm:$0xff]  }
   0xc   :  { %932 = vmatpush3.bf16.msra.mxu0 %v1054_v10  ;;  %v1071_v27 = vld [vmem:[%s1475_s1 + $0xb0] sm:$0xff]   ;;  %v1075_v31 = vld [vmem:[%s1475_s1 + $0xb8] sm:$0xff]  }
   0xd   :  { %990 = vmatpush3.bf16.msra.mxu1 %v1055_v11  ;;  %933 = vmatprep.subr.bf16.mxu0 %v1056_v12  ;;  %v1076_v32 = vld [vmem:[%s1476_s0] ss:$16 sps:$4 sm:$0xff]   ;;  %v1078_v33 = vld [vmem:[%s1476_s0 + $0x4] ss:$16 sps:$4 sm:$0xff]   ;;  %v1079_v34 = vld [vmem:[%s1476_s0 + $0x8] ss:$16 sps:$4 sm:$0xff]  }
   0xe   :  { %991 = vmatprep.subr.bf16.mxu1 %v1057_v13  ;;  %v1081_v35 = vld [vmem:[%s1476_s0 + $0xc] ss:$16 sps:$4 sm:$0xff]   ;;  %484 = vmatprep.mubr.bf16.mxu0 %v1078_v33  ;;  %v1082_v36 = vld [vmem:[%s1476_s0 + $0x24] ss:$16 sps:$4 sm:$0xff]   ;;  %v1086_v38 = vld [vmem:[%s1476_s0 + $0x20] ss:$16 sps:$4 sm:$0xff]  }
   0xf   :  { %573 = vmatprep.mubr.bf16.mxu1 %v1081_v35  ;;  %v1084_v37 = vld [vmem:[%s1476_s0 + $0x2c] ss:$16 sps:$4 sm:$0xff]   ;;  %v1087_v39 = vld [vmem:[%s1476_s0 + $0x28] ss:$16 sps:$4 sm:$0xff]   ;;  %v1088_v40 = vld [vmem:[%s1476_s0 + $0x44] ss:$16 sps:$4 sm:$0xff]  }
  0x10   :  { %934 = vmatpush3.bf16.msra.mxu0 %v1058_v14  ;;  %v1090_v41 = vld [vmem:[%s1476_s0 + $0x4c] ss:$16 sps:$4 sm:$0xff]   ;;  %v1092_v42 = vld [vmem:[%s1476_s0 + $0x40] ss:$16 sps:$4 sm:$0xff]   ;;  %v1093_v43 = vld [vmem:[%s1476_s0 + $0x48] ss:$16 sps:$4 sm:$0xff]  }
  0x11   :  { %992 = vmatpush3.bf16.msra.mxu1 %v1059_v15  ;;  %935 = vmatprep.subr.bf16.mxu0 %v1060_v16  ;;  %v1094_v44 = vld [vmem:[%s1476_s0 + $0x64] ss:$16 sps:$4 sm:$0xff]   ;;  %v1096_v45 = vld [vmem:[%s1476_s0 + $0x6c] ss:$16 sps:$4 sm:$0xff]   ;;  %v1098_v46 = vld [vmem:[%s1476_s0 + $0x60] ss:$16 sps:$4 sm:$0xff]  }
  0x12   :  { %993 = vmatprep.subr.bf16.mxu1 %v1061_v17  ;;  %v1099_v47 = vld [vmem:[%s1476_s0 + $0x68] ss:$16 sps:$4 sm:$0xff]   ;;  %v1100_v48 = vld [vmem:[%s1476_s0 + $0x84] ss:$16 sps:$4 sm:$0xff]   ;;  %v1102_v49 = vld [vmem:[%s1476_s0 + $0x8c] ss:$16 sps:$4 sm:$0xff]  }
  0x13   :  { %v1104_v50 = vld [vmem:[%s1476_s0 + $0x80] ss:$16 sps:$4 sm:$0xff]   ;;  %v1105_v51 = vld [vmem:[%s1476_s0 + $0x88] ss:$16 sps:$4 sm:$0xff]   ;;  %v1106_v52 = vld [vmem:[%s1476_s0 + $0xa4] ss:$16 sps:$4 sm:$0xff]  }
  0x14   :  { %936 = vmatpush3.bf16.msra.mxu0 %v1062_v18  ;;  %v1108_v53 = vld [vmem:[%s1476_s0 + $0xac] ss:$16 sps:$4 sm:$0xff]   ;;  %v1110_v54 = vld [vmem:[%s1476_s0 + $0xa0] ss:$16 sps:$4 sm:$0xff]   ;;  %v1111_v55 = vld [vmem:[%s1476_s0 + $0xa8] ss:$16 sps:$4 sm:$0xff]  }
  0x15   :  { %994 = vmatpush3.bf16.msra.mxu1 %v1063_v19  ;;  %937 = vmatprep.subr.bf16.mxu0 %v1064_v20  ;;  %v1112_v56 = vld [vmem:[%s1476_s0 + $0xc4] ss:$16 sps:$4 sm:$0xff]   ;;  %v1114_v57 = vld [vmem:[%s1476_s0 + $0xcc] ss:$16 sps:$4 sm:$0xff]   ;;  %v1116_v58 = vld [vmem:[%s1476_s0 + $0xc0] ss:$16 sps:$4 sm:$0xff]  }
  0x16   :  { %995 = vmatprep.subr.bf16.mxu1 %v1065_v21  ;;  %v1117_v59 = vld [vmem:[%s1476_s0 + $0xc8] ss:$16 sps:$4 sm:$0xff]  }
  0x18   :  { %938 = vmatpush3.bf16.msra.mxu0 %v1066_v22 }
  0x19   :  { %996 = vmatpush3.bf16.msra.mxu1 %v1067_v23  ;;  %939 = vmatprep.subr.bf16.mxu0 %v1068_v24 }
  0x1a   :  { %997 = vmatprep.subr.bf16.mxu1 %v1069_v25 }
  0x1c   :  { %940 = vmatpush3.bf16.msra.mxu0 %v1070_v26 }
  0x1d   :  { %998 = vmatpush3.bf16.msra.mxu1 %v1071_v27  ;;  %941 = vmatprep.subr.bf16.mxu0 %v1072_v28 }
  0x1e   :  { %999 = vmatprep.subr.bf16.mxu1 %v1073_v29 }
  0x20   :  { %942 = vmatpush3.bf16.msra.mxu0 %v1074_v30 }
  0x21   :  { %1000 = vmatpush3.bf16.msra.mxu1 %v1075_v31 }
  0x23   :  { %485 = vmatmul.mubr.bf16.vlgmr.msra.gmra.mrb[0].mxu0 %v1076_v32 }
  0x24   :  { %574 = vmatmul.mubr.bf16.vlgmr.msra.gmra.mrb[0].mxu1 %v1079_v34  ;;  %492 = vmatprep.mubr.bf16.mxu0 %v1082_v36 }
  0x25   :  { %581 = vmatprep.mubr.bf16.mxu1 %v1084_v37 }
  0x2b   :  { %493 = vmatmul.mubr.bf16.gmra.mrb[4].mxu0 %v1086_v38 }
  0x2c   :  { %582 = vmatmul.mubr.bf16.gmra.mrb[4].mxu1 %v1087_v39  ;;  %500 = vmatprep.mubr.bf16.mxu0 %v1088_v40 }
  0x2d   :  { %589 = vmatprep.mubr.bf16.mxu1 %v1090_v41 }
  0x33   :  { %501 = vmatmul.mubr.bf16.gmra.mrb[8].mxu0 %v1092_v42 }
  0x34   :  { %590 = vmatmul.mubr.bf16.gmra.mrb[8].mxu1 %v1093_v43  ;;  %508 = vmatprep.mubr.bf16.mxu0 %v1094_v44 }
  0x35   :  { %597 = vmatprep.mubr.bf16.mxu1 %v1096_v45 }
  0x3b   :  { %509 = vmatmul.mubr.bf16.gmra.mrb[12].mxu0 %v1098_v46 }
  0x3c   :  { %598 = vmatmul.mubr.bf16.gmra.mrb[12].mxu1 %v1099_v47  ;;  %516 = vmatprep.mubr.bf16.mxu0 %v1100_v48 }
  0x3d   :  { %605 = vmatprep.mubr.bf16.mxu1 %v1102_v49 }
  0x43   :  { %517 = vmatmul.mubr.bf16.gmra.mrb[16].mxu0 %v1104_v50 }
  0x44   :  { %606 = vmatmul.mubr.bf16.gmra.mrb[16].mxu1 %v1105_v51  ;;  %524 = vmatprep.mubr.bf16.mxu0 %v1106_v52 }
  0x45   :  { %613 = vmatprep.mubr.bf16.mxu1 %v1108_v53 }
  0x4b   :  { %525 = vmatmul.mubr.bf16.gmra.mrb[20].mxu0 %v1110_v54 }
  0x4c   :  { %614 = vmatmul.mubr.bf16.gmra.mrb[20].mxu1 %v1111_v55  ;;  %532 = vmatprep.mubr.bf16.mxu0 %v1112_v56 }
  0x4d   :  { %621 = vmatprep.mubr.bf16.mxu1 %v1114_v57 }
  0x53   :  { %533 = vmatmul.mubr.bf16.gmra.mrb[24].mxu0 %v1116_v58 }
  0x54   :  { %622 = vmatmul.mubr.bf16.gmra.mrb[24].mxu1 %v1117_v59 }
  0xf6   :  { %v943_v60 = vpop.f32.mrb[0].mxu0 }
  0xf7   :  { %v1001_v61 = vpop.f32.mrb[0].mxu1  ;;  %v944_v63 = vpop.f32.mrb[1].mxu0 }
  0xf8   :  { %v945_v0 = vadd.f32 %v944_v63, %v943_v60  ;;  %v1002_v1 = vpop.f32.mrb[1].mxu1  ;;  %v946_v2 = vpop.f32.mrb[2].mxu0 }
  0xf9   :  { %v1003_v3 = vadd.f32 %v1002_v1, %v1001_v61  ;;  %v1004_v4 = vpop.f32.mrb[2].mxu1  ;;  %v947_v5 = vpop.f32.mrb[3].mxu0 }
  0xfa   :  { %v487_v6 = vadd.f32 %v945_v0, %v1334_v62  ;;  %v948_v7 = vadd.f32 %v947_v5, %v946_v2  ;;  %v1005_v8 = vpop.f32.mrb[3].mxu1 }
  0xfb   :  { %v1006_v9 = vadd.f32 %v1005_v8, %v1004_v4 }
  0xfc   :  { %v576_v10 = vadd.f32 %v1003_v3, %v487_v6  ;;  %v490_v11 = vadd.f32 %v948_v7, %v1334_v62 }
  0xfe   :  { %v579_v12 = vadd.f32 %v1006_v9, %v490_v11  ;;  %v949_v13 = vpop.f32.mrb[4].mxu0  ;;  %v644_v14 = vmul.f32 0.01, %v576_v10  ;;  %vm630_vm1 = vcmp.gt.f32.partialorder %v576_v10, 0.0 }
  0xff   :  { %v1007_v15 = vpop.f32.mrb[4].mxu1  ;;  %v950_v16 = vpop.f32.mrb[5].mxu0 }
 0x100   :  { %vm631_vm0 = vcmp.gt.f32.partialorder %v579_v12, 0.0  ;;  %v645_v17 = vmul.f32 0.01, %v579_v12  ;;  %v951_v18 = vadd.f32 %v950_v16, %v949_v13  ;;  %v1008_v19 = vpop.f32.mrb[5].mxu1  ;;  %v952_v20 = vpop.f32.mrb[6].mxu0  ;;  %v1341_v29 = vsel %vm630_vm1, %v576_v10, %v644_v14 }
 0x101   :  { %v1009_v21 = vadd.f32 %v1008_v19, %v1007_v15  ;;  %v1010_v22 = vpop.f32.mrb[6].mxu1  ;;  %v953_v23 = vpop.f32.mrb[7].mxu0  ;;  %v762_v36 = vmul.f32 %v1341_v29, %v1341_v29 }
 0x102   :  { %v1338_v24 = vsel %vm631_vm0, %v579_v12, %v645_v17  ;;  %v495_v25 = vadd.f32 %v951_v18, %v1334_v62  ;;  %v954_v26 = vadd.f32 %v953_v23, %v952_v20  ;;  %v1011_v27 = vpop.f32.mrb[7].mxu1 }
 0x103   :  { %v1012_v28 = vadd.f32 %v1011_v27, %v1010_v22  ;;  %v763_v32 = vmul.f32 %v1338_v24, %v1338_v24  ;;  %v743_v37 = vadd.f32 %v1338_v24, %v1341_v29 }
 0x104   :  { %v584_v30 = vadd.f32 %v1009_v21, %v495_v25  ;;  %v498_v31 = vadd.f32 %v954_v26, %v1334_v62 }
 0x105   :  { %v776_v45 = vadd.f32 %v763_v32, %v762_v36 }
 0x106   :  { %vm632_vm2 = vcmp.gt.f32.partialorder %v584_v30, 0.0  ;;  %v646_v33 = vmul.f32 0.01, %v584_v30  ;;  %v587_v34 = vadd.f32 %v1012_v28, %v498_v31  ;;  %v955_v35 = vpop.f32.mrb[8].mxu0 }
 0x107   :  { %v1013_v38 = vpop.f32.mrb[8].mxu1  ;;  %v956_v39 = vpop.f32.mrb[9].mxu0 }
 0x108   :  { %v1350_v40 = vsel %vm632_vm2, %v584_v30, %v646_v33  ;;  %vm633_vm3 = vcmp.gt.f32.partialorder %v587_v34, 0.0  ;;  %v647_v41 = vmul.f32 0.01, %v587_v34  ;;  %v957_v42 = vadd.f32 %v956_v39, %v955_v35  ;;  %v1014_v43 = vpop.f32.mrb[9].mxu1  ;;  %v958_v44 = vpop.f32.mrb[10].mxu0 }
 0x109   :  { %v744_v46 = vadd.f32 %v743_v37, %v1350_v40  ;;  %v764_v47 = vmul.f32 %v1350_v40, %v1350_v40  ;;  %v1015_v48 = vadd.f32 %v1014_v43, %v1013_v38  ;;  %v1016_v49 = vpop.f32.mrb[10].mxu1  ;;  %v959_v50 = vpop.f32.mrb[11].mxu0 }
 0x10a   :  { %v1355_v51 = vsel %vm633_vm3, %v587_v34, %v647_v41  ;;  %v503_v52 = vadd.f32 %v957_v42, %v1334_v62  ;;  %v960_v53 = vadd.f32 %v959_v50, %v958_v44  ;;  %v1017_v54 = vpop.f32.mrb[11].mxu1 }
 0x10b   :  { %v777_v55 = vadd.f32 %v776_v45, %v764_v47  ;;  %v745_v56 = vadd.f32 %v744_v46, %v1355_v51  ;;  %v765_v57 = vmul.f32 %v1355_v51, %v1355_v51  ;;  %v1018_v58 = vadd.f32 %v1017_v54, %v1016_v49 }
 0x10c   :  { %v592_v59 = vadd.f32 %v1015_v48, %v503_v52  ;;  %v506_v60 = vadd.f32 %v960_v53, %v1334_v62 }
 0x10d   :  { %v778_v61 = vadd.f32 %v777_v55, %v765_v57  ;;  %v672_v55 = vlaneseq }
 0x10e   :  { %vm634_vm4 = vcmp.gt.f32.partialorder %v592_v59, 0.0  ;;  %v648_v63 = vmul.f32 0.01, %v592_v59  ;;  %v595_v0 = vadd.f32 %v1018_v58, %v506_v60  ;;  %v961_v1 = vpop.f32.mrb[12].mxu0 }
 0x10f   :  { %v1019_v2 = vpop.f32.mrb[12].mxu1  ;;  %v962_v3 = vpop.f32.mrb[13].mxu0 }
 0x110   :  { %v1362_v4 = vsel %vm634_vm4, %v592_v59, %v648_v63  ;;  %vm635_vm5 = vcmp.gt.f32.partialorder %v595_v0, 0.0  ;;  %v649_v5 = vmul.f32 0.01, %v595_v0  ;;  %v963_v6 = vadd.f32 %v962_v3, %v961_v1  ;;  %v1020_v7 = vpop.f32.mrb[13].mxu1  ;;  %v964_v8 = vpop.f32.mrb[14].mxu0 }
 0x111   :  { %v746_v9 = vadd.f32 %v745_v56, %v1362_v4  ;;  %v766_v10 = vmul.f32 %v1362_v4, %v1362_v4  ;;  %v1021_v11 = vadd.f32 %v1020_v7, %v1019_v2  ;;  %v1022_v12 = vpop.f32.mrb[14].mxu1  ;;  %v965_v13 = vpop.f32.mrb[15].mxu0 }
 0x112   :  { %v1367_v14 = vsel %vm635_vm5, %v595_v0, %v649_v5  ;;  %v511_v15 = vadd.f32 %v963_v6, %v1334_v62  ;;  %v966_v16 = vadd.f32 %v965_v13, %v964_v8  ;;  %v1023_v17 = vpop.f32.mrb[15].mxu1 }
 0x113   :  { %v779_v18 = vadd.f32 %v778_v61, %v766_v10  ;;  %v747_v19 = vadd.f32 %v746_v9, %v1367_v14  ;;  %v767_v20 = vmul.f32 %v1367_v14, %v1367_v14  ;;  %v1024_v21 = vadd.f32 %v1023_v17, %v1022_v12 }
 0x114   :  { %v600_v22 = vadd.f32 %v1021_v11, %v511_v15  ;;  %v514_v23 = vadd.f32 %v966_v16, %v1334_v62  ;;  %v1391_v9 = vshrl.u32 %v672_v55, 7 }
 0x115   :  { %v780_v25 = vadd.f32 %v779_v18, %v767_v20 }
 0x116   :  { %vm636_vm6 = vcmp.gt.f32.partialorder %v600_v22, 0.0  ;;  %v650_v26 = vmul.f32 0.01, %v600_v22  ;;  %v603_v27 = vadd.f32 %v1024_v21, %v514_v23  ;;  %v967_v28 = vpop.f32.mrb[16].mxu0 }
 0x117   :  { %v1025_v30 = vpop.f32.mrb[16].mxu1  ;;  %v968_v31 = vpop.f32.mrb[17].mxu0 }
 0x118   :  { %v1374_v32 = vsel %vm636_vm6, %v600_v22, %v650_v26  ;;  %vm637_vm7 = vcmp.gt.f32.partialorder %v603_v27, 0.0  ;;  %v651_v33 = vmul.f32 0.01, %v603_v27  ;;  %v969_v34 = vadd.f32 %v968_v31, %v967_v28  ;;  %v1026_v35 = vpop.f32.mrb[17].mxu1  ;;  %v970_v36 = vpop.f32.mrb[18].mxu0 }
 0x119   :  { %v748_v37 = vadd.f32 %v747_v19, %v1374_v32  ;;  %v768_v38 = vmul.f32 %v1374_v32, %v1374_v32  ;;  %v1027_v39 = vadd.f32 %v1026_v35, %v1025_v30  ;;  %v1028_v41 = vpop.f32.mrb[18].mxu1  ;;  %v971_v42 = vpop.f32.mrb[19].mxu0  ;;  %v685_v22 = vadd.s32 96, %v1391_v9 }
 0x11a   :  { %v1379_v43 = vsel %vm637_vm7, %v603_v27, %v651_v33  ;;  %v519_v44 = vadd.f32 %v969_v34, %v1334_v62  ;;  %v972_v45 = vadd.f32 %v971_v42, %v970_v36  ;;  %v1029_v46 = vpop.f32.mrb[19].mxu1 }
 0x11b   :  { %v781_v47 = vadd.f32 %v780_v25, %v768_v38  ;;  %v749_v48 = vadd.f32 %v748_v37, %v1379_v43  ;;  %v769_v49 = vmul.f32 %v1379_v43, %v1379_v43  ;;  %v1030_v50 = vadd.f32 %v1029_v46, %v1028_v41 }
 0x11c   :  { %v608_v52 = vadd.f32 %v1027_v39, %v519_v44  ;;  %v522_v53 = vadd.f32 %v972_v45, %v1334_v62  ;;  %vm699_vm12 = vcmp.lt.s32.totalorder %v685_v22, 98 }
 0x11d   :  { %v782_v54 = vadd.f32 %v781_v47, %v769_v49 }
 0x11e   :  { %vm638_vm8 = vcmp.gt.f32.partialorder %v608_v52, 0.0  ;;  %v652_v56 = vmul.f32 0.01, %v608_v52  ;;  %v611_v57 = vadd.f32 %v1030_v50, %v522_v53  ;;  %v973_v58 = vpop.f32.mrb[20].mxu0 }
 0x11f   :  { %v1031_v59 = vpop.f32.mrb[20].mxu1  ;;  %v974_v60 = vpop.f32.mrb[21].mxu0 }
 0x120   :  { %v1386_v61 = vsel %vm638_vm8, %v608_v52, %v652_v56  ;;  %vm639_vm9 = vcmp.gt.f32.partialorder %v611_v57, 0.0  ;;  %v653_v63 = vmul.f32 0.01, %v611_v57  ;;  %v975_v0 = vadd.f32 %v974_v60, %v973_v58  ;;  %v1032_v1 = vpop.f32.mrb[21].mxu1  ;;  %v976_v2 = vpop.f32.mrb[22].mxu0 }
 0x121   :  { %v750_v3 = vadd.f32 %v749_v48, %v1386_v61  ;;  %v770_v5 = vmul.f32 %v1386_v61, %v1386_v61  ;;  %v1033_v6 = vadd.f32 %v1032_v1, %v1031_v59  ;;  %v1034_v7 = vpop.f32.mrb[22].mxu1  ;;  %v977_v8 = vpop.f32.mrb[23].mxu0  ;;  %v1120_v56 = vmov 0.0  }
 0x122   :  { %v1393_v10 = vsel %vm639_vm9, %v611_v57, %v653_v63  ;;  %v527_v11 = vadd.f32 %v975_v0, %v1334_v62  ;;  %v978_v12 = vadd.f32 %v977_v8, %v976_v2  ;;  %v1035_v13 = vpop.f32.mrb[23].mxu1  ;;  %v926_v57 = vsel %vm699_vm12, 1.0, %v1120_v56 }
 0x123   :  { %v783_v15 = vadd.f32 %v782_v54, %v770_v5  ;;  %v751_v16 = vadd.f32 %v750_v3, %v1393_v10  ;;  %v771_v17 = vmul.f32 %v1393_v10, %v1393_v10  ;;  %v1036_v18 = vadd.f32 %v1035_v13, %v1034_v7 }
 0x124   :  { %v616_v19 = vadd.f32 %v1033_v6, %v527_v11  ;;  %v530_v20 = vadd.f32 %v978_v12, %v1334_v62 }
 0x125   :  { %v784_v21 = vadd.f32 %v783_v15, %v771_v17 }
 0x126   :  { %vm640_vm10 = vcmp.gt.f32.partialorder %v616_v19, 0.0  ;;  %v654_v23 = vmul.f32 0.01, %v616_v19  ;;  %v619_v25 = vadd.f32 %v1036_v18, %v530_v20  ;;  %v979_v26 = vpop.f32.mrb[24].mxu0 }
 0x127   :  { %v1037_v27 = vpop.f32.mrb[24].mxu1  ;;  %v980_v28 = vpop.f32.mrb[25].mxu0 }
 0x128   :  { %v1401_v30 = vsel %vm640_vm10, %v616_v19, %v654_v23  ;;  %vm641_vm11 = vcmp.gt.f32.partialorder %v619_v25, 0.0  ;;  %v655_v31 = vmul.f32 0.01, %v619_v25  ;;  %v981_v33 = vadd.f32 %v980_v28, %v979_v26  ;;  %v1038_v34 = vpop.f32.mrb[25].mxu1  ;;  %v982_v35 = vpop.f32.mrb[26].mxu0 }
 0x129   :  { %v752_v36 = vadd.f32 %v751_v16, %v1401_v30  ;;  %v772_v37 = vmul.f32 %v1401_v30, %v1401_v30  ;;  %v1039_v38 = vadd.f32 %v1038_v34, %v1037_v27  ;;  %v1040_v39 = vpop.f32.mrb[26].mxu1  ;;  %v983_v41 = vpop.f32.mrb[27].mxu0  ;;  %v810_v34 = vsub.s32 0, %v1391_v9 }
 0x12a   :  { %v1406_v42 = vsel %vm641_vm11, %v619_v25, %v655_v31  ;;  %v535_v44 = vadd.f32 %v981_v33, %v1334_v62  ;;  %v984_v45 = vadd.f32 %v983_v41, %v982_v35  ;;  %v1041_v46 = vpop.f32.mrb[27].mxu1  ;;  %v800_v33 = vld [vmem:[%s1478_s3] sm:$0x1] }
 0x12b   :  { %v785_v47 = vadd.f32 %v784_v21, %v772_v37  ;;  %v753_v48 = vadd.f32 %v752_v36, %v1406_v42  ;;  %v773_v49 = vmul.f32 %v1406_v42, %v1406_v42  ;;  %v1042_v50 = vadd.f32 %v1041_v46, %v1040_v39  ;;  %v804_v37 = vld [vmem:[%s1479_s4] sm:$0x1] }
 0x12c   :  { %v624_v52 = vadd.f32 %v1039_v38, %v535_v44  ;;  %v538_v53 = vadd.f32 %v984_v45, %v1334_v62 }
 0x12d   :  { %v786_v54 = vadd.f32 %v785_v47, %v773_v49 }
 0x12e   :  { %vm642_vm13 = vcmp.gt.f32.partialorder %v624_v52, 0.0  ;;  %v656_v55 = vmul.f32 0.01, %v624_v52  ;;  %v627_v58 = vadd.f32 %v1042_v50, %v538_v53 }
 0x130   :  { %v670_v59 = vsel %vm642_vm13, %v624_v52, %v656_v55  ;;  %vm643_vm14 = vcmp.gt.f32.partialorder %v627_v58, 0.0  ;;  %v657_v60 = vmul.f32 0.01, %v627_v58 }
 0x131   :  { %v741_v63 = vmul.f32 %v926_v57, %v670_v59 }
 0x132   :  { %v671_v0 = vsel %vm643_vm14, %v627_v58, %v657_v60 }
 0x133   :  { %v754_v1 = vadd.f32 %v753_v48, %v741_v63  ;;  %v774_v2 = vmul.f32 %v741_v63, %v670_v59  ;;  %v742_v3 = vmul.f32 0.0, %v671_v0 }
 0x135   :  { %v787_v5 = vadd.f32 %v786_v54, %v774_v2  ;;  %v755_v6 = vadd.f32 %v754_v1, %v742_v3  ;;  %v775_v7 = vmul.f32 %v742_v3, %v671_v0 }
 0x137   :  { %v756_v8 = vrot.slane %v755_v6, 4  ;;  %v788_v62 = vadd.f32 %v787_v5, %v775_v7 }
 0x139   :  { %v757_v11 = vadd.f32 %v756_v8, %v755_v6  ;;  %v789_v12 = vrot.slane %v788_v62, 4 }
 0x13b   :  { %v758_v13 = vrot.slane %v757_v11, 2  ;;  %v790_v15 = vadd.f32 %v789_v12, %v788_v62 }
 0x13d   :  { %v759_v16 = vadd.f32 %v758_v13, %v757_v11  ;;  %v791_v17 = vrot.slane %v790_v15, 2 }
 0x13f   :  { %v760_v18 = vrot.slane %v759_v16, 1  ;;  %v792_v19 = vadd.f32 %v791_v17, %v790_v15 }
 0x141   :  { %v761_v20 = vadd.f32 %v760_v18, %v759_v16  ;;  %v793_v21 = vrot.slane %v792_v19, 1 }
 0x143   :  { %v794_v22 = vadd.f32 %v793_v21, %v792_v19  ;;  %v795_v23 = vmul.f32 0.010204081, %v761_v20 }
 0x145   :  { %v796_v25 = vmul.f32 0.010204081, %v794_v22  ;;  %v797_v26 = vmul.f32 %v795_v23, %v795_v23 }
 0x147   :  { %v798_v27 = vsub.f32 %v796_v25, %v797_v26 }
 0x149   :  { %v799_v28 = vmax.f32 %v798_v27, 0.0 }
 0x14b   :  { %v801_v31 = vadd.f32 1e-05, %v799_v28 }
 0x14d   :  { %1118 = vrsqrt.f32 %v801_v31 }
 0x157   :  { %v1119_v35 = vpop.eup %1118 }
 0x158   :  { %v803_v36 = vmul.f32 %v1119_v35, %v800_v33 }
 0x15a   :  { %v805_v38 = vmul.f32 %v803_v36, %v795_v23  ;;  %v811_v39 = vrot.slane %v803_v36, %v810_v34 }
 0x15c   :  { %v806_v41 = vsub.f32 %v804_v37, %v805_v38  ;;  %v813_v44 = vmul.f32 %v811_v39, %v1341_v29  ;;  %v814_v45 = vmul.f32 %v811_v39, %v1338_v24  ;;  %v815_v46 = vmul.f32 %v811_v39, %v1350_v40 }
 0x15d   :  { %v816_v47 = vmul.f32 %v811_v39, %v1355_v51  ;;  %v817_v48 = vmul.f32 %v811_v39, %v1362_v4  ;;  %v818_v9 = vmul.f32 %v811_v39, %v1367_v14  ;;  %v819_v49 = vmul.f32 %v811_v39, %v1374_v32 }
 0x15e   :  { %v820_v50 = vmul.f32 %v811_v39, %v1379_v43  ;;  %v821_v52 = vmul.f32 %v811_v39, %v1386_v61  ;;  %v822_v53 = vmul.f32 %v811_v39, %v1393_v10  ;;  %v823_v29 = vmul.f32 %v811_v39, %v1401_v30 }
 0x15f   :  { %v824_v24 = vmul.f32 %v811_v39, %v1406_v42  ;;  %v825_v54 = vmul.f32 %v811_v39, %v670_v59  ;;  %v826_v40 = vmul.f32 %v811_v39, %v671_v0  ;;  %v831_v55 = vrot.slane %v806_v41, %v810_v34 }
 0x161   :  { %v833_v51 = vadd.f32 %v831_v55, %v813_v44  ;;  %v834_v56 = vadd.f32 %v831_v55, %v814_v45  ;;  %v835_v4 = vadd.f32 %v831_v55, %v815_v46  ;;  %v836_v57 = vadd.f32 %v831_v55, %v816_v47 }
 0x162   :  { %v837_v14 = vadd.f32 %v831_v55, %v817_v48  ;;  %v838_v58 = vadd.f32 %v831_v55, %v818_v9  ;;  %v839_v32 = vadd.f32 %v831_v55, %v819_v49  ;;  %v840_v60 = vadd.f32 %v831_v55, %v820_v50 }
 0x163   :  { %v841_v43 = vadd.f32 %v831_v55, %v821_v52  ;;  %v842_v63 = vadd.f32 %v831_v55, %v822_v53  ;;  %v843_v61 = vadd.f32 %v831_v55, %v823_v29  ;;  %v844_v1 = vadd.f32 %v831_v55, %v824_v24  ;;  %847 = vst [vmem:[%s1480_s5] sm:$0xff] %v833_v51 }
 0x164   :  { %848 = vst [vmem:[%s1480_s5 + $0x8] sm:$0xff] %v834_v56  ;;  %849 = vst [vmem:[%s1480_s5 + $0x10] sm:$0xff] %v835_v4  ;;  %v845_v10 = vadd.f32 %v831_v55, %v825_v54  ;;  %v846_v30 = vadd.f32 %v831_v55, %v826_v40 }
 0x165   :  { %850 = vst [vmem:[%s1480_s5 + $0x18] sm:$0xff] %v836_v57  ;;  %851 = vst [vmem:[%s1480_s5 + $0x20] sm:$0xff] %v837_v14 }
 0x166   :  { %852 = vst [vmem:[%s1480_s5 + $0x28] sm:$0xff] %v838_v58  ;;  %853 = vst [vmem:[%s1480_s5 + $0x30] sm:$0xff] %v839_v32 }
 0x167   :  { %854 = vst [vmem:[%s1480_s5 + $0x38] sm:$0xff] %v840_v60  ;;  %855 = vst [vmem:[%s1480_s5 + $0x40] sm:$0xff] %v841_v43 }
 0x168   :  { %856 = vst [vmem:[%s1480_s5 + $0x48] sm:$0xff] %v842_v63  ;;  %857 = vst [vmem:[%s1480_s5 + $0x50] sm:$0xff] %v843_v61 }
 0x169   :  { %858 = vst [vmem:[%s1480_s5 + $0x58] sm:$0xff] %v844_v1  ;;  %859 = vst [vmem:[%s1480_s5 + $0x60] sm:$0xff] %v845_v10 }
 0x16a   :  { %860 = vst [vmem:[%s1480_s5 + $0x68] sm:$0xff] %v846_v30 }

// kernel: _lambda_.9
= control target key start
LH: loop header
LB: loop body
LE: loop exit
PB: predicated region body
PF: predicated region fallthrough
CT: control target
= control target key end

     0   :  { %vm3072_vm0 = vmmov 0   ;;  %s3777_s1 = inlined_call_operand.vmem [shape: bf16[3200,128], index: 1, kind: input, shape index: {}]   ;;  %s3778_s0 = inlined_call_operand.vmem [shape: bf16[16,3200], index: 0, kind: input, shape index: {}]   ;;  %s3779_s2 = inlined_call_operand.vmem [shape: f32[1,128], index: 2, kind: input, shape index: {}]   ;;  %s3780_s3 = inlined_call_operand.vmem [shape: f32[16,128], index: 3, kind: output, shape index: {}]  }
   0x1   :  { %v2834_v0 = vld [vmem:[%s3777_s1 + $0x40] sm:$0xff]   ;;  %v2838_v4 = vld [vmem:[%s3777_s1 + $0x48] sm:$0xff]   ;;  %v2842_v8 = vld [vmem:[%s3777_s1 + $0x50] sm:$0xff]  }
   0x2   :  { %v2835_v1 = vld [vmem:[%s3777_s1] sm:$0xff]   ;;  %2539 = vmatprep.subr.bf16.mxu0 %v2834_v0  ;;  %v2839_v5 = vld [vmem:[%s3777_s1 + $0x8] sm:$0xff]   ;;  %v2843_v9 = vld [vmem:[%s3777_s1 + $0x10] sm:$0xff]  }
   0x3   :  { %v2836_v2 = vld [vmem:[%s3777_s1 + $0xc0] sm:$0xff]   ;;  %2540 = vmatpush3.bf16.msra.mxu0 %v2835_v1  ;;  %v2840_v6 = vld [vmem:[%s3777_s1 + $0xc8] sm:$0xff]   ;;  %v2844_v10 = vld [vmem:[%s3777_s1 + $0xd0] sm:$0xff]  }
   0x4   :  { %v2837_v3 = vld [vmem:[%s3777_s1 + $0x80] sm:$0xff]   ;;  %2561 = vmatprep.subr.bf16.mxu1 %v2836_v2  ;;  %2541 = vmatprep.subr.bf16.mxu0 %v2838_v4  ;;  %v2841_v7 = vld [vmem:[%s3777_s1 + $0x88] sm:$0xff]   ;;  %v2845_v11 = vld [vmem:[%s3777_s1 + $0x90] sm:$0xff]  }
   0x5   :  { %2562 = vmatpush3.bf16.msra.mxu1 %v2837_v3  ;;  %v2846_v12 = vld [vmem:[%s3777_s1 + $0x58] sm:$0xff]   ;;  %v2850_v16 = vld [vmem:[%s3777_s1 + $0x60] sm:$0xff]   ;;  %v2854_v20 = vld [vmem:[%s3777_s1 + $0x68] sm:$0xff]  }
   0x6   :  { %2563 = vmatprep.subr.bf16.mxu1 %v2840_v6  ;;  %v2847_v13 = vld [vmem:[%s3777_s1 + $0x18] sm:$0xff]   ;;  %v2851_v17 = vld [vmem:[%s3777_s1 + $0x20] sm:$0xff]   ;;  %v2855_v21 = vld [vmem:[%s3777_s1 + $0x28] sm:$0xff]  }
   0x7   :  { %2542 = vmatpush3.bf16.msra.mxu0 %v2839_v5  ;;  %v2848_v14 = vld [vmem:[%s3777_s1 + $0xd8] sm:$0xff]   ;;  %v2852_v18 = vld [vmem:[%s3777_s1 + $0xe0] sm:$0xff]   ;;  %v2856_v22 = vld [vmem:[%s3777_s1 + $0xe8] sm:$0xff]  }
   0x8   :  { %2543 = vmatprep.subr.bf16.mxu0 %v2842_v8  ;;  %v2849_v15 = vld [vmem:[%s3777_s1 + $0x98] sm:$0xff]   ;;  %v2853_v19 = vld [vmem:[%s3777_s1 + $0xa0] sm:$0xff]   ;;  %v2857_v23 = vld [vmem:[%s3777_s1 + $0xa8] sm:$0xff]  }
   0x9   :  { %2564 = vmatpush3.bf16.msra.mxu1 %v2841_v7  ;;  %v2858_v24 = vld [vmem:[%s3777_s1 + $0x70] sm:$0xff]   ;;  %v2862_v28 = vld [vmem:[%s3777_s1 + $0x78] sm:$0xff]   ;;  %v2865_v31 = vld [vmem:[%s3778_s0] ss:$100 sps:$4 sm:$0xff]  }
   0xa   :  { %2565 = vmatprep.subr.bf16.mxu1 %v2844_v10  ;;  %v2859_v25 = vld [vmem:[%s3777_s1 + $0x30] sm:$0xff]   ;;  %v2863_v29 = vld [vmem:[%s3777_s1 + $0x38] sm:$0xff]   ;;  %v2867_v32 = vld [vmem:[%s3778_s0 + $0x4] ss:$100 sps:$4 sm:$0xff]  }
   0xb   :  { %2544 = vmatpush3.bf16.msra.mxu0 %v2843_v9  ;;  %v2860_v26 = vld [vmem:[%s3777_s1 + $0xf0] sm:$0xff]   ;;  %v2864_v30 = vld [vmem:[%s3777_s1 + $0xf8] sm:$0xff]   ;;  %1806 = vmatprep.mubr.bf16.mxu0 %v2867_v32  ;;  %v2869_v34 = vld [vmem:[%s3777_s1 + $0x140] sm:$0xff]  }
   0xc   :  { %2545 = vmatprep.subr.bf16.mxu0 %v2846_v12  ;;  %v2861_v27 = vld [vmem:[%s3777_s1 + $0xb0] sm:$0xff]   ;;  %v2868_v33 = vld [vmem:[%s3777_s1 + $0xb8] sm:$0xff]   ;;  %v2870_v35 = vld [vmem:[%s3778_s0 + $0x8] ss:$100 sps:$4 sm:$0xff]  }
   0xd   :  { %2566 = vmatpush3.bf16.msra.mxu1 %v2845_v11  ;;  %v2872_v36 = vld [vmem:[%s3778_s0 + $0xc] ss:$100 sps:$4 sm:$0xff]   ;;  %v2873_v37 = vld [vmem:[%s3777_s1 + $0x100] sm:$0xff]   ;;  %v2884_v48 = vld [vmem:[%s3777_s1 + $0x158] sm:$0xff]  }
   0xe   :  { %2567 = vmatprep.subr.bf16.mxu1 %v2848_v14  ;;  %1847 = vmatprep.mubr.bf16.mxu1 %v2872_v36  ;;  %v2874_v38 = vld [vmem:[%s3777_s1 + $0x1c0] sm:$0xff]   ;;  %v2876_v40 = vld [vmem:[%s3777_s1 + $0x148] sm:$0xff]   ;;  %v2880_v44 = vld [vmem:[%s3777_s1 + $0x150] sm:$0xff]  }
   0xf   :  { %2546 = vmatpush3.bf16.msra.mxu0 %v2847_v13  ;;  %v2875_v39 = vld [vmem:[%s3777_s1 + $0x180] sm:$0xff]   ;;  %v2877_v41 = vld [vmem:[%s3777_s1 + $0x108] sm:$0xff]   ;;  %v2881_v45 = vld [vmem:[%s3777_s1 + $0x110] sm:$0xff]  }
  0x10   :  { %2547 = vmatprep.subr.bf16.mxu0 %v2850_v16  ;;  %v2878_v42 = vld [vmem:[%s3777_s1 + $0x1c8] sm:$0xff]   ;;  %v2882_v46 = vld [vmem:[%s3777_s1 + $0x1d0] sm:$0xff]   ;;  %v2885_v49 = vld [vmem:[%s3777_s1 + $0x118] sm:$0xff]  }
  0x11   :  { %2568 = vmatpush3.bf16.msra.mxu1 %v2849_v15  ;;  %v2879_v43 = vld [vmem:[%s3777_s1 + $0x188] sm:$0xff]   ;;  %v2883_v47 = vld [vmem:[%s3777_s1 + $0x190] sm:$0xff]   ;;  %v2886_v50 = vld [vmem:[%s3777_s1 + $0x1d8] sm:$0xff]  }
  0x12   :  { %2569 = vmatprep.subr.bf16.mxu1 %v2852_v18  ;;  %v2887_v51 = vld [vmem:[%s3777_s1 + $0x198] sm:$0xff]   ;;  %v2888_v52 = vld [vmem:[%s3777_s1 + $0x160] sm:$0xff]   ;;  %v2892_v56 = vld [vmem:[%s3777_s1 + $0x168] sm:$0xff]  }
  0x13   :  { %2548 = vmatpush3.bf16.msra.mxu0 %v2851_v17  ;;  %v2889_v53 = vld [vmem:[%s3777_s1 + $0x120] sm:$0xff]   ;;  %v2893_v57 = vld [vmem:[%s3777_s1 + $0x128] sm:$0xff]   ;;  %v2896_v60 = vld [vmem:[%s3777_s1 + $0x170] sm:$0xff]  }
  0x14   :  { %2549 = vmatprep.subr.bf16.mxu0 %v2854_v20  ;;  %v2890_v54 = vld [vmem:[%s3777_s1 + $0x1e0] sm:$0xff]   ;;  %v2894_v58 = vld [vmem:[%s3777_s1 + $0x1e8] sm:$0xff]   ;;  %v2897_v61 = vld [vmem:[%s3777_s1 + $0x130] sm:$0xff]  }
  0x15   :  { %2570 = vmatpush3.bf16.msra.mxu1 %v2853_v19  ;;  %v2891_v55 = vld [vmem:[%s3777_s1 + $0x1a0] sm:$0xff]   ;;  %v2895_v59 = vld [vmem:[%s3777_s1 + $0x1a8] sm:$0xff]   ;;  %v2898_v62 = vld [vmem:[%s3777_s1 + $0x1f0] sm:$0xff]  }
  0x16   :  { %2571 = vmatprep.subr.bf16.mxu1 %v2856_v22  ;;  %v2899_v63 = vld [vmem:[%s3777_s1 + $0x1b0] sm:$0xff]   ;;  %v2900_v0 = vld [vmem:[%s3777_s1 + $0x178] sm:$0xff]   ;;  %v2907_v6 = vld [vmem:[%s3777_s1 + $0x240] sm:$0xff]  }
  0x17   :  { %2550 = vmatpush3.bf16.msra.mxu0 %v2855_v21  ;;  %v2901_v1 = vld [vmem:[%s3777_s1 + $0x138] sm:$0xff]   ;;  %v2903_v3 = vld [vmem:[%s3778_s0 + $0x10] ss:$100 sps:$4 sm:$0xff]   ;;  %v2911_v9 = vld [vmem:[%s3777_s1 + $0x200] sm:$0xff]  }
  0x18   :  { %2551 = vmatprep.subr.bf16.mxu0 %v2858_v24  ;;  %v2902_v2 = vld [vmem:[%s3777_s1 + $0x1f8] sm:$0xff]   ;;  %v2912_v10 = vld [vmem:[%s3777_s1 + $0x2c0] sm:$0xff]   ;;  %v2914_v12 = vld [vmem:[%s3777_s1 + $0x248] sm:$0xff]  }
  0x19   :  { %2572 = vmatpush3.bf16.msra.mxu1 %v2857_v23  ;;  %v2905_v4 = vld [vmem:[%s3778_s0 + $0x14] ss:$100 sps:$4 sm:$0xff]   ;;  %v2910_v8 = vld [vmem:[%s3778_s0 + $0x1c] ss:$100 sps:$4 sm:$0xff]   ;;  %v2915_v13 = vld [vmem:[%s3777_s1 + $0x208] sm:$0xff]  }
  0x1a   :  { %2573 = vmatprep.subr.bf16.mxu1 %v2860_v26  ;;  %v2906_v5 = vld [vmem:[%s3777_s1 + $0x1b8] sm:$0xff]   ;;  %v2913_v11 = vld [vmem:[%s3777_s1 + $0x280] sm:$0xff]   ;;  %v2916_v14 = vld [vmem:[%s3777_s1 + $0x2c8] sm:$0xff]  }
  0x1b   :  { %2552 = vmatpush3.bf16.msra.mxu0 %v2859_v25  ;;  %v2908_v7 = vld [vmem:[%s3778_s0 + $0x18] ss:$100 sps:$4 sm:$0xff]   ;;  %v2917_v15 = vld [vmem:[%s3777_s1 + $0x288] sm:$0xff]   ;;  %v2918_v16 = vld [vmem:[%s3777_s1 + $0x250] sm:$0xff]  }
  0x1c   :  { %2553 = vmatprep.subr.bf16.mxu0 %v2862_v28  ;;  %v2919_v17 = vld [vmem:[%s3777_s1 + $0x210] sm:$0xff]   ;;  %v2922_v20 = vld [vmem:[%s3777_s1 + $0x258] sm:$0xff]   ;;  %v2926_v24 = vld [vmem:[%s3777_s1 + $0x260] sm:$0xff]  }
  0x1d   :  { %2574 = vmatpush3.bf16.msra.mxu1 %v2861_v27  ;;  %v2920_v18 = vld [vmem:[%s3777_s1 + $0x2d0] sm:$0xff]   ;;  %v2923_v21 = vld [vmem:[%s3777_s1 + $0x218] sm:$0xff]   ;;  %v2927_v25 = vld [vmem:[%s3777_s1 + $0x220] sm:$0xff]  }
  0x1e   :  { %2575 = vmatprep.subr.bf16.mxu1 %v2864_v30  ;;  %v2921_v19 = vld [vmem:[%s3777_s1 + $0x290] sm:$0xff]   ;;  %v2924_v22 = vld [vmem:[%s3777_s1 + $0x2d8] sm:$0xff]   ;;  %v2928_v26 = vld [vmem:[%s3777_s1 + $0x2e0] sm:$0xff]  }
  0x1f   :  { %2554 = vmatpush3.bf16.msra.mxu0 %v2863_v29  ;;  %v2925_v23 = vld [vmem:[%s3777_s1 + $0x298] sm:$0xff]   ;;  %v2929_v27 = vld [vmem:[%s3777_s1 + $0x2a0] sm:$0xff]   ;;  %v2930_v28 = vld [vmem:[%s3777_s1 + $0x268] sm:$0xff]  }
  0x20   :  { %2583 = vmatprep.subr.bf16.mxu0 %v2869_v34  ;;  %v2931_v29 = vld [vmem:[%s3777_s1 + $0x228] sm:$0xff]   ;;  %v2934_v32 = vld [vmem:[%s3777_s1 + $0x270] sm:$0xff]   ;;  %v2938_v36 = vld [vmem:[%s3777_s1 + $0x278] sm:$0xff]  }
  0x21   :  { %2576 = vmatpush3.bf16.msra.mxu1 %v2868_v33  ;;  %v2932_v30 = vld [vmem:[%s3777_s1 + $0x2e8] sm:$0xff]   ;;  %v2935_v33 = vld [vmem:[%s3777_s1 + $0x230] sm:$0xff]  }
  0x22   :  { %1807 = vmatmul.mubr.bf16.vlgmr.msra.gmra.mrb[0].mxu0 %v2865_v31  ;;  %2605 = vmatprep.subr.bf16.mxu1 %v2874_v38  ;;  %v2933_v31 = vld [vmem:[%s3777_s1 + $0x2a8] sm:$0xff]   ;;  %v2936_v34 = vld [vmem:[%s3777_s1 + $0x2f0] sm:$0xff]   ;;  %v2940_v38 = vld [vmem:[%s3777_s1 + $0x2f8] sm:$0xff]  }
  0x23   :  { %2584 = vmatpush3.bf16.msra.mxu0 %v2873_v37  ;;  %1888 = vmatprep.mubr.bf16.mxu0 %v2905_v4  ;;  %v2939_v37 = vld [vmem:[%s3777_s1 + $0x238] sm:$0xff]   ;;  %v2972_v4 = vld [vmem:[%s3777_s1 + $0x370] sm:$0xff]  }
  0x24   :  { %1848 = vmatmul.mubr.bf16.vlgmr.msra.gmra.mrb[0].mxu1 %v2870_v35  ;;  %2585 = vmatprep.subr.bf16.mxu0 %v2876_v40  ;;  %v2937_v35 = vld [vmem:[%s3777_s1 + $0x2b0] sm:$0xff]   ;;  %v2943_v40 = vld [vmem:[%s3778_s0 + $0x24] ss:$100 sps:$4 sm:$0xff]  }
  0x25   :  { %2606 = vmatpush3.bf16.msra.mxu1 %v2875_v39  ;;  %1929 = vmatprep.mubr.bf16.mxu1 %v2910_v8  ;;  %v2941_v39 = vld [vmem:[%s3778_s0 + $0x20] ss:$100 sps:$4 sm:$0xff]   ;;  %v2976_v8 = vld [vmem:[%s3777_s1 + $0x378] sm:$0xff]  }
  0x26   :  { %2607 = vmatprep.subr.bf16.mxu1 %v2878_v42  ;;  %v2945_v42 = vld [vmem:[%s3777_s1 + $0x340] sm:$0xff]  }
  0x27   :  { %2586 = vmatpush3.bf16.msra.mxu0 %v2877_v41  ;;  %v2944_v41 = vld [vmem:[%s3777_s1 + $0x2b8] sm:$0xff]  }
  0x28   :  { %2587 = vmatprep.subr.bf16.mxu0 %v2880_v44  ;;  %v2948_v44 = vld [vmem:[%s3778_s0 + $0x2c] ss:$100 sps:$4 sm:$0xff]  }
  0x29   :  { %2608 = vmatpush3.bf16.msra.mxu1 %v2879_v43  ;;  %v2946_v43 = vld [vmem:[%s3778_s0 + $0x28] ss:$100 sps:$4 sm:$0xff]  }
  0x2a   :  { %2609 = vmatprep.subr.bf16.mxu1 %v2882_v46  ;;  %v2950_v46 = vld [vmem:[%s3777_s1 + $0x3c0] sm:$0xff]  }
  0x2b   :  { %2588 = vmatpush3.bf16.msra.mxu0 %v2881_v45  ;;  %v2949_v45 = vld [vmem:[%s3777_s1 + $0x300] sm:$0xff]  }
  0x2c   :  { %2589 = vmatprep.subr.bf16.mxu0 %v2884_v48  ;;  %v2952_v48 = vld [vmem:[%s3777_s1 + $0x348] sm:$0xff]  }
  0x2d   :  { %2610 = vmatpush3.bf16.msra.mxu1 %v2883_v47  ;;  %v2951_v47 = vld [vmem:[%s3777_s1 + $0x380] sm:$0xff]  }
  0x2e   :  { %2611 = vmatprep.subr.bf16.mxu1 %v2886_v50  ;;  %v2954_v50 = vld [vmem:[%s3777_s1 + $0x3c8] sm:$0xff]  }
  0x2f   :  { %2590 = vmatpush3.bf16.msra.mxu0 %v2885_v49  ;;  %v2953_v49 = vld [vmem:[%s3777_s1 + $0x308] sm:$0xff]  }
  0x30   :  { %2591 = vmatprep.subr.bf16.mxu0 %v2888_v52  ;;  %v2956_v52 = vld [vmem:[%s3777_s1 + $0x350] sm:$0xff]  }
  0x31   :  { %2612 = vmatpush3.bf16.msra.mxu1 %v2887_v51  ;;  %v2955_v51 = vld [vmem:[%s3777_s1 + $0x388] sm:$0xff]  }
  0x32   :  { %2613 = vmatprep.subr.bf16.mxu1 %v2890_v54  ;;  %v2958_v54 = vld [vmem:[%s3777_s1 + $0x3d0] sm:$0xff]  }
  0x33   :  { %2592 = vmatpush3.bf16.msra.mxu0 %v2889_v53  ;;  %v2957_v53 = vld [vmem:[%s3777_s1 + $0x310] sm:$0xff]  }
  0x34   :  { %2593 = vmatprep.subr.bf16.mxu0 %v2892_v56  ;;  %v2960_v56 = vld [vmem:[%s3777_s1 + $0x358] sm:$0xff]  }
  0x35   :  { %2614 = vmatpush3.bf16.msra.mxu1 %v2891_v55  ;;  %v2959_v55 = vld [vmem:[%s3777_s1 + $0x390] sm:$0xff]  }
  0x36   :  { %2615 = vmatprep.subr.bf16.mxu1 %v2894_v58  ;;  %v2962_v58 = vld [vmem:[%s3777_s1 + $0x3d8] sm:$0xff]  }
  0x37   :  { %2594 = vmatpush3.bf16.msra.mxu0 %v2893_v57  ;;  %v2961_v57 = vld [vmem:[%s3777_s1 + $0x318] sm:$0xff]  }
  0x38   :  { %2595 = vmatprep.subr.bf16.mxu0 %v2896_v60  ;;  %v2964_v60 = vld [vmem:[%s3777_s1 + $0x360] sm:$0xff]  }
  0x39   :  { %2616 = vmatpush3.bf16.msra.mxu1 %v2895_v59  ;;  %v2963_v59 = vld [vmem:[%s3777_s1 + $0x398] sm:$0xff]  }
  0x3a   :  { %2617 = vmatprep.subr.bf16.mxu1 %v2898_v62  ;;  %v2966_v62 = vld [vmem:[%s3777_s1 + $0x3e0] sm:$0xff]  }
  0x3b   :  { %2596 = vmatpush3.bf16.msra.mxu0 %v2897_v61  ;;  %v2965_v61 = vld [vmem:[%s3777_s1 + $0x320] sm:$0xff]  }
  0x3c   :  { %2597 = vmatprep.subr.bf16.mxu0 %v2900_v0  ;;  %v2968_v0 = vld [vmem:[%s3777_s1 + $0x368] sm:$0xff]  }
  0x3d   :  { %2618 = vmatpush3.bf16.msra.mxu1 %v2899_v63  ;;  %v2967_v63 = vld [vmem:[%s3777_s1 + $0x3a0] sm:$0xff]  }
  0x3e   :  { %2619 = vmatprep.subr.bf16.mxu1 %v2902_v2  ;;  %v2970_v2 = vld [vmem:[%s3777_s1 + $0x3e8] sm:$0xff]  }
  0x3f   :  { %2598 = vmatpush3.bf16.msra.mxu0 %v2901_v1  ;;  %v2969_v1 = vld [vmem:[%s3777_s1 + $0x328] sm:$0xff]  }
  0x40   :  { %2627 = vmatprep.subr.bf16.mxu0 %v2907_v6  ;;  %v2974_v6 = vld [vmem:[%s3777_s1 + $0x3f0] sm:$0xff]  }
  0x41   :  { %2620 = vmatpush3.bf16.msra.mxu1 %v2906_v5  ;;  %v2973_v5 = vld [vmem:[%s3777_s1 + $0x330] sm:$0xff]  }
  0x42   :  { %1889 = vmatmul.mubr.bf16.vlgmr.msra.gmra.mrb[4].mxu0 %v2903_v3  ;;  %2649 = vmatprep.subr.bf16.mxu1 %v2912_v10  ;;  %v2971_v3 = vld [vmem:[%s3777_s1 + $0x3a8] sm:$0xff]   ;;  %v2978_v10 = vld [vmem:[%s3777_s1 + $0x3f8] sm:$0xff]  }
  0x43   :  { %2628 = vmatpush3.bf16.msra.mxu0 %v2911_v9  ;;  %1970 = vmatprep.mubr.bf16.mxu0 %v2943_v40  ;;  %v2977_v9 = vld [vmem:[%s3777_s1 + $0x338] sm:$0xff]   ;;  %v3010_v40 = vld [vmem:[%s3777_s1 + $0x470] sm:$0xff]  }
  0x44   :  { %1930 = vmatmul.mubr.bf16.vlgmr.msra.gmra.mrb[4].mxu1 %v2908_v7  ;;  %2629 = vmatprep.subr.bf16.mxu0 %v2914_v12  ;;  %v2975_v7 = vld [vmem:[%s3777_s1 + $0x3b0] sm:$0xff]  }
  0x45   :  { %2650 = vmatpush3.bf16.msra.mxu1 %v2913_v11  ;;  %2011 = vmatprep.mubr.bf16.mxu1 %v2948_v44  ;;  %v2979_v11 = vld [vmem:[%s3778_s0 + $0x30] ss:$100 sps:$4 sm:$0xff]   ;;  %v3014_v44 = vld [vmem:[%s3777_s1 + $0x478] sm:$0xff]  }
  0x46   :  { %2651 = vmatprep.subr.bf16.mxu1 %v2916_v14  ;;  %v2981_v12 = vld [vmem:[%s3778_s0 + $0x34] ss:$100 sps:$4 sm:$0xff]   ;;  %v2983_v14 = vld [vmem:[%s3777_s1 + $0x440] sm:$0xff]  }
  0x47   :  { %2630 = vmatpush3.bf16.msra.mxu0 %v2915_v13  ;;  %v2982_v13 = vld [vmem:[%s3777_s1 + $0x3b8] sm:$0xff]  }
  0x48   :  { %2631 = vmatprep.subr.bf16.mxu0 %v2918_v16  ;;  %v2986_v16 = vld [vmem:[%s3778_s0 + $0x3c] ss:$100 sps:$4 sm:$0xff]  }
  0x49   :  { %2652 = vmatpush3.bf16.msra.mxu1 %v2917_v15  ;;  %v2984_v15 = vld [vmem:[%s3778_s0 + $0x38] ss:$100 sps:$4 sm:$0xff]  }
  0x4a   :  { %2653 = vmatprep.subr.bf16.mxu1 %v2920_v18  ;;  %v2988_v18 = vld [vmem:[%s3777_s1 + $0x4c0] sm:$0xff]  }
  0x4b   :  { %2632 = vmatpush3.bf16.msra.mxu0 %v2919_v17  ;;  %v2987_v17 = vld [vmem:[%s3777_s1 + $0x400] sm:$0xff]  }
  0x4c   :  { %2633 = vmatprep.subr.bf16.mxu0 %v2922_v20  ;;  %v2990_v20 = vld [vmem:[%s3777_s1 + $0x448] sm:$0xff]  }
  0x4d   :  { %2654 = vmatpush3.bf16.msra.mxu1 %v2921_v19  ;;  %v2989_v19 = vld [vmem:[%s3777_s1 + $0x480] sm:$0xff]  }
  0x4e   :  { %2655 = vmatprep.subr.bf16.mxu1 %v2924_v22  ;;  %v2992_v22 = vld [vmem:[%s3777_s1 + $0x4c8] sm:$0xff]  }
  0x4f   :  { %2634 = vmatpush3.bf16.msra.mxu0 %v2923_v21  ;;  %v2991_v21 = vld [vmem:[%s3777_s1 + $0x408] sm:$0xff]  }
  0x50   :  { %2635 = vmatprep.subr.bf16.mxu0 %v2926_v24  ;;  %v2994_v24 = vld [vmem:[%s3777_s1 + $0x450] sm:$0xff]  }
  0x51   :  { %2656 = vmatpush3.bf16.msra.mxu1 %v2925_v23  ;;  %v2993_v23 = vld [vmem:[%s3777_s1 + $0x488] sm:$0xff]  }
  0x52   :  { %2657 = vmatprep.subr.bf16.mxu1 %v2928_v26  ;;  %v2996_v26 = vld [vmem:[%s3777_s1 + $0x4d0] sm:$0xff]  }
  0x53   :  { %2636 = vmatpush3.bf16.msra.mxu0 %v2927_v25  ;;  %v2995_v25 = vld [vmem:[%s3777_s1 + $0x410] sm:$0xff]  }
  0x54   :  { %2637 = vmatprep.subr.bf16.mxu0 %v2930_v28  ;;  %v2998_v28 = vld [vmem:[%s3777_s1 + $0x458] sm:$0xff]  }
  0x55   :  { %2658 = vmatpush3.bf16.msra.mxu1 %v2929_v27  ;;  %v2997_v27 = vld [vmem:[%s3777_s1 + $0x490] sm:$0xff]  }
  0x56   :  { %2659 = vmatprep.subr.bf16.mxu1 %v2932_v30  ;;  %v3000_v30 = vld [vmem:[%s3777_s1 + $0x4d8] sm:$0xff]  }
  0x57   :  { %2638 = vmatpush3.bf16.msra.mxu0 %v2931_v29  ;;  %v2999_v29 = vld [vmem:[%s3777_s1 + $0x418] sm:$0xff]  }
  0x58   :  { %2639 = vmatprep.subr.bf16.mxu0 %v2934_v32  ;;  %v3002_v32 = vld [vmem:[%s3777_s1 + $0x460] sm:$0xff]  }
  0x59   :  { %2660 = vmatpush3.bf16.msra.mxu1 %v2933_v31  ;;  %v3001_v31 = vld [vmem:[%s3777_s1 + $0x498] sm:$0xff]  }
  0x5a   :  { %2661 = vmatprep.subr.bf16.mxu1 %v2936_v34  ;;  %v3004_v34 = vld [vmem:[%s3777_s1 + $0x4e0] sm:$0xff]  }
  0x5b   :  { %2640 = vmatpush3.bf16.msra.mxu0 %v2935_v33  ;;  %v3003_v33 = vld [vmem:[%s3777_s1 + $0x420] sm:$0xff]  }
  0x5c   :  { %2641 = vmatprep.subr.bf16.mxu0 %v2938_v36  ;;  %v3006_v36 = vld [vmem:[%s3777_s1 + $0x468] sm:$0xff]  }
  0x5d   :  { %2662 = vmatpush3.bf16.msra.mxu1 %v2937_v35  ;;  %v3005_v35 = vld [vmem:[%s3777_s1 + $0x4a0] sm:$0xff]  }
  0x5e   :  { %2663 = vmatprep.subr.bf16.mxu1 %v2940_v38  ;;  %v3008_v38 = vld [vmem:[%s3777_s1 + $0x4e8] sm:$0xff]  }
  0x5f   :  { %2642 = vmatpush3.bf16.msra.mxu0 %v2939_v37  ;;  %v3007_v37 = vld [vmem:[%s3777_s1 + $0x428] sm:$0xff]  }
  0x60   :  { %2671 = vmatprep.subr.bf16.mxu0 %v2945_v42  ;;  %v3012_v42 = vld [vmem:[%s3777_s1 + $0x4f0] sm:$0xff]  }
  0x61   :  { %2664 = vmatpush3.bf16.msra.mxu1 %v2944_v41  ;;  %v3011_v41 = vld [vmem:[%s3777_s1 + $0x430] sm:$0xff]  }
  0x62   :  { %1971 = vmatmul.mubr.bf16.vlgmr.msra.gmra.mrb[8].mxu0 %v2941_v39  ;;  %2693 = vmatprep.subr.bf16.mxu1 %v2950_v46  ;;  %v3009_v39 = vld [vmem:[%s3777_s1 + $0x4a8] sm:$0xff]   ;;  %v3016_v46 = vld [vmem:[%s3777_s1 + $0x4f8] sm:$0xff]  }
  0x63   :  { %2672 = vmatpush3.bf16.msra.mxu0 %v2949_v45  ;;  %2052 = vmatprep.mubr.bf16.mxu0 %v2981_v12  ;;  %v3015_v45 = vld [vmem:[%s3777_s1 + $0x438] sm:$0xff]   ;;  %v3048_v12 = vld [vmem:[%s3777_s1 + $0x570] sm:$0xff]  }
  0x64   :  { %2012 = vmatmul.mubr.bf16.vlgmr.msra.gmra.mrb[8].mxu1 %v2946_v43  ;;  %2673 = vmatprep.subr.bf16.mxu0 %v2952_v48  ;;  %v3013_v43 = vld [vmem:[%s3777_s1 + $0x4b0] sm:$0xff]   ;;  %v3019_v48 = vld [vmem:[%s3778_s0 + $0x44] ss:$100 sps:$4 sm:$0xff]  }
  0x65   :  { %2694 = vmatpush3.bf16.msra.mxu1 %v2951_v47  ;;  %2093 = vmatprep.mubr.bf16.mxu1 %v2986_v16  ;;  %v3017_v47 = vld [vmem:[%s3778_s0 + $0x40] ss:$100 sps:$4 sm:$0xff]   ;;  %v3052_v16 = vld [vmem:[%s3777_s1 + $0x578] sm:$0xff]  }
  0x66   :  { %2695 = vmatprep.subr.bf16.mxu1 %v2954_v50  ;;  %v3021_v50 = vld [vmem:[%s3777_s1 + $0x540] sm:$0xff]  }
  0x67   :  { %2674 = vmatpush3.bf16.msra.mxu0 %v2953_v49  ;;  %v3020_v49 = vld [vmem:[%s3777_s1 + $0x4b8] sm:$0xff]  }
  0x68   :  { %2675 = vmatprep.subr.bf16.mxu0 %v2956_v52  ;;  %v3024_v52 = vld [vmem:[%s3778_s0 + $0x4c] ss:$100 sps:$4 sm:$0xff]  }
  0x69   :  { %2696 = vmatpush3.bf16.msra.mxu1 %v2955_v51  ;;  %v3022_v51 = vld [vmem:[%s3778_s0 + $0x48] ss:$100 sps:$4 sm:$0xff]  }
  0x6a   :  { %2697 = vmatprep.subr.bf16.mxu1 %v2958_v54  ;;  %v3026_v54 = vld [vmem:[%s3777_s1 + $0x5c0] sm:$0xff]  }
  0x6b   :  { %2676 = vmatpush3.bf16.msra.mxu0 %v2957_v53  ;;  %v3025_v53 = vld [vmem:[%s3777_s1 + $0x500] sm:$0xff]  }
  0x6c   :  { %2677 = vmatprep.subr.bf16.mxu0 %v2960_v56  ;;  %v3028_v56 = vld [vmem:[%s3777_s1 + $0x548] sm:$0xff]  }
  0x6d   :  { %2698 = vmatpush3.bf16.msra.mxu1 %v2959_v55  ;;  %v3027_v55 = vld [vmem:[%s3777_s1 + $0x580] sm:$0xff]  }
  0x6e   :  { %2699 = vmatprep.subr.bf16.mxu1 %v2962_v58  ;;  %v3030_v58 = vld [vmem:[%s3777_s1 + $0x5c8] sm:$0xff]  }
  0x6f   :  { %2678 = vmatpush3.bf16.msra.mxu0 %v2961_v57  ;;  %v3029_v57 = vld [vmem:[%s3777_s1 + $0x508] sm:$0xff]  }
  0x70   :  { %2679 = vmatprep.subr.bf16.mxu0 %v2964_v60  ;;  %v3032_v60 = vld [vmem:[%s3777_s1 + $0x550] sm:$0xff]  }
  0x71   :  { %2700 = vmatpush3.bf16.msra.mxu1 %v2963_v59  ;;  %v3031_v59 = vld [vmem:[%s3777_s1 + $0x588] sm:$0xff]  }
  0x72   :  { %2701 = vmatprep.subr.bf16.mxu1 %v2966_v62  ;;  %v3034_v62 = vld [vmem:[%s3777_s1 + $0x5d0] sm:$0xff]  }
  0x73   :  { %2680 = vmatpush3.bf16.msra.mxu0 %v2965_v61  ;;  %v3033_v61 = vld [vmem:[%s3777_s1 + $0x510] sm:$0xff]  }
  0x74   :  { %2681 = vmatprep.subr.bf16.mxu0 %v2968_v0  ;;  %v3036_v0 = vld [vmem:[%s3777_s1 + $0x558] sm:$0xff]  }
  0x75   :  { %2702 = vmatpush3.bf16.msra.mxu1 %v2967_v63  ;;  %v3035_v63 = vld [vmem:[%s3777_s1 + $0x590] sm:$0xff]  }
  0x76   :  { %2703 = vmatprep.subr.bf16.mxu1 %v2970_v2  ;;  %v3038_v2 = vld [vmem:[%s3777_s1 + $0x5d8] sm:$0xff]  }
  0x77   :  { %2682 = vmatpush3.bf16.msra.mxu0 %v2969_v1  ;;  %v3037_v1 = vld [vmem:[%s3777_s1 + $0x518] sm:$0xff]  }
  0x78   :  { %2683 = vmatprep.subr.bf16.mxu0 %v2972_v4  ;;  %v3040_v4 = vld [vmem:[%s3777_s1 + $0x560] sm:$0xff]  }
  0x79   :  { %2704 = vmatpush3.bf16.msra.mxu1 %v2971_v3  ;;  %v3039_v3 = vld [vmem:[%s3777_s1 + $0x598] sm:$0xff]  }
  0x7a   :  { %2705 = vmatprep.subr.bf16.mxu1 %v2974_v6  ;;  %v3042_v6 = vld [vmem:[%s3777_s1 + $0x5e0] sm:$0xff]  }
  0x7b   :  { %2684 = vmatpush3.bf16.msra.mxu0 %v2973_v5  ;;  %v3041_v5 = vld [vmem:[%s3777_s1 + $0x520] sm:$0xff]  }
  0x7c   :  { %2685 = vmatprep.subr.bf16.mxu0 %v2976_v8  ;;  %v3044_v8 = vld [vmem:[%s3777_s1 + $0x568] sm:$0xff]  }
  0x7d   :  { %2706 = vmatpush3.bf16.msra.mxu1 %v2975_v7  ;;  %v3043_v7 = vld [vmem:[%s3777_s1 + $0x5a0] sm:$0xff]  }
  0x7e   :  { %2707 = vmatprep.subr.bf16.mxu1 %v2978_v10  ;;  %v3046_v10 = vld [vmem:[%s3777_s1 + $0x5e8] sm:$0xff]  }
  0x7f   :  { %2686 = vmatpush3.bf16.msra.mxu0 %v2977_v9  ;;  %v3045_v9 = vld [vmem:[%s3777_s1 + $0x528] sm:$0xff]  }
  0x80   :  { %2715 = vmatprep.subr.bf16.mxu0 %v2983_v14  ;;  %v3050_v14 = vld [vmem:[%s3777_s1 + $0x5f0] sm:$0xff]  }
  0x81   :  { %2708 = vmatpush3.bf16.msra.mxu1 %v2982_v13  ;;  %v3049_v13 = vld [vmem:[%s3777_s1 + $0x530] sm:$0xff]  }
  0x82   :  { %2053 = vmatmul.mubr.bf16.vlgmr.msra.gmra.mrb[12].mxu0 %v2979_v11  ;;  %2737 = vmatprep.subr.bf16.mxu1 %v2988_v18  ;;  %v3047_v11 = vld [vmem:[%s3777_s1 + $0x5a8] sm:$0xff]   ;;  %v3054_v18 = vld [vmem:[%s3777_s1 + $0x5f8] sm:$0xff]  }
  0x83   :  { %2716 = vmatpush3.bf16.msra.mxu0 %v2987_v17  ;;  %2134 = vmatprep.mubr.bf16.mxu0 %v3019_v48  ;;  %v3053_v17 = vld [vmem:[%s3777_s1 + $0x538] sm:$0xff]  }
  0x84   :  { %2094 = vmatmul.mubr.bf16.vlgmr.msra.gmra.mrb[12].mxu1 %v2984_v15  ;;  %2717 = vmatprep.subr.bf16.mxu0 %v2990_v20  ;;  %v3051_v15 = vld [vmem:[%s3777_s1 + $0x5b0] sm:$0xff]  }
  0x85   :  { %2738 = vmatpush3.bf16.msra.mxu1 %v2989_v19  ;;  %2175 = vmatprep.mubr.bf16.mxu1 %v3024_v52  ;;  %v3055_v19 = vld [vmem:[%s3778_s0 + $0x50] ss:$100 sps:$4 sm:$0xff]  }
  0x86   :  { %2739 = vmatprep.subr.bf16.mxu1 %v2992_v22  ;;  %v3057_v20 = vld [vmem:[%s3778_s0 + $0x54] ss:$100 sps:$4 sm:$0xff]   ;;  %v3071_v22 = vmov 0.0  }
  0x87   :  { %2718 = vmatpush3.bf16.msra.mxu0 %v2991_v21  ;;  %v3058_v21 = vld [vmem:[%s3777_s1 + $0x5b8] sm:$0xff]  }
  0x88   :  { %2719 = vmatprep.subr.bf16.mxu0 %v2994_v24  ;;  %v3061_v24 = vld [vmem:[%s3778_s0 + $0x5c] ss:$100 sps:$4 sm:$0xff]  }
  0x89   :  { %2740 = vmatpush3.bf16.msra.mxu1 %v2993_v23  ;;  %v3059_v23 = vld [vmem:[%s3778_s0 + $0x58] ss:$100 sps:$4 sm:$0xff]  }
  0x8a   :  { %2741 = vmatprep.subr.bf16.mxu1 %v2996_v26  ;;  %v3063_v26 = vld [vmem:[%s3777_s1 + $0x608] sm:$0xff]  }
  0x8b   :  { %2720 = vmatpush3.bf16.msra.mxu0 %v2995_v25  ;;  %v3062_v25 = vld [vmem:[%s3777_s1 + $0x600] sm:$0xff]  }
  0x8c   :  { %2721 = vmatprep.subr.bf16.mxu0 %v2998_v28  ;;  %v3065_v28 = vld [vmem:[%s3777_s1 + $0x618] sm:$0xff]  }
  0x8d   :  { %2742 = vmatpush3.bf16.msra.mxu1 %v2997_v27  ;;  %v3064_v27 = vld [vmem:[%s3777_s1 + $0x610] sm:$0xff]  }
  0x8e   :  { %2743 = vmatprep.subr.bf16.mxu1 %v3000_v30  ;;  %v3067_v30 = vld [vmem:[%s3777_s1 + $0x628] sm:$0xff]  }
  0x8f   :  { %2722 = vmatpush3.bf16.msra.mxu0 %v2999_v29  ;;  %v3066_v29 = vld [vmem:[%s3777_s1 + $0x620] sm:$0xff]  }
  0x90   :  { %2723 = vmatprep.subr.bf16.mxu0 %v3002_v32  ;;  %v3069_v32 = vld [vmem:[%s3777_s1 + $0x638] sm:$0xff]  }
  0x91   :  { %2744 = vmatpush3.bf16.msra.mxu1 %v3001_v31  ;;  %v3068_v31 = vld [vmem:[%s3777_s1 + $0x630] sm:$0xff]  }
  0x92   :  { %2745 = vmatprep.subr.bf16.mxu1 %v3004_v34 }
  0x93   :  { %2724 = vmatpush3.bf16.msra.mxu0 %v3003_v33  ;;  %v3070_v33 = vld [vmem:[%s3778_s0 + $0x60] ss:$100 sps:$4 sm:$0xff]  }
  0x94   :  { %2725 = vmatprep.subr.bf16.mxu0 %v3006_v36 }
  0x95   :  { %2746 = vmatpush3.bf16.msra.mxu1 %v3005_v35  ;;  %v2313_v35 = vld [vmem:[%s3779_s2] ss:$0 sm:$0xff] }
  0x96   :  { %2747 = vmatprep.subr.bf16.mxu1 %v3008_v38 }
  0x97   :  { %2726 = vmatpush3.bf16.msra.mxu0 %v3007_v37 }
  0x98   :  { %2727 = vmatprep.subr.bf16.mxu0 %v3010_v40 }
  0x99   :  { %2748 = vmatpush3.bf16.msra.mxu1 %v3009_v39 }
  0x9a   :  { %2749 = vmatprep.subr.bf16.mxu1 %v3012_v42 }
  0x9b   :  { %2728 = vmatpush3.bf16.msra.mxu0 %v3011_v41 }
  0x9c   :  { %2729 = vmatprep.subr.bf16.mxu0 %v3014_v44 }
  0x9d   :  { %2750 = vmatpush3.bf16.msra.mxu1 %v3013_v43 }
  0x9e   :  { %2751 = vmatprep.subr.bf16.mxu1 %v3016_v46 }
  0x9f   :  { %2730 = vmatpush3.bf16.msra.mxu0 %v3015_v45 }
  0xa0   :  { %2759 = vmatprep.subr.bf16.mxu0 %v3021_v50 }
  0xa1   :  { %2752 = vmatpush3.bf16.msra.mxu1 %v3020_v49 }
  0xa2   :  { %2135 = vmatmul.mubr.bf16.vlgmr.msra.gmra.mrb[16].mxu0 %v3017_v47  ;;  %2781 = vmatprep.subr.bf16.mxu1 %v3026_v54 }
  0xa3   :  { %2760 = vmatpush3.bf16.msra.mxu0 %v3025_v53  ;;  %2216 = vmatprep.mubr.bf16.mxu0 %v3057_v20 }
  0xa4   :  { %2176 = vmatmul.mubr.bf16.vlgmr.msra.gmra.mrb[16].mxu1 %v3022_v51  ;;  %2761 = vmatprep.subr.bf16.mxu0 %v3028_v56 }
  0xa5   :  { %2782 = vmatpush3.bf16.msra.mxu1 %v3027_v55  ;;  %2257 = vmatprep.mubr.bf16.mxu1 %v3061_v24 }
  0xa6   :  { %2783 = vmatprep.subr.bf16.mxu1 %v3030_v58 }
  0xa7   :  { %2762 = vmatpush3.bf16.msra.mxu0 %v3029_v57 }
  0xa8   :  { %2763 = vmatprep.subr.bf16.mxu0 %v3032_v60 }
  0xa9   :  { %2784 = vmatpush3.bf16.msra.mxu1 %v3031_v59 }
  0xaa   :  { %2785 = vmatprep.subr.bf16.mxu1 %v3034_v62 }
  0xab   :  { %2764 = vmatpush3.bf16.msra.mxu0 %v3033_v61 }
  0xac   :  { %2765 = vmatprep.subr.bf16.mxu0 %v3036_v0 }
  0xad   :  { %2786 = vmatpush3.bf16.msra.mxu1 %v3035_v63 }
  0xae   :  { %2787 = vmatprep.subr.bf16.mxu1 %v3038_v2 }
  0xaf   :  { %2766 = vmatpush3.bf16.msra.mxu0 %v3037_v1 }
  0xb0   :  { %2767 = vmatprep.subr.bf16.mxu0 %v3040_v4 }
  0xb1   :  { %2788 = vmatpush3.bf16.msra.mxu1 %v3039_v3 }
  0xb2   :  { %2789 = vmatprep.subr.bf16.mxu1 %v3042_v6 }
  0xb3   :  { %2768 = vmatpush3.bf16.msra.mxu0 %v3041_v5 }
  0xb4   :  { %2769 = vmatprep.subr.bf16.mxu0 %v3044_v8 }
  0xb5   :  { %2790 = vmatpush3.bf16.msra.mxu1 %v3043_v7 }
  0xb6   :  { %2791 = vmatprep.subr.bf16.mxu1 %v3046_v10 }
  0xb7   :  { %2770 = vmatpush3.bf16.msra.mxu0 %v3045_v9 }
  0xb8   :  { %2771 = vmatprep.subr.bf16.mxu0 %v3048_v12 }
  0xb9   :  { %2792 = vmatpush3.bf16.msra.mxu1 %v3047_v11 }
  0xba   :  { %2793 = vmatprep.subr.bf16.mxu1 %v3050_v14 }
  0xbb   :  { %2772 = vmatpush3.bf16.msra.mxu0 %v3049_v13 }
  0xbc   :  { %2773 = vmatprep.subr.bf16.mxu0 %v3052_v16 }
  0xbd   :  { %2794 = vmatpush3.bf16.msra.mxu1 %v3051_v15 }
  0xbe   :  { %2795 = vmatprep.subr.bf16.mxu1 %v3054_v18 }
  0xbf   :  { %2774 = vmatpush3.bf16.msra.mxu0 %v3053_v17 }
  0xc0   :  { %2812 = vmatprep.subr.bf16.mxu0 %v3071_v22 }
  0xc1   :  { %2796 = vmatpush3.bf16.msra.mxu1 %v3058_v21 }
  0xc2   :  { %2217 = vmatmul.mubr.bf16.vlgmr.msra.gmra.mrb[20].mxu0 %v3055_v19 }
  0xc3   :  { %2828 = vmatprep.mubr.msk.bf16.mxu0 %vm3072_vm0, %v3071_v22  ;;  %2813 = vmatpush3.bf16.msra.mxu0 %v3062_v25 }
  0xc4   :  { %2258 = vmatmul.mubr.bf16.vlgmr.msra.gmra.mrb[20].mxu1 %v3059_v23  ;;  %2814 = vmatprep.subr.bf16.mxu0 %v3071_v22 }
  0xc7   :  { %2815 = vmatpush3.bf16.msra.mxu0 %v3063_v26 }
  0xc8   :  { %2816 = vmatprep.subr.bf16.mxu0 %v3071_v22 }
  0xcb   :  { %2817 = vmatpush3.bf16.msra.mxu0 %v3064_v27 }
  0xcc   :  { %2818 = vmatprep.subr.bf16.mxu0 %v3071_v22 }
  0xcf   :  { %2819 = vmatpush3.bf16.msra.mxu0 %v3065_v28 }
  0xd0   :  { %2820 = vmatprep.subr.bf16.mxu0 %v3071_v22 }
  0xd3   :  { %2821 = vmatpush3.bf16.msra.mxu0 %v3066_v29 }
  0xd4   :  { %2822 = vmatprep.subr.bf16.mxu0 %v3071_v22 }
  0xd7   :  { %2823 = vmatpush3.bf16.msra.mxu0 %v3067_v30 }
  0xd8   :  { %2824 = vmatprep.subr.bf16.mxu0 %v3071_v22 }
  0xdb   :  { %2825 = vmatpush3.bf16.msra.mxu0 %v3068_v31 }
  0xdc   :  { %2826 = vmatprep.subr.bf16.mxu0 %v3071_v22 }
  0xdf   :  { %2827 = vmatpush3.bf16.msra.mxu0 %v3069_v32 }
  0xe2   :  { %2829 = vmatmul.mubr.bf16.vlgmr.msra.gmra.mrb[24].mxu0 %v3070_v33 }
  0xf5   :  { %v2555_v34 = vpop.f32.mrb[0].mxu0 }
  0xf6   :  { %v2556_v36 = vpop.f32.mrb[1].mxu0 }
  0xf7   :  { %v2557_v37 = vadd.f32 %v2556_v36, %v2555_v34  ;;  %v2558_v38 = vpop.f32.mrb[2].mxu0  ;;  %v2577_v39 = vpop.f32.mrb[0].mxu1 }
  0xf8   :  { %v2559_v40 = vpop.f32.mrb[3].mxu0  ;;  %v2578_v43 = vpop.f32.mrb[1].mxu1 }
  0xf9   :  { %v1809_v41 = vadd.f32 %v2557_v37, %v2313_v35  ;;  %v2560_v42 = vadd.f32 %v2559_v40, %v2558_v38  ;;  %v2579_v44 = vadd.f32 %v2578_v43, %v2577_v39  ;;  %v2580_v45 = vpop.f32.mrb[2].mxu1 }
  0xfa   :  { %v2581_v47 = vpop.f32.mrb[3].mxu1 }
  0xfb   :  { %v1812_v46 = vadd.f32 %v2560_v42, %v2313_v35  ;;  %v1850_v48 = vadd.f32 %v2579_v44, %v1809_v41  ;;  %v2582_v49 = vadd.f32 %v2581_v47, %v2580_v45 }
  0xfd   :  { %v1853_v50 = vadd.f32 %v2582_v49, %v1812_v46 }
 0x115   :  { %v2599_v51 = vpop.f32.mrb[4].mxu0 }
 0x116   :  { %v2600_v52 = vpop.f32.mrb[5].mxu0 }
 0x117   :  { %v2601_v53 = vadd.f32 %v2600_v52, %v2599_v51  ;;  %v2602_v54 = vpop.f32.mrb[6].mxu0  ;;  %v2621_v57 = vpop.f32.mrb[4].mxu1 }
 0x118   :  { %v2603_v55 = vpop.f32.mrb[7].mxu0  ;;  %v2622_v59 = vpop.f32.mrb[5].mxu1 }
 0x119   :  { %v1891_v56 = vadd.f32 %v2601_v53, %v1850_v48  ;;  %v2604_v58 = vadd.f32 %v2603_v55, %v2602_v54  ;;  %v2623_v61 = vadd.f32 %v2622_v59, %v2621_v57  ;;  %v2624_v62 = vpop.f32.mrb[6].mxu1 }
 0x11a   :  { %v2625_v63 = vpop.f32.mrb[7].mxu1 }
 0x11b   :  { %v1894_v60 = vadd.f32 %v2604_v58, %v1853_v50  ;;  %v1932_v0 = vadd.f32 %v2623_v61, %v1891_v56  ;;  %v2626_v1 = vadd.f32 %v2625_v63, %v2624_v62 }
 0x11d   :  { %v1935_v2 = vadd.f32 %v2626_v1, %v1894_v60 }
 0x135   :  { %v2643_v3 = vpop.f32.mrb[8].mxu0 }
 0x136   :  { %v2644_v4 = vpop.f32.mrb[9].mxu0 }
 0x137   :  { %v2645_v5 = vadd.f32 %v2644_v4, %v2643_v3  ;;  %v2646_v6 = vpop.f32.mrb[10].mxu0  ;;  %v2665_v7 = vpop.f32.mrb[8].mxu1 }
 0x138   :  { %v2647_v8 = vpop.f32.mrb[11].mxu0  ;;  %v2666_v11 = vpop.f32.mrb[9].mxu1 }
 0x139   :  { %v1973_v9 = vadd.f32 %v2645_v5, %v1932_v0  ;;  %v2648_v10 = vadd.f32 %v2647_v8, %v2646_v6  ;;  %v2667_v12 = vadd.f32 %v2666_v11, %v2665_v7  ;;  %v2668_v13 = vpop.f32.mrb[10].mxu1 }
 0x13a   :  { %v2669_v15 = vpop.f32.mrb[11].mxu1 }
 0x13b   :  { %v1976_v14 = vadd.f32 %v2648_v10, %v1935_v2  ;;  %v2014_v16 = vadd.f32 %v2667_v12, %v1973_v9  ;;  %v2670_v17 = vadd.f32 %v2669_v15, %v2668_v13 }
 0x13d   :  { %v2017_v18 = vadd.f32 %v2670_v17, %v1976_v14 }
 0x155   :  { %v2687_v19 = vpop.f32.mrb[12].mxu0 }
 0x156   :  { %v2688_v20 = vpop.f32.mrb[13].mxu0 }
 0x157   :  { %v2689_v21 = vadd.f32 %v2688_v20, %v2687_v19  ;;  %v2690_v22 = vpop.f32.mrb[14].mxu0  ;;  %v2709_v23 = vpop.f32.mrb[12].mxu1 }
 0x158   :  { %v2691_v24 = vpop.f32.mrb[15].mxu0  ;;  %v2710_v27 = vpop.f32.mrb[13].mxu1 }
 0x159   :  { %v2055_v25 = vadd.f32 %v2689_v21, %v2014_v16  ;;  %v2692_v26 = vadd.f32 %v2691_v24, %v2690_v22  ;;  %v2711_v28 = vadd.f32 %v2710_v27, %v2709_v23  ;;  %v2712_v29 = vpop.f32.mrb[14].mxu1 }
 0x15a   :  { %v2713_v31 = vpop.f32.mrb[15].mxu1 }
 0x15b   :  { %v2058_v30 = vadd.f32 %v2692_v26, %v2017_v18  ;;  %v2096_v32 = vadd.f32 %v2711_v28, %v2055_v25  ;;  %v2714_v33 = vadd.f32 %v2713_v31, %v2712_v29 }
 0x15d   :  { %v2099_v34 = vadd.f32 %v2714_v33, %v2058_v30 }
 0x175   :  { %v2731_v35 = vpop.f32.mrb[16].mxu0 }
 0x176   :  { %v2732_v36 = vpop.f32.mrb[17].mxu0 }
 0x177   :  { %v2733_v37 = vadd.f32 %v2732_v36, %v2731_v35  ;;  %v2734_v38 = vpop.f32.mrb[18].mxu0  ;;  %v2753_v41 = vpop.f32.mrb[16].mxu1 }
 0x178   :  { %v2735_v39 = vpop.f32.mrb[19].mxu0  ;;  %v2754_v43 = vpop.f32.mrb[17].mxu1 }
 0x179   :  { %v2137_v40 = vadd.f32 %v2733_v37, %v2096_v32  ;;  %v2736_v42 = vadd.f32 %v2735_v39, %v2734_v38  ;;  %v2755_v45 = vadd.f32 %v2754_v43, %v2753_v41  ;;  %v2756_v46 = vpop.f32.mrb[18].mxu1 }
 0x17a   :  { %v2757_v47 = vpop.f32.mrb[19].mxu1 }
 0x17b   :  { %v2140_v44 = vadd.f32 %v2736_v42, %v2099_v34  ;;  %v2178_v48 = vadd.f32 %v2755_v45, %v2137_v40  ;;  %v2758_v49 = vadd.f32 %v2757_v47, %v2756_v46 }
 0x17d   :  { %v2181_v50 = vadd.f32 %v2758_v49, %v2140_v44 }
 0x195   :  { %v2775_v51 = vpop.f32.mrb[20].mxu0 }
 0x196   :  { %v2776_v52 = vpop.f32.mrb[21].mxu0 }
 0x197   :  { %v2777_v53 = vadd.f32 %v2776_v52, %v2775_v51  ;;  %v2778_v54 = vpop.f32.mrb[22].mxu0  ;;  %v2797_v55 = vpop.f32.mrb[20].mxu1 }
 0x198   :  { %v2779_v56 = vpop.f32.mrb[23].mxu0  ;;  %v2798_v59 = vpop.f32.mrb[21].mxu1 }
 0x199   :  { %v2219_v57 = vadd.f32 %v2777_v53, %v2178_v48  ;;  %v2780_v58 = vadd.f32 %v2779_v56, %v2778_v54  ;;  %v2799_v60 = vadd.f32 %v2798_v59, %v2797_v55  ;;  %v2800_v61 = vpop.f32.mrb[22].mxu1 }
 0x19a   :  { %v2801_v63 = vpop.f32.mrb[23].mxu1 }
 0x19b   :  { %v2222_v62 = vadd.f32 %v2780_v58, %v2181_v50  ;;  %v2802_v0 = vadd.f32 %v2801_v63, %v2800_v61  ;;  %v2260_v1 = vadd.f32 %v2799_v60, %v2219_v57 }
 0x19d   :  { %v2263_v2 = vadd.f32 %v2802_v0, %v2222_v62 }
 0x1b5   :  { %v2300_v3 = vpop.f32.mrb[24].mxu0 }
 0x1b6   :  { %v2301_v4 = vadd.f32 %v2300_v3, %v2260_v1  ;;  %v2830_v5 = vpop.f32.mrb[25].mxu0 }
 0x1b7   :  { %v2303_v6 = vpop.f32.mrb[26].mxu0 }
 0x1b8   :  { %2307 = vst [vmem:[%s3780_s3] sm:$0xff] %v2301_v4  ;;  %v2304_v7 = vadd.f32 %v2303_v6, %v2263_v2  ;;  %v2831_v8 = vpop.f32.mrb[27].mxu0 }
 0x1ba   :  { %2308 = vst [vmem:[%s3780_s3 + $0x8] sm:$0xff] %v2304_v7 }

</bundles_post_ra>
